<compile_context>
chip_gen: v6e
topology: v6e:2x2x1
jax: 0.10.0
libtpu: 0.0.40
codegen_flags: <defaults>
</compile_context>

<pallas_src>
import functools

import jax
import jax.numpy as jnp
from jax.experimental import pallas as pl
from jax.experimental.pallas import tpu as pltpu


_LANES = 128


def _round_up(v: int, m: int) -> int:
    return (v + m - 1) // m * m


def _make_knn_kernel(kd: int, n_pad: int, out_lanes: int):
    """Kernel: for the current stroke (grid step), compute the indices of the
    kd nearest neighbors (self included, squared L2) for every point.
    Matches torch.topk(-pairwise_distance(x1), kd) semantics (descending,
    lowest-index tie-break)."""

    def kernel(lens_ref, x_ref, out_ref):
        s = pl.program_id(0)
        nv = lens_ref[s]                                   # valid points in this stroke

        x = x_ref[0].astype(jnp.float32)                   # (n_pad, d), zero padded rows
        # pairwise_distance: ||xi||^2 - 2 xi.xj + ||xj||^2 (negated).
        # Keep the exact same expression as the pure-JAX reference so rounding
        # (and therefore tie-breaking) matches bit-for-bit.
        sq = jnp.sum(x * x, axis=-1, keepdims=True)        # (n_pad, 1)
        inner = jnp.dot(x, x.T, preferred_element_type=jnp.float32)  # MXU (n_pad, n_pad)
        neg = -(sq - 2.0 * inner + sq.T)                   # neg squared distance

        col = jax.lax.broadcasted_iota(jnp.int32, (n_pad, n_pad), 1)
        # Mask padded columns so they are never selected for valid rows.
        neg = jnp.where(col < nv, neg, -jnp.inf)

        # Zero-init the lane-dense output slab once (dense store), then write
        # one index column per top-k iteration directly into the VMEM block
        # (no cols list / concatenate, minimal live vreg state).
        out_ref[0] = jnp.zeros((n_pad, out_lanes), jnp.int32)

        for t in range(kd):                                # kd is small & static -> unrolled
            m = jnp.max(neg, axis=-1, keepdims=True)       # row max
            # lowest-index column attaining the max (exact tie-break).
            idx = jnp.min(jnp.where(neg == m, col, n_pad), axis=-1, keepdims=True)
            out_ref[0, :, t:t + 1] = idx                   # (n_pad, 1) column write
            # mask the chosen column for the next round.
            neg = jnp.where(col == idx, -jnp.inf, neg)

    return kernel


@functools.partial(jax.jit, static_argnums=(2,))
def _knn_batched(x_padded, lens, kd):
    """x_padded: (S, n_pad, d) f32, lens: (S,) int32 valid lengths.
    Returns (S, n_pad, out_lanes) int32; columns [:kd] are the neighbor ids."""
    S, n_pad, d = x_padded.shape
    out_lanes = _round_up(max(kd, 1), _LANES)
    return pl.pallas_call(
        _make_knn_kernel(kd, n_pad, out_lanes),
        out_shape=jax.ShapeDtypeStruct((S, n_pad, out_lanes), jnp.int32),
        grid_spec=pltpu.PrefetchScalarGridSpec(
            num_scalar_prefetch=1,                 # lens -> SMEM, visible to index maps
            grid=(S,),
            in_specs=[pl.BlockSpec((1, n_pad, d), lambda s, lens_ref: (s, 0, 0))],
            out_specs=pl.BlockSpec((1, n_pad, out_lanes), lambda s, lens_ref: (s, 0, 0)),
        ),
        compiler_params=pltpu.CompilerParams(
            # strokes are independent -> shard across TensorCores on v7x.
            dimension_semantics=("parallel",),
        ),
    )(lens, x_padded)


def dilated_knn_graph(x, sketch_stroke_num, k=9, dilation=1):
    """JAX equivalent of DilatedKnnGraph.forward (deterministic / eval path).

    x: (num_points, num_dims) float32
    sketch_stroke_num: python list/tuple of static per-stroke point counts
    returns edge_index: (2, num_points * k) int32  (row 0 = neighbor idx,
                                                    row 1 = center idx)
    """
    kd = k * dilation
    stroke_nums = [int(n) for n in sketch_stroke_num]
    # NOTE: like torch.topk, this requires every stroke to have >= k*dilation points.
    assert all(n >= kd for n in stroke_nums), "stroke shorter than k*dilation"

    n_max = max(stroke_nums)
    n_pad = _round_up(max(n_max, 8), _LANES)     # lane/sublane aligned stroke length
    d = x.shape[1]

    # Pad every stroke to n_pad and stack: one pallas_call for all strokes.
    parts, starts = [], []
    start = 0
    for n in stroke_nums:
        xi = x[start:start + n]
        parts.append(jnp.pad(xi, ((0, n_pad - n), (0, 0))))
        starts.append(start)
        start += n
    x_padded = jnp.stack(parts, axis=0).astype(jnp.float32)      # (S, n_pad, d)
    lens = jnp.asarray(stroke_nums, dtype=jnp.int32)             # (S,)

    nn_all = _knn_batched(x_padded, lens, kd)                    # (S, n_pad, out_lanes)

    # Index bookkeeping (offsets, center indices, concat, dilation) = JAX glue,
    # mirroring knn_matrix / knn_graph_matrix / Dilated exactly.
    nn_parts, center_parts = [], []
    for i, (n, st) in enumerate(zip(stroke_nums, starts)):
        nn_parts.append((nn_all[i, :n, :kd] + st).reshape(-1))   # row-major flatten
        center_parts.append(jnp.repeat(jnp.arange(n, dtype=jnp.int32), kd) + st)
    edge_index = jnp.stack(
        [jnp.concatenate(nn_parts), jnp.concatenate(center_parts)], axis=0)
    # Dilated (non-stochastic / eval path): edge_index[:, ::dilation]
    return edge_index[:, ::dilation]


def _reference_knn(x, sketch_stroke_num, k, dilation):
    """Pure-JAX reference mirroring the PyTorch code, for correctness checks."""
    kd = k * dilation
    nn_parts, center_parts = [], []
    start = 0
    for n in sketch_stroke_num:
        n = int(n)
        x1 = x[start:start + n].astype(jnp.float32)
        sq = jnp.sum(x1 * x1, axis=-1, keepdims=True)
        neg = -(sq - 2.0 * jnp.dot(x1, x1.T) + sq.T)
        _, nn_idx = jax.lax.top_k(neg, kd)
        nn_parts.append((nn_idx.astype(jnp.int32) + start).reshape(-1))
        center_parts.append(jnp.repeat(jnp.arange(n, dtype=jnp.int32), kd) + start)
        start += n
    edge = jnp.stack([jnp.concatenate(nn_parts), jnp.concatenate(center_parts)], 0)
    return edge[:, ::dilation]


if __name__ == "__main__":
    key = jax.random.PRNGKey(0)
    num_points, num_dims = 32, 4
    x = jax.random.normal(key, (num_points, num_dims), dtype=jnp.float32)
    batch = jnp.zeros((num_points,), dtype=jnp.int32)   # unused, kept for parity

    # Config 1: matches the module defaults (k=9, dilation=1), two 16-pt strokes.
    k, dilation = 9, 1
    sketch_stroke_num = [16, 16]
    edge_index = dilated_knn_graph(x, sketch_stroke_num, k=k, dilation=dilation)
    edge_index = jax.block_until_ready(edge_index)
    ref = _reference_knn(x, sketch_stroke_num, k, dilation)
    assert edge_index.shape == (2, num_points * k), edge_index.shape
    assert jnp.array_equal(edge_index, ref), "mismatch vs reference (config 1)"

    # Config 2: odd stroke lengths + dilation > 1 (exercises padding mask & slicing).
    k2, d2 = 5, 2
    strokes2 = [17, 15]
    e2 = jax.block_until_ready(dilated_knn_graph(x, strokes2, k=k2, dilation=d2))
    ref2 = _reference_knn(x, strokes2, k2, d2)
    assert e2.shape == ref2.shape, (e2.shape, ref2.shape)
    assert jnp.array_equal(e2, ref2), "mismatch vs reference (config 2)"

    print("KERNEL_OK")
</pallas_src>

<mosaic_0001>
module attributes {stable_mosaic.version = 11 : i64} {
  func.func @kernel(%arg0: i32, %arg1: memref<2xi32, #tpu.memory_space<smem>>, %arg2: memref<1x128x4xf32, #tpu.memory_space<vmem>>, %arg3: memref<1x128x128xi32, #tpu.memory_space<vmem>>) attributes {dimension_semantics = [#tpu.dimension_semantics<parallel>], iteration_bounds = array<i64: 2>, scalar_prefetch = 1 : i64, scratch_operands = 0 : i64, tpu.core_type = #tpu.core_type<tc>, window_params = [{transform_indices = @transform_0, window_bounds = array<i64: 1, 128, 4>}, {transform_indices = @transform_1, window_bounds = array<i64: 1, 128, 128>}]} {
    %0 = arith.index_cast %arg0 : i32 to index
    %1 = memref.load %arg1[%0] : memref<2xi32, #tpu.memory_space<smem>>
    %c0 = arith.constant 0 : index
    %c0_0 = arith.constant 0 : index
    %c0_1 = arith.constant 0 : index
    %2 = vector.load %arg2[%c0, %c0_0, %c0_1] : memref<1x128x4xf32, #tpu.memory_space<vmem>>, vector<1x128x4xf32>
    %3 = vector.shape_cast %2 : vector<1x128x4xf32> to vector<128x4xf32>
    %4 = arith.mulf %3, %3 : vector<128x4xf32>
    %cst = arith.constant dense<0.000000e+00> : vector<128xf32>
    %5 = vector.multi_reduction <add>, %4, %cst [1] : vector<128x4xf32> to vector<128xf32>
    %6 = vector.shape_cast %5 : vector<128xf32> to vector<128x1xf32>
    %7 = tpu.transpose %3, [1, 0] : vector<128x4xf32> -> vector<4x128xf32>
    %cst_2 = arith.constant dense<0.000000e+00> : vector<128x128xf32>
    %8 = tpu.matmul %3, %7, %cst_2 {dimension_numbers = #tpu.dot_dimension_numbers<[1], [0], [0], [1], [0, 0, 1, 1], [], []>} : vector<128x4xf32>, vector<4x128xf32>, vector<128x128xf32> -> vector<128x128xf32>
    %cst_3 = arith.constant 2.000000e+00 : f32
    %9 = vector.broadcast %cst_3 : f32 to vector<128x128xf32>
    %10 = arith.mulf %9, %8 : vector<128x128xf32>
    %11 = vector.broadcast %6 : vector<128x1xf32> to vector<128x128xf32>
    %12 = arith.subf %11, %10 : vector<128x128xf32>
    %13 = tpu.transpose %6, [1, 0] : vector<128x1xf32> -> vector<1x128xf32>
    %14 = vector.broadcast %13 : vector<1x128xf32> to vector<128x128xf32>
    %15 = arith.addf %12, %14 : vector<128x128xf32>
    %cst_4 = arith.constant 0.000000e+00 : f32
    %16 = vector.broadcast %cst_4 : f32 to vector<128x128xf32>
    %17 = arith.subf %16, %15 : vector<128x128xf32>
    %18 = tpu.iota {dimensions = array<i32: 1>} : vector<128x128xi32>
    %19 = vector.broadcast %1 : i32 to vector<128x128xi32>
    %20 = arith.cmpi slt, %18, %19 : vector<128x128xi32>
    %cst_5 = arith.constant 0xFF800000 : f32
    %21 = vector.broadcast %cst_5 : f32 to vector<128x128xf32>
    %22 = arith.select %20, %17, %21 : vector<128x128xi1>, vector<128x128xf32>
    %c0_i32 = arith.constant 0 : i32
    %23 = vector.broadcast %c0_i32 : i32 to vector<128x128xi32>
    %c0_6 = arith.constant 0 : index
    %c0_7 = arith.constant 0 : index
    %c0_8 = arith.constant 0 : index
    %24 = vector.load %arg3[%c0_6, %c0_7, %c0_8] : memref<1x128x128xi32, #tpu.memory_space<vmem>>, vector<1x128x128xi32>
    %25 = vector.shape_cast %24 : vector<1x128x128xi32> to vector<128x128xi32>
    %26 = vector.shape_cast %23 : vector<128x128xi32> to vector<1x128x128xi32>
    tpu.vector_store %arg3[%c0_6, %c0_7, %c0_8], %26 {strides = array<i32>} : memref<1x128x128xi32, #tpu.memory_space<vmem>>, vector<1x128x128xi32>,
    %cst_9 = arith.constant dense<0xFF800000> : vector<128xf32>
    %27 = vector.multi_reduction <maximumf>, %22, %cst_9 [1] : vector<128x128xf32> to vector<128xf32>
    %28 = vector.shape_cast %27 : vector<128xf32> to vector<128x1xf32>
    %29 = vector.broadcast %28 : vector<128x1xf32> to vector<128x128xf32>
    %30 = arith.cmpf oeq, %22, %29 : vector<128x128xf32>
    %c128_i32 = arith.constant 128 : i32
    %31 = vector.broadcast %c128_i32 : i32 to vector<128x128xi32>
    %32 = arith.select %30, %18, %31 : vector<128x128xi1>, vector<128x128xi32>
    %cst_10 = arith.constant dense<2147483647> : vector<128xi32>
    %33 = vector.multi_reduction <minsi>, %32, %cst_10 [1] : vector<128x128xi32> to vector<128xi32>
    %34 = vector.shape_cast %33 : vector<128xi32> to vector<128x1xi32>
    %c0_11 = arith.constant 0 : index
    %c0_12 = arith.constant 0 : index
    %c0_13 = arith.constant 0 : index
    %35 = vector.load %arg3[%c0_11, %c0_12, %c0_13] : memref<1x128x128xi32, #tpu.memory_space<vmem>>, vector<1x128x1xi32>
    %36 = vector.shape_cast %35 : vector<1x128x1xi32> to vector<128x1xi32>
    %37 = vector.shape_cast %34 : vector<128x1xi32> to vector<1x128x1xi32>
    tpu.vector_store %arg3[%c0_11, %c0_12, %c0_13], %37 {strides = array<i32>} : memref<1x128x128xi32, #tpu.memory_space<vmem>>, vector<1x128x1xi32>,
    %38 = vector.broadcast %34 : vector<128x1xi32> to vector<128x128xi32>
    %39 = arith.cmpi eq, %18, %38 : vector<128x128xi32>
    %cst_14 = arith.constant 0xFF800000 : f32
    %40 = vector.broadcast %cst_14 : f32 to vector<128x128xf32>
    %41 = arith.select %39, %40, %22 : vector<128x128xi1>, vector<128x128xf32>
    %cst_15 = arith.constant dense<0xFF800000> : vector<128xf32>
    %42 = vector.multi_reduction <maximumf>, %41, %cst_15 [1] : vector<128x128xf32> to vector<128xf32>
    %43 = vector.shape_cast %42 : vector<128xf32> to vector<128x1xf32>
    %44 = vector.broadcast %43 : vector<128x1xf32> to vector<128x128xf32>
    %45 = arith.cmpf oeq, %41, %44 : vector<128x128xf32>
    %c128_i32_16 = arith.constant 128 : i32
    %46 = vector.broadcast %c128_i32_16 : i32 to vector<128x128xi32>
    %47 = arith.select %45, %18, %46 : vector<128x128xi1>, vector<128x128xi32>
    %cst_17 = arith.constant dense<2147483647> : vector<128xi32>
    %48 = vector.multi_reduction <minsi>, %47, %cst_17 [1] : vector<128x128xi32> to vector<128xi32>
    %49 = vector.shape_cast %48 : vector<128xi32> to vector<128x1xi32>
    %c0_18 = arith.constant 0 : index
    %c0_19 = arith.constant 0 : index
    %c1 = arith.constant 1 : index
    %50 = vector.load %arg3[%c0_18, %c0_19, %c1] : memref<1x128x128xi32, #tpu.memory_space<vmem>>, vector<1x128x1xi32>
    %51 = vector.shape_cast %50 : vector<1x128x1xi32> to vector<128x1xi32>
    %52 = vector.shape_cast %49 : vector<128x1xi32> to vector<1x128x1xi32>
    tpu.vector_store %arg3[%c0_18, %c0_19, %c1], %52 {strides = array<i32>} : memref<1x128x128xi32, #tpu.memory_space<vmem>>, vector<1x128x1xi32>,
    %53 = vector.broadcast %49 : vector<128x1xi32> to vector<128x128xi32>
    %54 = arith.cmpi eq, %18, %53 : vector<128x128xi32>
    %cst_20 = arith.constant 0xFF800000 : f32
    %55 = vector.broadcast %cst_20 : f32 to vector<128x128xf32>
    %56 = arith.select %54, %55, %41 : vector<128x128xi1>, vector<128x128xf32>
    %cst_21 = arith.constant dense<0xFF800000> : vector<128xf32>
    %57 = vector.multi_reduction <maximumf>, %56, %cst_21 [1] : vector<128x128xf32> to vector<128xf32>
    %58 = vector.shape_cast %57 : vector<128xf32> to vector<128x1xf32>
    %59 = vector.broadcast %58 : vector<128x1xf32> to vector<128x128xf32>
    %60 = arith.cmpf oeq, %56, %59 : vector<128x128xf32>
    %c128_i32_22 = arith.constant 128 : i32
    %61 = vector.broadcast %c128_i32_22 : i32 to vector<128x128xi32>
    %62 = arith.select %60, %18, %61 : vector<128x128xi1>, vector<128x128xi32>
    %cst_23 = arith.constant dense<2147483647> : vector<128xi32>
    %63 = vector.multi_reduction <minsi>, %62, %cst_23 [1] : vector<128x128xi32> to vector<128xi32>
    %64 = vector.shape_cast %63 : vector<128xi32> to vector<128x1xi32>
    %c0_24 = arith.constant 0 : index
    %c0_25 = arith.constant 0 : index
    %c2 = arith.constant 2 : index
    %65 = vector.load %arg3[%c0_24, %c0_25, %c2] : memref<1x128x128xi32, #tpu.memory_space<vmem>>, vector<1x128x1xi32>
    %66 = vector.shape_cast %65 : vector<1x128x1xi32> to vector<128x1xi32>
    %67 = vector.shape_cast %64 : vector<128x1xi32> to vector<1x128x1xi32>
    tpu.vector_store %arg3[%c0_24, %c0_25, %c2], %67 {strides = array<i32>} : memref<1x128x128xi32, #tpu.memory_space<vmem>>, vector<1x128x1xi32>,
    %68 = vector.broadcast %64 : vector<128x1xi32> to vector<128x128xi32>
    %69 = arith.cmpi eq, %18, %68 : vector<128x128xi32>
    %cst_26 = arith.constant 0xFF800000 : f32
    %70 = vector.broadcast %cst_26 : f32 to vector<128x128xf32>
    %71 = arith.select %69, %70, %56 : vector<128x128xi1>, vector<128x128xf32>
    %cst_27 = arith.constant dense<0xFF800000> : vector<128xf32>
    %72 = vector.multi_reduction <maximumf>, %71, %cst_27 [1] : vector<128x128xf32> to vector<128xf32>
    %73 = vector.shape_cast %72 : vector<128xf32> to vector<128x1xf32>
    %74 = vector.broadcast %73 : vector<128x1xf32> to vector<128x128xf32>
    %75 = arith.cmpf oeq, %71, %74 : vector<128x128xf32>
    %c128_i32_28 = arith.constant 128 : i32
    %76 = vector.broadcast %c128_i32_28 : i32 to vector<128x128xi32>
    %77 = arith.select %75, %18, %76 : vector<128x128xi1>, vector<128x128xi32>
    %cst_29 = arith.constant dense<2147483647> : vector<128xi32>
    %78 = vector.multi_reduction <minsi>, %77, %cst_29 [1] : vector<128x128xi32> to vector<128xi32>
    %79 = vector.shape_cast %78 : vector<128xi32> to vector<128x1xi32>
    %c0_30 = arith.constant 0 : index
    %c0_31 = arith.constant 0 : index
    %c3 = arith.constant 3 : index
    %80 = vector.load %arg3[%c0_30, %c0_31, %c3] : memref<1x128x128xi32, #tpu.memory_space<vmem>>, vector<1x128x1xi32>
    %81 = vector.shape_cast %80 : vector<1x128x1xi32> to vector<128x1xi32>
    %82 = vector.shape_cast %79 : vector<128x1xi32> to vector<1x128x1xi32>
    tpu.vector_store %arg3[%c0_30, %c0_31, %c3], %82 {strides = array<i32>} : memref<1x128x128xi32, #tpu.memory_space<vmem>>, vector<1x128x1xi32>,
    %83 = vector.broadcast %79 : vector<128x1xi32> to vector<128x128xi32>
    %84 = arith.cmpi eq, %18, %83 : vector<128x128xi32>
    %cst_32 = arith.constant 0xFF800000 : f32
    %85 = vector.broadcast %cst_32 : f32 to vector<128x128xf32>
    %86 = arith.select %84, %85, %71 : vector<128x128xi1>, vector<128x128xf32>
    %cst_33 = arith.constant dense<0xFF800000> : vector<128xf32>
    %87 = vector.multi_reduction <maximumf>, %86, %cst_33 [1] : vector<128x128xf32> to vector<128xf32>
    %88 = vector.shape_cast %87 : vector<128xf32> to vector<128x1xf32>
    %89 = vector.broadcast %88 : vector<128x1xf32> to vector<128x128xf32>
    %90 = arith.cmpf oeq, %86, %89 : vector<128x128xf32>
    %c128_i32_34 = arith.constant 128 : i32
    %91 = vector.broadcast %c128_i32_34 : i32 to vector<128x128xi32>
    %92 = arith.select %90, %18, %91 : vector<128x128xi1>, vector<128x128xi32>
    %cst_35 = arith.constant dense<2147483647> : vector<128xi32>
    %93 = vector.multi_reduction <minsi>, %92, %cst_35 [1] : vector<128x128xi32> to vector<128xi32>
    %94 = vector.shape_cast %93 : vector<128xi32> to vector<128x1xi32>
    %c0_36 = arith.constant 0 : index
    %c0_37 = arith.constant 0 : index
    %c4 = arith.constant 4 : index
    %95 = vector.load %arg3[%c0_36, %c0_37, %c4] : memref<1x128x128xi32, #tpu.memory_space<vmem>>, vector<1x128x1xi32>
    %96 = vector.shape_cast %95 : vector<1x128x1xi32> to vector<128x1xi32>
    %97 = vector.shape_cast %94 : vector<128x1xi32> to vector<1x128x1xi32>
    tpu.vector_store %arg3[%c0_36, %c0_37, %c4], %97 {strides = array<i32>} : memref<1x128x128xi32, #tpu.memory_space<vmem>>, vector<1x128x1xi32>,
    %98 = vector.broadcast %94 : vector<128x1xi32> to vector<128x128xi32>
    %99 = arith.cmpi eq, %18, %98 : vector<128x128xi32>
    %cst_38 = arith.constant 0xFF800000 : f32
    %100 = vector.broadcast %cst_38 : f32 to vector<128x128xf32>
    %101 = arith.select %99, %100, %86 : vector<128x128xi1>, vector<128x128xf32>
    %cst_39 = arith.constant dense<0xFF800000> : vector<128xf32>
    %102 = vector.multi_reduction <maximumf>, %101, %cst_39 [1] : vector<128x128xf32> to vector<128xf32>
    %103 = vector.shape_cast %102 : vector<128xf32> to vector<128x1xf32>
    %104 = vector.broadcast %103 : vector<128x1xf32> to vector<128x128xf32>
    %105 = arith.cmpf oeq, %101, %104 : vector<128x128xf32>
    %c128_i32_40 = arith.constant 128 : i32
    %106 = vector.broadcast %c128_i32_40 : i32 to vector<128x128xi32>
    %107 = arith.select %105, %18, %106 : vector<128x128xi1>, vector<128x128xi32>
    %cst_41 = arith.constant dense<2147483647> : vector<128xi32>
    %108 = vector.multi_reduction <minsi>, %107, %cst_41 [1] : vector<128x128xi32> to vector<128xi32>
    %109 = vector.shape_cast %108 : vector<128xi32> to vector<128x1xi32>
    %c0_42 = arith.constant 0 : index
    %c0_43 = arith.constant 0 : index
    %c5 = arith.constant 5 : index
    %110 = vector.load %arg3[%c0_42, %c0_43, %c5] : memref<1x128x128xi32, #tpu.memory_space<vmem>>, vector<1x128x1xi32>
    %111 = vector.shape_cast %110 : vector<1x128x1xi32> to vector<128x1xi32>
    %112 = vector.shape_cast %109 : vector<128x1xi32> to vector<1x128x1xi32>
    tpu.vector_store %arg3[%c0_42, %c0_43, %c5], %112 {strides = array<i32>} : memref<1x128x128xi32, #tpu.memory_space<vmem>>, vector<1x128x1xi32>,
    %113 = vector.broadcast %109 : vector<128x1xi32> to vector<128x128xi32>
    %114 = arith.cmpi eq, %18, %113 : vector<128x128xi32>
    %cst_44 = arith.constant 0xFF800000 : f32
    %115 = vector.broadcast %cst_44 : f32 to vector<128x128xf32>
    %116 = arith.select %114, %115, %101 : vector<128x128xi1>, vector<128x128xf32>
    %cst_45 = arith.constant dense<0xFF800000> : vector<128xf32>
    %117 = vector.multi_reduction <maximumf>, %116, %cst_45 [1] : vector<128x128xf32> to vector<128xf32>
    %118 = vector.shape_cast %117 : vector<128xf32> to vector<128x1xf32>
    %119 = vector.broadcast %118 : vector<128x1xf32> to vector<128x128xf32>
    %120 = arith.cmpf oeq, %116, %119 : vector<128x128xf32>
    %c128_i32_46 = arith.constant 128 : i32
    %121 = vector.broadcast %c128_i32_46 : i32 to vector<128x128xi32>
    %122 = arith.select %120, %18, %121 : vector<128x128xi1>, vector<128x128xi32>
    %cst_47 = arith.constant dense<2147483647> : vector<128xi32>
    %123 = vector.multi_reduction <minsi>, %122, %cst_47 [1] : vector<128x128xi32> to vector<128xi32>
    %124 = vector.shape_cast %123 : vector<128xi32> to vector<128x1xi32>
    %c0_48 = arith.constant 0 : index
    %c0_49 = arith.constant 0 : index
    %c6 = arith.constant 6 : index
    %125 = vector.load %arg3[%c0_48, %c0_49, %c6] : memref<1x128x128xi32, #tpu.memory_space<vmem>>, vector<1x128x1xi32>
    %126 = vector.shape_cast %125 : vector<1x128x1xi32> to vector<128x1xi32>
    %127 = vector.shape_cast %124 : vector<128x1xi32> to vector<1x128x1xi32>
    tpu.vector_store %arg3[%c0_48, %c0_49, %c6], %127 {strides = array<i32>} : memref<1x128x128xi32, #tpu.memory_space<vmem>>, vector<1x128x1xi32>,
    %128 = vector.broadcast %124 : vector<128x1xi32> to vector<128x128xi32>
    %129 = arith.cmpi eq, %18, %128 : vector<128x128xi32>
    %cst_50 = arith.constant 0xFF800000 : f32
    %130 = vector.broadcast %cst_50 : f32 to vector<128x128xf32>
    %131 = arith.select %129, %130, %116 : vector<128x128xi1>, vector<128x128xf32>
    %cst_51 = arith.constant dense<0xFF800000> : vector<128xf32>
    %132 = vector.multi_reduction <maximumf>, %131, %cst_51 [1] : vector<128x128xf32> to vector<128xf32>
    %133 = vector.shape_cast %132 : vector<128xf32> to vector<128x1xf32>
    %134 = vector.broadcast %133 : vector<128x1xf32> to vector<128x128xf32>
    %135 = arith.cmpf oeq, %131, %134 : vector<128x128xf32>
    %c128_i32_52 = arith.constant 128 : i32
    %136 = vector.broadcast %c128_i32_52 : i32 to vector<128x128xi32>
    %137 = arith.select %135, %18, %136 : vector<128x128xi1>, vector<128x128xi32>
    %cst_53 = arith.constant dense<2147483647> : vector<128xi32>
    %138 = vector.multi_reduction <minsi>, %137, %cst_53 [1] : vector<128x128xi32> to vector<128xi32>
    %139 = vector.shape_cast %138 : vector<128xi32> to vector<128x1xi32>
    %c0_54 = arith.constant 0 : index
    %c0_55 = arith.constant 0 : index
    %c7 = arith.constant 7 : index
    %140 = vector.load %arg3[%c0_54, %c0_55, %c7] : memref<1x128x128xi32, #tpu.memory_space<vmem>>, vector<1x128x1xi32>
    %141 = vector.shape_cast %140 : vector<1x128x1xi32> to vector<128x1xi32>
    %142 = vector.shape_cast %139 : vector<128x1xi32> to vector<1x128x1xi32>
    tpu.vector_store %arg3[%c0_54, %c0_55, %c7], %142 {strides = array<i32>} : memref<1x128x128xi32, #tpu.memory_space<vmem>>, vector<1x128x1xi32>,
    %143 = vector.broadcast %139 : vector<128x1xi32> to vector<128x128xi32>
    %144 = arith.cmpi eq, %18, %143 : vector<128x128xi32>
    %cst_56 = arith.constant 0xFF800000 : f32
    %145 = vector.broadcast %cst_56 : f32 to vector<128x128xf32>
    %146 = arith.select %144, %145, %131 : vector<128x128xi1>, vector<128x128xf32>
    %cst_57 = arith.constant dense<0xFF800000> : vector<128xf32>
    %147 = vector.multi_reduction <maximumf>, %146, %cst_57 [1] : vector<128x128xf32> to vector<128xf32>
    %148 = vector.shape_cast %147 : vector<128xf32> to vector<128x1xf32>
    %149 = vector.broadcast %148 : vector<128x1xf32> to vector<128x128xf32>
    %150 = arith.cmpf oeq, %146, %149 : vector<128x128xf32>
    %c128_i32_58 = arith.constant 128 : i32
    %151 = vector.broadcast %c128_i32_58 : i32 to vector<128x128xi32>
    %152 = arith.select %150, %18, %151 : vector<128x128xi1>, vector<128x128xi32>
    %cst_59 = arith.constant dense<2147483647> : vector<128xi32>
    %153 = vector.multi_reduction <minsi>, %152, %cst_59 [1] : vector<128x128xi32> to vector<128xi32>
    %154 = vector.shape_cast %153 : vector<128xi32> to vector<128x1xi32>
    %c0_60 = arith.constant 0 : index
    %c0_61 = arith.constant 0 : index
    %c8 = arith.constant 8 : index
    %155 = vector.load %arg3[%c0_60, %c0_61, %c8] : memref<1x128x128xi32, #tpu.memory_space<vmem>>, vector<1x128x1xi32>
    %156 = vector.shape_cast %155 : vector<1x128x1xi32> to vector<128x1xi32>
    %157 = vector.shape_cast %154 : vector<128x1xi32> to vector<1x128x1xi32>
    tpu.vector_store %arg3[%c0_60, %c0_61, %c8], %157 {strides = array<i32>} : memref<1x128x128xi32, #tpu.memory_space<vmem>>, vector<1x128x1xi32>,
    return
  }
  func.func @transform_0(%arg0: i32, %arg1: memref<2xi32, #tpu.memory_space<smem>>) -> (i32, i32, i32) {
    %c0_i32 = arith.constant 0 : i32
    %c0_i32_0 = arith.constant 0 : i32
    %c0_i32_1 = arith.constant 0 : i32
    return %arg0, %c0_i32, %c0_i32_0 : i32, i32, i32
  }
  func.func @transform_1(%arg0: i32, %arg1: memref<2xi32, #tpu.memory_space<smem>>) -> (i32, i32, i32) {
    %c0_i32 = arith.constant 0 : i32
    %c0_i32_0 = arith.constant 0 : i32
    %c0_i32_1 = arith.constant 0 : i32
    return %arg0, %c0_i32, %c0_i32_0 : i32, i32, i32
  }
}

</mosaic_0001>

<bundles_post_ra>
// kernel: _knn_batched.1
= control target key start
LH: loop header
LB: loop body
LE: loop exit
PB: predicated region body
PF: predicated region fallthrough
CT: control target
= control target key end

     0   :  { %s7395_s0 = inlined_call_operand.vmem [shape: s32[2], index: 0, kind: input, shape index: {}]   ;;  %s7396_s1 = inlined_call_operand.vmem [shape: f32[2,128,4], index: 1, kind: input, shape index: {}]   ;;  %s7397_s2 = inlined_call_operand.hbm [shape: s32[2,128,128], index: 2, kind: output, shape index: {}]  }
   0x1   :  { %s7_s11 = sshll.u32 %s7395_s0, 4  ;;  %s8_s11 = int_to_ptr.vmem [resolvable:$true] %s7_s11 }
   0x2   :  { %s3819_s12 = scalar_lea.vmem %s8_s11, 16  ;;  %p3824_p1 = scmp.lt.s32.totalorder %s8_s11, %s8_s11 }
   0x3   :  { %p3820_p0 = scmp.ne.s32.totalorder %s8_s11, %s3819_s12  ;;  %p3825_p2 = scmp.lt.s32.totalorder %s3819_s12, %s3819_s12 }
   0x5   :  { %p3826_p3 = por %p3825_p2, %p3824_p1 }
   0x7   :  { %p3827_p4 = pnand %p3826_p3, %p3820_p0 }
   0x9   :  { %3830 = shalt.err (!%p3827_p4)  }
   0xa   :  { %s3895_s13 = smov [#allocation3]  }
   0xb   :  { %10 = dma.vmem_to_smem %s8_s11, 16, %s3895_s13, [#allocation2] }
   0xc   :  { %3873 = dma.done.wait [#allocation2], 16 }
   0xd   :  { %3874 = vsyncadd [#allocation2], 4294967280 }
   0xe   :  { %12 = sfence }
   0xf   :  { %13 = vsyncpa [#allocation5], 0 }
  0x10   :  { %15 = vsyncpa [#allocation5 + $0x1], 0  ;;  %s3918_s14 = smov 0   ;;  %s3920_s15 = smov 0  }
  0x11   :  { %s3922_s0 = smov 0   ;;  %s3924_s16 = smov 0  }
  0x12 LB: > { %s3939_s17 = sadd.s32 4294967295, %s3893_s16   ;;  %s3610_s18 = sadd.s32 4294967294, %s3893_s16   ;;  %s3893_s16 = sphi %s3924_s16, %s7405_s16   ;;  %s3889_s0 = sphi %s3922_s0, %s7404_s0   ;;  %s3885_s15 = sphi %s3920_s15, %s7403_s15   ;;  %s3881_s14 = sphi %s3918_s14, %s7402_s14  }
  0x13   : > { %s3943_s19 = sadd.s32 1, %s3893_s16   ;;  %s54_s20 = sadd.s32 1, %s3889_s0 }
  0x14   : > { %s51_s21 = ssub.s32 %s3893_s16, %s3943_s19  ;;  %p64_p5 = scmp.ne.s32.totalorder %s3889_s0, %s3885_s15 }
  0x15   : > { %p52_p6 = scmp.eq.s32.totalorder %s51_s21, 0  ;;  %p65_p7 = scmp.eq.s32.totalorder %s3939_s17, 1 }
  0x16   : > { %p70_p8 = scmp.ne.s32.totalorder %s3885_s15, %s3881_s14  ;;  %p71_p9 = scmp.eq.s32.totalorder %s3610_s18, 1 }
  0x17   : > { %s3954_s22 = scalar_select %p52_p6, %s3889_s0, %s54_s20  }
  0x18   : > { %p3956_p10 = por %p65_p7, %p64_p5  ;;  %p3960_p11 = por %p71_p9, %p70_p8 }
  0x19   : > { %p3613_p12 = scmp.ge.s32.totalorder %s3893_s16, 1  ;;  %p97_p13 = scmp.lt.s32.totalorder %s3893_s16, 3 }
  0x1b   : > { %p98_p0 = pnand %p3613_p12, %p97_p13 }
  0x1c   : > { %p117_p1 = scmp.lt.s32.totalorder (!%p98_p0), %s3939_s17, 1  ;;  %s122_s30 = sld [smem:[#allocation3 + %s3939_s17]] (!%p98_p0) }
  0x1d   : > { %101 = sbr.rel (%p98_p0) target bundleno = 4236 (0x108c), region = 24  ;;  %s114_s3 = sand.u32 (!%p98_p0), 1, %s3885_s15  }
  0x1e   : > { %s3614_s4 = sshll.u32 (!%p98_p0), %s114_s3, 7  ;;  %s3655_s6 = sshll.u32 (!%p98_p0), %s3939_s17, 11 }
  0x1f   : > { %s4531_s5 = scalar_lea.vmem (!%p98_p0), [#allocation4], %s3614_s4  ;;  %s7347_s10 = scalar_lea.hbm (!%p98_p0), %s7397_s2, %s3655_s6 }
  0x20   : > { %s3548_s7 = sshll.u32 (!%p98_p0), %s4531_s5, 4  ;;  %s7355_s11 = scalar_lea.sflag (!%p98_p0), [#allocation5], %s114_s3  ;;  %s7349_s7 = int_to_ptr.vmem [resolvable:$true] %s3548_s7 }
  0x21   : > { %s3831_s12 = scalar_lea.vmem (!%p98_p0), %s7349_s7, 2048  ;;  %s3897_s13 = smov (!%p98_p0), [#allocation4]  }
  0x22   : > { %s118_s25 = scalar_select %p117_p1, %s3939_s17, 1  ;;  %vm155_vm0 = vcmask 31744  }
  0x23   : > { %p3832_p2 = scmp.ne.s32.totalorder %s7349_s7, %s3831_s12  ;;  %s3835_s17 = sshll.u32 %s3897_s13, 4  ;;  %s3836_s17 = int_to_ptr.vmem [resolvable:$false] %s3835_s17 }
  0x24   : > { %s3654_s26 = sshll.u32 %s118_s25, 7  ;;  %s3837_s18 = scalar_lea.vmem %s3836_s17, 4096 }
  0x25   : > { %s3971_s29 = scalar_lea.vmem %s7396_s1, %s3654_s26  ;;  %p3833_p3 = pnand %p3832_p2, %p3956_p10 }
  0x26   : > { %v3974_v0 = vld [vmem:[%s3971_s29 + $0x78] sm:$0xff]  ;;  %v3977_v1 = vld [vmem:[%s3971_s29] sm:$0xff]  ;;  %v3980_v2 = vld [vmem:[%s3971_s29 + $0x70] sm:$0xff]  ;;  %p3838_p5 = scmp.lt.s32.totalorder %s7349_s7, %s3836_s17  ;;  %p3839_p6 = scmp.lt.s32.totalorder %s3837_s18, %s3831_s12 }
  0x27   : > { %3688 = vmatprep.subr.msk.mxu0 %vm155_vm0, %v3974_v0  ;;  %3744 = vmatprep.subr.msk.mxu1 %vm155_vm0, %v3974_v0  ;;  %v139_v3 = vmul.f32 %v3977_v1, %v3977_v1  ;;  %v3989_v4 = vld [vmem:[%s3971_s29 + $0x8] sm:$0xff]  ;;  %v3992_v5 = vld [vmem:[%s3971_s29 + $0x10] sm:$0xff]  ;;  %v4003_v8 = vld [vmem:[%s3971_s29 + $0x18] sm:$0xff]  ;;  %v153_v43 = vmul.f32 %v3980_v2, %v3980_v2  ;;  %v154_v45 = vmul.f32 %v3974_v0, %v3974_v0  ;;  %p3834_p4 = pneg %p3833_p3 }
  0x28   : > { %3689 = vmatpush3.xpose.msk.msra.mxu0 %vm155_vm0, %v3974_v0  ;;  %3760 = vmatpush3.xpose.msk.msra.mxu1 %vm155_vm0, %v3974_v0  ;;  %v140_v6 = vmul.f32 %v3989_v4, %v3989_v4  ;;  %v141_v7 = vmul.f32 %v3992_v5, %v3992_v5  ;;  %v142_v10 = vmul.f32 %v4003_v8, %v4003_v8  ;;  %v4013_v11 = vld [vmem:[%s3971_s29 + $0x20] sm:$0xff]  ;;  %v4016_v12 = vld [vmem:[%s3971_s29 + $0x28] sm:$0xff]  ;;  %v4040_v20 = vld [vmem:[%s3971_s29 + $0x30] sm:$0xff]  ;;  %p3840_p7 = por %p3839_p6, %p3838_p5 }
  0x29   : > { %v156_v9 = vsel %vm155_vm0, %v139_v3, 0.0  ;;  %3690 = vmatprep.subr.msk.mxu0 %vm155_vm0, %v3980_v2  ;;  %3745 = vmatprep.subr.msk.mxu1 %vm155_vm0, %v3980_v2  ;;  %v4019_v13 = vld [vmem:[%s3971_s29 + $0x68] sm:$0xff]  ;;  %v4023_v15 = vld [vmem:[%s3971_s29 + $0x40] sm:$0xff]  ;;  %v143_v17 = vmul.f32 %v4013_v11, %v4013_v11  ;;  %v144_v19 = vmul.f32 %v4016_v12, %v4016_v12  ;;  %v4047_v21 = vld [vmem:[%s3971_s29 + $0x38] sm:$0xff]  ;;  %v145_v24 = vmul.f32 %v4040_v20, %v4040_v20 }
  0x2a   : > { %157 = vadd.xlane.f32.xlu0 %v156_v9  ;;  %v162_v14 = vsel %vm155_vm0, %v141_v7, 0.0  ;;  %3720 = vmatprep.mubr.msk.f32.mxu0 %vm155_vm0, %v3977_v1  ;;  %v159_v16 = vsel %vm155_vm0, %v140_v6, 0.0  ;;  %v165_v18 = vsel %vm155_vm0, %v142_v10, 0.0  ;;  %v4050_v22 = vld [vmem:[%s3971_s29 + $0x60] sm:$0xff]  ;;  %v146_v26 = vmul.f32 %v4047_v21, %v4047_v21  ;;  %v4067_v27 = vld [vmem:[%s3971_s29 + $0x58] sm:$0xff]  ;;  %v4070_v28 = vld [vmem:[%s3971_s29 + $0x48] sm:$0xff]  ;;  %p3841_p8 = pnand %p3840_p7, %p3834_p4 }
  0x2b   : > { %163 = vadd.xlane.f32.xlu1 %v162_v14  ;;  %3732 = vmatprep.mubr.msk.f32.mxu1 %vm155_vm0, %v4023_v15  ;;  %v168_v23 = vsel %vm155_vm0, %v143_v17, 0.0  ;;  %v171_v25 = vsel %vm155_vm0, %v144_v19, 0.0  ;;  %v174_v29 = vsel %vm155_vm0, %v145_v24, 0.0  ;;  %v147_v30 = vmul.f32 %v4023_v15, %v4023_v15  ;;  %v4087_v33 = vld [vmem:[%s3971_s29 + $0x50] sm:$0xff] }
  0x2c   : > { %3691 = vmatpush3.xpose.msk.msra.mxu0 %vm155_vm0, %v3980_v2  ;;  %3761 = vmatpush3.xpose.msk.msra.mxu1 %vm155_vm0, %v3980_v2  ;;  %v177_v31 = vsel %vm155_vm0, %v146_v26, 0.0  ;;  %v148_v32 = vmul.f32 %v4070_v28, %v4070_v28  ;;  %v149_v35 = vmul.f32 %v4087_v33, %v4087_v33  ;;  %v150_v37 = vmul.f32 %v4067_v27, %v4067_v27 }
  0x2d   : > { %3692 = vmatprep.subr.msk.mxu0 %vm155_vm0, %v4019_v13  ;;  %3746 = vmatprep.subr.msk.mxu1 %vm155_vm0, %v4019_v13  ;;  %v180_v34 = vsel %vm155_vm0, %v147_v30, 0.0  ;;  %v151_v39 = vmul.f32 %v4050_v22, %v4050_v22  ;;  %v152_v41 = vmul.f32 %v4019_v13, %v4019_v13  ;;  %v198_v46 = vsel %vm155_vm0, %v153_v43, 0.0 }
  0x2e   : > { %160 = vadd.xlane.f32.xlu0 %v159_v16  ;;  %v183_v36 = vsel %vm155_vm0, %v148_v32, 0.0  ;;  %v186_v38 = vsel %vm155_vm0, %v149_v35, 0.0  ;;  %v189_v40 = vsel %vm155_vm0, %v150_v37, 0.0  ;;  %v201_v47 = vsel %vm155_vm0, %v154_v45, 0.0 }
  0x2f   : > { %166 = vadd.xlane.f32.xlu1 %v165_v18  ;;  %v192_v42 = vsel %vm155_vm0, %v151_v39, 0.0  ;;  %v195_v44 = vsel %vm155_vm0, %v152_v41, 0.0  ;;  %v499_v16 = vstv %s122_s30 }
  0x30   : > { %3693 = vmatpush3.xpose.msk.msra.mxu0 %vm155_vm0, %v4019_v13  ;;  %3762 = vmatpush3.xpose.msk.msra.mxu1 %vm155_vm0, %v4019_v13 }
  0x31   : > { %3694 = vmatprep.subr.msk.mxu0 %vm155_vm0, %v4050_v22  ;;  %3747 = vmatprep.subr.msk.mxu1 %vm155_vm0, %v4050_v22 }
  0x32   : > { %169 = vadd.xlane.f32.xlu0 %v168_v23 }
  0x33   : > { %172 = vadd.xlane.f32.xlu1 %v171_v25 }
  0x34   : > { %3695 = vmatpush3.xpose.msk.msra.mxu0 %vm155_vm0, %v4050_v22  ;;  %3763 = vmatpush3.xpose.msk.msra.mxu1 %vm155_vm0, %v4050_v22 }
  0x35   : > { %3696 = vmatprep.subr.msk.mxu0 %vm155_vm0, %v4067_v27  ;;  %3748 = vmatprep.subr.msk.mxu1 %vm155_vm0, %v4067_v27 }
  0x36   : > { %175 = vadd.xlane.f32.xlu0 %v174_v29 }
  0x37   : > { %178 = vadd.xlane.f32.xlu1 %v177_v31 }
  0x38   : > { %3697 = vmatpush3.xpose.msk.msra.mxu0 %vm155_vm0, %v4067_v27  ;;  %3764 = vmatpush3.xpose.msk.msra.mxu1 %vm155_vm0, %v4067_v27 }
  0x39   : > { %3698 = vmatprep.subr.msk.mxu0 %vm155_vm0, %v4087_v33  ;;  %3749 = vmatprep.subr.msk.mxu1 %vm155_vm0, %v4087_v33 }
  0x3a   : > { %181 = vadd.xlane.f32.xlu0 %v180_v34 }
  0x3b   : > { %184 = vadd.xlane.f32.xlu1 %v183_v36 }
  0x3c   : > { %3699 = vmatpush3.xpose.msk.msra.mxu0 %vm155_vm0, %v4087_v33  ;;  %3765 = vmatpush3.xpose.msk.msra.mxu1 %vm155_vm0, %v4087_v33 }
  0x3d   : > { %3700 = vmatprep.subr.msk.mxu0 %vm155_vm0, %v4070_v28  ;;  %3750 = vmatprep.subr.msk.mxu1 %vm155_vm0, %v4070_v28 }
  0x3e   : > { %187 = vadd.xlane.f32.xlu0 %v186_v38 }
  0x3f   : > { %190 = vadd.xlane.f32.xlu1 %v189_v40 }
  0x40   : > { %3701 = vmatpush3.xpose.msk.msra.mxu0 %vm155_vm0, %v4070_v28  ;;  %3766 = vmatpush3.xpose.msk.msra.mxu1 %vm155_vm0, %v4070_v28 }
  0x41   : > { %3702 = vmatprep.subr.msk.mxu0 %vm155_vm0, %v4023_v15  ;;  %3751 = vmatprep.subr.msk.mxu1 %vm155_vm0, %v4023_v15 }
  0x42   : > { %193 = vadd.xlane.f32.xlu0 %v192_v42 }
  0x43   : > { %196 = vadd.xlane.f32.xlu1 %v195_v44 }
  0x44   : > { %3703 = vmatpush3.xpose.msk.msra.mxu0 %vm155_vm0, %v4023_v15  ;;  %3767 = vmatpush3.xpose.msk.msra.mxu1 %vm155_vm0, %v4023_v15 }
  0x45   : > { %3704 = vmatprep.subr.msk.mxu0 %vm155_vm0, %v4047_v21  ;;  %3752 = vmatprep.subr.msk.mxu1 %vm155_vm0, %v4047_v21 }
  0x46   : > { %199 = vadd.xlane.f32.xlu0 %v198_v46 }
  0x47   : > { %202 = vadd.xlane.f32.xlu1 %v201_v47 }
  0x48   : > { %3705 = vmatpush3.xpose.msk.msra.mxu0 %vm155_vm0, %v4047_v21  ;;  %3768 = vmatpush3.xpose.msk.msra.mxu1 %vm155_vm0, %v4047_v21 }
  0x49   : > { %3706 = vmatprep.subr.msk.mxu0 %vm155_vm0, %v4040_v20  ;;  %3753 = vmatprep.subr.msk.mxu1 %vm155_vm0, %v4040_v20 }
  0x4c   : > { %3707 = vmatpush3.xpose.msk.msra.mxu0 %vm155_vm0, %v4040_v20  ;;  %3769 = vmatpush3.xpose.msk.msra.mxu1 %vm155_vm0, %v4040_v20 }
  0x4d   : > { %3708 = vmatprep.subr.msk.mxu0 %vm155_vm0, %v4016_v12  ;;  %3754 = vmatprep.subr.msk.mxu1 %vm155_vm0, %v4016_v12 }
  0x50   : > { %3709 = vmatpush3.xpose.msk.msra.mxu0 %vm155_vm0, %v4016_v12  ;;  %3770 = vmatpush3.xpose.msk.msra.mxu1 %vm155_vm0, %v4016_v12 }
  0x51   : > { %3710 = vmatprep.subr.msk.mxu0 %vm155_vm0, %v4013_v11  ;;  %3755 = vmatprep.subr.msk.mxu1 %vm155_vm0, %v4013_v11 }
  0x54   : > { %3711 = vmatpush3.xpose.msk.msra.mxu0 %vm155_vm0, %v4013_v11  ;;  %3771 = vmatpush3.xpose.msk.msra.mxu1 %vm155_vm0, %v4013_v11 }
  0x55   : > { %3712 = vmatprep.subr.msk.mxu0 %vm155_vm0, %v4003_v8  ;;  %3756 = vmatprep.subr.msk.mxu1 %vm155_vm0, %v4003_v8 }
  0x58   : > { %3713 = vmatpush3.xpose.msk.msra.mxu0 %vm155_vm0, %v4003_v8  ;;  %3772 = vmatpush3.xpose.msk.msra.mxu1 %vm155_vm0, %v4003_v8 }
  0x59   : > { %3714 = vmatprep.subr.msk.mxu0 %vm155_vm0, %v3992_v5  ;;  %3757 = vmatprep.subr.msk.mxu1 %vm155_vm0, %v3992_v5 }
  0x5c   : > { %3715 = vmatpush3.xpose.msk.msra.mxu0 %vm155_vm0, %v3992_v5  ;;  %3773 = vmatpush3.xpose.msk.msra.mxu1 %vm155_vm0, %v3992_v5 }
  0x5d   : > { %3716 = vmatprep.subr.msk.mxu0 %vm155_vm0, %v3989_v4  ;;  %3758 = vmatprep.subr.msk.mxu1 %vm155_vm0, %v3989_v4 }
  0x60   : > { %3717 = vmatpush3.xpose.msk.msra.mxu0 %vm155_vm0, %v3989_v4  ;;  %3774 = vmatpush3.xpose.msk.msra.mxu1 %vm155_vm0, %v3989_v4 }
  0x61   : > { %3718 = vmatprep.subr.msk.mxu0 %vm155_vm0, %v3977_v1  ;;  %3759 = vmatprep.subr.msk.mxu1 %vm155_vm0, %v3977_v1 }
  0x64   : > { %3719 = vmatpush3.xpose.msk.msra.mxu0 %vm155_vm0, %v3977_v1  ;;  %3775 = vmatpush3.xpose.msk.msra.mxu1 %vm155_vm0, %v3977_v1 }
  0x67   : > { %3721 = vmatmul.mubr.msk.f32.vlgmr.msra.gmra.mxu0 %vm155_vm0, %v3989_v4  ;;  %3733 = vmatmul.mubr.msk.f32.vlgmr.msra.gmra.mxu1 %vm155_vm0, %v4070_v28 }
  0x68   : > { %3723 = vmatprep.mubr.msk.f32.mxu0 %vm155_vm0, %v3992_v5  ;;  %3735 = vmatprep.mubr.msk.f32.mxu1 %vm155_vm0, %v4087_v33 }
  0x6b   : > { %3724 = vmatmul.mubr.msk.f32.gmra.mxu0 %vm155_vm0, %v4003_v8  ;;  %3736 = vmatmul.mubr.msk.f32.gmra.mxu1 %vm155_vm0, %v4067_v27 }
  0x6c   : > { %3726 = vmatprep.mubr.msk.f32.mxu0 %vm155_vm0, %v4013_v11  ;;  %3738 = vmatprep.mubr.msk.f32.mxu1 %vm155_vm0, %v4050_v22 }
  0x6f   : > { %3727 = vmatmul.mubr.msk.f32.gmra.mxu0 %vm155_vm0, %v4016_v12  ;;  %3739 = vmatmul.mubr.msk.f32.gmra.mxu1 %vm155_vm0, %v4019_v13 }
  0x70   : > { %3729 = vmatprep.mubr.msk.f32.mxu0 %vm155_vm0, %v4040_v20  ;;  %3741 = vmatprep.mubr.msk.f32.mxu1 %vm155_vm0, %v3980_v2 }
  0x73   : > { %3730 = vmatmul.mubr.msk.f32.gmra.mxu0 %vm155_vm0, %v4047_v21  ;;  %3742 = vmatmul.mubr.msk.f32.gmra.mxu1 %vm155_vm0, %v3974_v0  ;;  %v461_v0 = vlaneseq }
  0x75   : > { %v462_v3 = vshrl.u32 %v461_v0, 7  ;;  %v4263_v11 = vand.u32 127, %v461_v0 }
  0x77   : > { %v463_v8 = vsub.s32 0, %v462_v3  ;;  %vm4270_vm1 = vcmp.lt.s32.totalorder %v4263_v11, %v499_v16 }
  0xb3   : > { %v158_v48 = vpop.xlane.xlu0 %157 }
  0xb4   : > { %429 = vxpose.xlu0.b32.start [1/16] (narrow) %v158_v48, 8  ;;  %v164_v50 = vpop.xlane.xlu1 %163 }
  0xb7   : > { %v161_v49 = vpop.xlane.xlu0 %160 }
  0xb8   : > { %430 = vxpose.xlu0.b32.cont [2/16] (narrow) %v161_v49, 8  ;;  %v167_v51 = vpop.xlane.xlu1 %166 }
  0xbb   : > { %v4229_v52 = vpop.xlane.xlu0 %169 }
  0xbc   : > { %431 = vxpose.xlu0.b32.cont [3/16] (narrow) %v164_v50, 8  ;;  %v4232_v53 = vpop.xlane.xlu1 %172 }
  0xbf   : > { %v4235_v54 = vpop.xlane.xlu0 %175 }
  0xc0   : > { %432 = vxpose.xlu0.b32.cont [4/16] (narrow) %v167_v51, 8  ;;  %v4238_v55 = vpop.xlane.xlu1 %178 }
  0xc3   : > { %v182_v56 = vpop.xlane.xlu0 %181 }
  0xc4   : > { %433 = vxpose.xlu0.b32.cont [5/16] (narrow) %v4229_v52, 8  ;;  %v4241_v57 = vpop.xlane.xlu1 %184 }
  0xc7   : > { %v4244_v58 = vpop.xlane.xlu0 %187 }
  0xc8   : > { %434 = vxpose.xlu0.b32.cont [6/16] (narrow) %v4232_v53, 8  ;;  %v4247_v59 = vpop.xlane.xlu1 %190 }
  0xcb   : > { %v4250_v60 = vpop.xlane.xlu0 %193 }
  0xcc   : > { %435 = vxpose.xlu0.b32.cont [7/16] (narrow) %v4235_v54, 8  ;;  %v4253_v61 = vpop.xlane.xlu1 %196 }
  0xcf   : > { %v4256_v62 = vpop.xlane.xlu0 %199 }
  0xd0   : > { %436 = vxpose.xlu0.b32.cont [8/16] (narrow) %v4238_v55, 8  ;;  %v4259_v63 = vpop.xlane.xlu1 %202 }
  0xd4   : > { %437 = vxpose.xlu0.b32.cont [9/16] (narrow) %v182_v56, 8 }
  0xd8   : > { %438 = vxpose.xlu0.b32.cont [10/16] (narrow) %v4241_v57, 8 }
  0xdc   : > { %439 = vxpose.xlu0.b32.cont [11/16] (narrow) %v4244_v58, 8 }
  0xe0   : > { %440 = vxpose.xlu0.b32.cont [12/16] (narrow) %v4247_v59, 8 }
  0xe4   : > { %441 = vxpose.xlu0.b32.cont [13/16] (narrow) %v4250_v60, 8 }
  0xe8   : > { %442 = vxpose.xlu0.b32.cont [14/16] (narrow) %v4253_v61, 8 }
  0xec   : > { %443 = vxpose.xlu0.b32.cont [15/16] (narrow) %v4256_v62, 8 }
  0xf0   : > { %444 = vxpose.xlu0.b32.end [16/16] (narrow) %v4259_v63, 8 }
 0x127   : > { %v3722_v1 = vpop.f32.mrf.mxu0  ;;  %v3734_v10 = vpop.f32.mrf.mxu1 }
 0x128   : > { %v398_v5 = vmul.f32 2.0, %v3722_v1  ;;  %v406_v34 = vmul.f32 2.0, %v3734_v10 }
 0x129   : > { %v318_v2 = vpop.f32.mrf.mxu0  ;;  %v358_v20 = vpop.f32.mrf.mxu1 }
 0x12a   : > { %v397_v6 = vmul.f32 2.0, %v318_v2  ;;  %v414_v13 = vsub.f32 %v161_v49, %v398_v5  ;;  %v405_v28 = vmul.f32 2.0, %v358_v20  ;;  %v422_v40 = vsub.f32 %v4241_v57, %v406_v34 }
 0x12b   : > { %v3725_v4 = vpop.f32.mrf.mxu0  ;;  %v3737_v27 = vpop.f32.mrf.mxu1 }
 0x12c   : > { %v413_v14 = vsub.f32 %v158_v48, %v397_v6  ;;  %v400_v22 = vmul.f32 2.0, %v3725_v4  ;;  %v421_v35 = vsub.f32 %v182_v56, %v405_v28  ;;  %v408_v46 = vmul.f32 2.0, %v3737_v27 }
 0x12d   : > { %v328_v7 = vpop.f32.mrf.mxu0  ;;  %v368_v33 = vpop.f32.mrf.mxu1 }
 0x12e   : > { %v399_v9 = vmul.f32 2.0, %v328_v7  ;;  %v416_v29 = vsub.f32 %v167_v51, %v400_v22  ;;  %v407_v36 = vmul.f32 2.0, %v368_v33  ;;  %v424_v56 = vsub.f32 %v4247_v59, %v408_v46 }
 0x12f   : > { %v3728_v45 = vpop.f32.mrf.mxu0  ;;  %v3740_v48 = vpop.f32.mrf.mxu1 }
 0x130   : > { %v445_v12 = vpop.trf.xlu0  ;;  %v415_v17 = vsub.f32 %v164_v50, %v399_v9  ;;  %v423_v41 = vsub.f32 %v4244_v58, %v407_v36  ;;  %v402_v47 = vmul.f32 2.0, %v3728_v45  ;;  %v410_v57 = vmul.f32 2.0, %v3740_v48 }
 0x131   : > { %v4265_v15 = vrot.slane %v445_v12, %v463_v8  ;;  %v338_v3 = vpop.f32.mrf.mxu0  ;;  %v378_v6 = vpop.f32.mrf.mxu1 }
 0x132   : > { %v418_v58 = vsub.f32 %v4232_v53, %v402_v47  ;;  %v426_v4 = vsub.f32 %v4253_v61, %v410_v57  ;;  %v401_v5 = vmul.f32 2.0, %v338_v3  ;;  %v409_v8 = vmul.f32 2.0, %v378_v6 }
 0x133   : > { %v465_v18 = vadd.f32 %v4265_v15, %v413_v14  ;;  %v466_v19 = vadd.f32 %v4265_v15, %v414_v13  ;;  %v467_v26 = vadd.f32 %v4265_v15, %v415_v17  ;;  %v468_v32 = vadd.f32 %v4265_v15, %v416_v29  ;;  %v3731_v10 = vpop.f32.mrf.mxu0  ;;  %v3743_v17 = vpop.f32.mrf.mxu1 }
 0x134   : > { %v473_v39 = vadd.f32 %v4265_v15, %v421_v35  ;;  %v474_v44 = vadd.f32 %v4265_v15, %v422_v40  ;;  %v475_v51 = vadd.f32 %v4265_v15, %v423_v41  ;;  %v476_v2 = vadd.f32 %v4265_v15, %v424_v56 }
 0x135   : > { %v481_v23 = vsub.f32 0.0, %v465_v18  ;;  %v482_v25 = vsub.f32 0.0, %v466_v19  ;;  %v483_v31 = vsub.f32 0.0, %v467_v26  ;;  %v484_v38 = vsub.f32 0.0, %v468_v32  ;;  %v348_v20 = vpop.f32.mrf.mxu0 }
 0x136   : > { %v489_v43 = vsub.f32 0.0, %v473_v39  ;;  %v490_v50 = vsub.f32 0.0, %v474_v44  ;;  %v491_v1 = vsub.f32 0.0, %v475_v51  ;;  %v492_v7 = vsub.f32 0.0, %v476_v2 }
 0x137   : > { %v4276_v24 = vsel %vm4270_vm1, %v481_v23, -inf  ;;  %v4282_v30 = vsel %vm4270_vm1, %v482_v25, -inf  ;;  %v4288_v37 = vsel %vm4270_vm1, %v483_v31, -inf  ;;  %v4296_v42 = vsel %vm4270_vm1, %v484_v38, -inf  ;;  %v388_v25 = vpop.f32.mrf.mxu1 }
 0x138   : > { %533 = vmax.xlane.f32.xlu1 %v4276_v24  ;;  %v4302_v49 = vsel %vm4270_vm1, %v489_v43, -inf  ;;  %v4310_v0 = vsel %vm4270_vm1, %v490_v50, -inf  ;;  %v4317_v59 = vsel %vm4270_vm1, %v491_v1, -inf  ;;  %v470_v53 = vadd.f32 %v4265_v15, %v418_v58 }
 0x139   : > { %v417_v9 = vsub.f32 %v4229_v52, %v401_v5  ;;  %v4324_v12 = vsel %vm4270_vm1, %v492_v7, -inf  ;;  %v478_v13 = vadd.f32 %v4265_v15, %v426_v4  ;;  %v404_v14 = vmul.f32 2.0, %v3731_v10 }
 0x13a   : > { %v486_v61 = vsub.f32 0.0, %v470_v53  ;;  %v425_v16 = vsub.f32 %v4250_v60, %v409_v8  ;;  %v403_v23 = vmul.f32 2.0, %v348_v20  ;;  %v411_v28 = vmul.f32 2.0, %v388_v25 }
 0x13b   : > { %v494_v19 = vsub.f32 0.0, %v478_v13  ;;  %v469_v52 = vadd.f32 %v4265_v15, %v417_v9  ;;  %v420_v22 = vsub.f32 %v4238_v55, %v404_v14  ;;  %v412_v33 = vmul.f32 2.0, %v3743_v17 }
 0x13c   : > { %535 = vmax.xlane.f32.xlu1 %v4282_v30  ;;  %v4331_v18 = vsel %vm4270_vm1, %v486_v61, -inf  ;;  %v477_v27 = vadd.f32 %v4265_v15, %v425_v16  ;;  %v419_v29 = vsub.f32 %v4235_v54, %v403_v23  ;;  %v427_v35 = vsub.f32 %v4256_v62, %v411_v28 }
 0x13d   : > { %v4338_v26 = vsel %vm4270_vm1, %v494_v19, -inf  ;;  %v485_v60 = vsub.f32 0.0, %v469_v52  ;;  %v472_v55 = vadd.f32 %v4265_v15, %v420_v22  ;;  %v428_v54 = vsub.f32 %v4259_v63, %v412_v33 }
 0x13e   : > { %v493_v32 = vsub.f32 0.0, %v477_v27  ;;  %v471_v34 = vadd.f32 %v4265_v15, %v419_v29  ;;  %v479_v39 = vadd.f32 %v4265_v15, %v427_v35 }
 0x13f   : > { %v4345_v31 = vsel %vm4270_vm1, %v485_v60, -inf  ;;  %v488_v38 = vsub.f32 0.0, %v472_v55  ;;  %v480_v44 = vadd.f32 %v4265_v15, %v428_v54 }
 0x140   : > { %537 = vmax.xlane.f32.xlu1 %v4288_v37  ;;  %v4353_v36 = vsel %vm4270_vm1, %v493_v32, -inf  ;;  %v487_v41 = vsub.f32 0.0, %v471_v34  ;;  %v495_v43 = vsub.f32 0.0, %v479_v39 }
 0x141   : > { %v4360_v40 = vsel %vm4270_vm1, %v488_v38, -inf  ;;  %v496_v45 = vsub.f32 0.0, %v480_v44 }
 0x142   : > { %v4365_v62 = vsel %vm4270_vm1, %v487_v41, -inf  ;;  %v4371_v63 = vsel %vm4270_vm1, %v495_v43, -inf }
 0x143   : > { %v4376_v46 = vsel %vm4270_vm1, %v496_v45, -inf }
 0x144   : > { %539 = vmax.xlane.f32.xlu1 %v4296_v42 }
 0x148   : > { %549 = vmax.xlane.f32.xlu1 %v4302_v49 }
 0x14c   : > { %551 = vmax.xlane.f32.xlu1 %v4310_v0 }
 0x150   : > { %553 = vmax.xlane.f32.xlu1 %v4317_v59 }
 0x154   : > { %555 = vmax.xlane.f32.xlu1 %v4324_v12 }
 0x158   : > { %543 = vmax.xlane.f32.xlu1 %v4331_v18 }
 0x15c   : > { %559 = vmax.xlane.f32.xlu1 %v4338_v26 }
 0x160   : > { %541 = vmax.xlane.f32.xlu1 %v4345_v31 }
 0x164   : > { %557 = vmax.xlane.f32.xlu1 %v4353_v36 }
 0x168   : > { %547 = vmax.xlane.f32.xlu1 %v4360_v40 }
 0x16c   : > { %545 = vmax.xlane.f32.xlu1 %v4365_v62 }
 0x170   : > { %561 = vmax.xlane.f32.xlu1 %v4371_v63 }
 0x174   : > { %563 = vmax.xlane.f32.xlu1 %v4376_v46 }
 0x1c1   : > { %v534_v47 = vpop.xlane.xlu1 %533 }
 0x1c2   : > { %vm565_vm2 = vcmp.eq.f32.partialorder %v4276_v24, %v534_v47 }
 0x1c3   : > { %v4381_v15 = vsel %vm565_vm2, %v4263_v11, 128 }
 0x1c4   : > { %v598_v48 = vshra.s32 %v4381_v15, 16 }
 0x1c5   : > { %v536_v50 = vpop.xlane.xlu1 %535 }
 0x1c6   : > { %vm566_vm3 = vcmp.eq.f32.partialorder %v4282_v30, %v536_v50  ;;  %v4385_v51 = vcvt.s32.f32 %v598_v48 }
 0x1c7   : > { %v4388_v56 = vsel %vm566_vm3, %v4263_v11, 128 }
 0x1c8   : > { %601 = vmin.xlane.f32.xlu1 %v4385_v51  ;;  %v612_v21 = vshra.s32 %v4388_v56, 16 }
 0x1c9   : > { %v538_v57 = vpop.xlane.xlu1 %537 }
 0x1ca   : > { %vm567_vm4 = vcmp.eq.f32.partialorder %v4288_v37, %v538_v57  ;;  %v4393_v58 = vcvt.s32.f32 %v612_v21 }
 0x1cb   : > { %v4396_v1 = vsel %vm567_vm4, %v4263_v11, 128 }
 0x1cc   : > { %615 = vmin.xlane.f32.xlu1 %v4393_v58  ;;  %v626_v2 = vshra.s32 %v4396_v1, 16 }
 0x1cd   : > { %v540_v3 = vpop.xlane.xlu1 %539 }
 0x1ce   : > { %vm568_vm5 = vcmp.eq.f32.partialorder %v4296_v42, %v540_v3  ;;  %v4401_v4 = vcvt.s32.f32 %v626_v2 }
 0x1cf   : > { %v4404_v5 = vsel %vm568_vm5, %v4263_v11, 128 }
 0x1d0   : > { %629 = vmin.xlane.f32.xlu1 %v4401_v4  ;;  %v640_v6 = vshra.s32 %v4404_v5, 16 }
 0x1d1   : > { %v550_v7 = vpop.xlane.xlu1 %549 }
 0x1d2   : > { %vm573_vm6 = vcmp.eq.f32.partialorder %v4302_v49, %v550_v7  ;;  %v4409_v53 = vcvt.s32.f32 %v640_v6 }
 0x1d3   : > { %v4412_v8 = vsel %vm573_vm6, %v4263_v11, 128 }
 0x1d4   : > { %643 = vmin.xlane.f32.xlu1 %v4409_v53  ;;  %v710_v9 = vshra.s32 %v4412_v8, 16 }
 0x1d5   : > { %v552_v10 = vpop.xlane.xlu1 %551 }
 0x1d6   : > { %vm574_vm7 = vcmp.eq.f32.partialorder %v4310_v0, %v552_v10  ;;  %v4417_v61 = vcvt.s32.f32 %v710_v9 }
 0x1d7   : > { %v4420_v13 = vsel %vm574_vm7, %v4263_v11, 128 }
 0x1d8   : > { %713 = vmin.xlane.f32.xlu1 %v4417_v61  ;;  %v724_v14 = vshra.s32 %v4420_v13, 16 }
 0x1d9   : > { %v554_v16 = vpop.xlane.xlu1 %553 }
 0x1da   : > { %vm575_vm8 = vcmp.eq.f32.partialorder %v4317_v59, %v554_v16  ;;  %v4425_v17 = vcvt.s32.f32 %v724_v14 }
 0x1db   : > { %v4428_v19 = vsel %vm575_vm8, %v4263_v11, 128 }
 0x1dc   : > { %727 = vmin.xlane.f32.xlu1 %v4425_v17  ;;  %v738_v52 = vshra.s32 %v4428_v19, 16 }
 0x1dd   : > { %v556_v20 = vpop.xlane.xlu1 %555 }
 0x1de   : > { %vm576_vm9 = vcmp.eq.f32.partialorder %v4324_v12, %v556_v20  ;;  %v4433_v22 = vcvt.s32.f32 %v738_v52 }
 0x1df   : > { %v4436_v23 = vsel %vm576_vm9, %v4263_v11, 128 }
 0x1e0   : > { %741 = vmin.xlane.f32.xlu1 %v4433_v22  ;;  %v752_v25 = vshra.s32 %v4436_v23, 16 }
 0x1e1   : > { %v544_v60 = vpop.xlane.xlu1 %543 }
 0x1e2   : > { %vm570_vm10 = vcmp.eq.f32.partialorder %v4331_v18, %v544_v60  ;;  %v4441_v27 = vcvt.s32.f32 %v752_v25 }
 0x1e3   : > { %v4444_v28 = vsel %vm570_vm10, %v4263_v11, 128 }
 0x1e4   : > { %755 = vmin.xlane.f32.xlu0 %v4441_v27  ;;  %v668_v29 = vshra.s32 %v4444_v28, 16 }
 0x1e5   : > { %v560_v32 = vpop.xlane.xlu1 %559 }
 0x1e6   : > { %vm578_vm11 = vcmp.eq.f32.partialorder %v4338_v26, %v560_v32  ;;  %v4449_v55 = vcvt.s32.f32 %v668_v29  ;;  %v597_v29 = vand.u32 65535, %v4381_v15 }
 0x1e7   : > { %v4452_v33 = vsel %vm578_vm11, %v4263_v11, 128 }
 0x1e8   : > { %671 = vmin.xlane.f32.xlu1 %v4449_v55  ;;  %v780_v34 = vshra.s32 %v4452_v33, 16 }
 0x1e9   : > { %v542_v35 = vpop.xlane.xlu1 %541 }
 0x1ea   : > { %vm569_vm12 = vcmp.eq.f32.partialorder %v4345_v31, %v542_v35  ;;  %v4457_v38 = vcvt.s32.f32 %v780_v34  ;;  %v599_v34 = vcvt.s32.f32 %v597_v29  ;;  %v611_v35 = vand.u32 65535, %v4388_v56 }
 0x1eb   : > { %v4460_v54 = vsel %vm569_vm12, %v4263_v11, 128  ;;  %v737_v29 = vand.u32 65535, %v4428_v19  ;;  %v667_v19 = vand.u32 65535, %v4444_v28 }
 0x1ec   : > { %783 = vmin.xlane.f32.xlu1 %v4457_v38  ;;  %v654_v39 = vshra.s32 %v4460_v54, 16  ;;  %v653_v28 = vand.u32 65535, %v4460_v54 }
 0x1ed   : > { %v558_v41 = vpop.xlane.xlu1 %557 }
 0x1ee   : > { %vm577_vm13 = vcmp.eq.f32.partialorder %v4353_v36, %v558_v41  ;;  %v4465_v43 = vcvt.s32.f32 %v654_v39 }
 0x1ef   : > { %v4468_v44 = vsel %vm577_vm13, %v4263_v11, 128 }
 0x1f0   : > { %657 = vmin.xlane.f32.xlu1 %v4465_v43  ;;  %v766_v45 = vshra.s32 %v4468_v44, 16 }
 0x1f1   : > { %v548_v47 = vpop.xlane.xlu1 %547 }
 0x1f2   : > { %vm572_vm14 = vcmp.eq.f32.partialorder %v4360_v40, %v548_v47  ;;  %v4473_v48 = vcvt.s32.f32 %v766_v45  ;;  %v613_v45 = vcvt.s32.f32 %v611_v35  ;;  %v625_v47 = vand.u32 65535, %v4396_v1 }
 0x1f3   : > { %v4476_v50 = vsel %vm572_vm14, %v4263_v11, 128  ;;  %v709_v1 = vand.u32 65535, %v4412_v8  ;;  %v723_v8 = vand.u32 65535, %v4420_v13  ;;  %v751_v13 = vand.u32 65535, %v4436_v23 }
 0x1f4   : > { %769 = vmin.xlane.f32.xlu1 %v4473_v48  ;;  %v696_v21 = vshra.s32 %v4476_v50, 16  ;;  %v627_v56 = vcvt.s32.f32 %v625_v47  ;;  %v779_v23 = vand.u32 65535, %v4452_v33  ;;  %v765_v33 = vand.u32 65535, %v4468_v44 }
 0x1f5   : > { %v546_v57 = vpop.xlane.xlu1 %545  ;;  %v753_v47 = vcvt.s32.f32 %v751_v13  ;;  %v695_v54 = vand.u32 65535, %v4476_v50 }
 0x1f6   : > { %vm571_vm15 = vcmp.eq.f32.partialorder %v4365_v62, %v546_v57  ;;  %v4481_v2 = vcvt.s32.f32 %v696_v21  ;;  %v639_v57 = vand.u32 65535, %v4404_v5 }
 0x1f7   : > { %v4484_v3 = vsel %vm571_vm15, %v4263_v11, 128 }
 0x1f8   : > { %699 = vmin.xlane.f32.xlu1 %v4481_v2  ;;  %v682_v6 = vshra.s32 %v4484_v3, 16  ;;  %v681_v44 = vand.u32 65535, %v4484_v3 }
 0x1f9   : > { %v562_v7 = vpop.xlane.xlu1 %561 }
 0x1fa   : > { %vm579_vm0 = vcmp.eq.f32.partialorder %v4371_v63, %v562_v7  ;;  %v4489_v9 = vcvt.s32.f32 %v682_v6  ;;  %v641_v7 = vcvt.s32.f32 %v639_v57  ;;  %v683_v50 = vcvt.s32.f32 %v681_v44 }
 0x1fb   : > { %v4492_v10 = vsel %vm579_vm0, %v4263_v11, 128 }
 0x1fc   : > { %685 = vmin.xlane.f32.xlu1 %v4489_v9  ;;  %v794_v14 = vshra.s32 %v4492_v10, 16 }
 0x1fd   : > { %v564_v16 = vpop.xlane.xlu1 %563 }
 0x1fe   : > { %vm580_vm1 = vcmp.eq.f32.partialorder %v4376_v46, %v564_v16  ;;  %v4497_v52 = vcvt.s32.f32 %v794_v14 }
 0x1ff   : > { %v4500_v20 = vsel %vm580_vm1, %v4263_v11, 128 }
 0x200   : > { %797 = vmin.xlane.f32.xlu1 %v4497_v52  ;;  %v808_v25 = vshra.s32 %v4500_v20, 16  ;;  %v807_v3 = vand.u32 65535, %v4500_v20 }
 0x202   : > { %v4504_v60 = vcvt.s32.f32 %v808_v25  ;;  %v725_v25 = vcvt.s32.f32 %v723_v8  ;;  %v697_v8 = vcvt.s32.f32 %v695_v54 }
 0x204   : > { %811 = vmin.xlane.f32.xlu1 %v4504_v60 }
 0x251   : > { %v4508_v32 = vpop.xlane.xlu1 %601 }
 0x252   : > { %vm603_vm2 = vcmp.eq.f32.partialorder %v4385_v51, %v4508_v32  ;;  %v608_v13 = vcvt.f32.s32 %v4508_v32 }
 0x253   : > { %v604_v39 = vsel %vm603_vm2, %v599_v34, inf  ;;  %vm821_vm2 = vcmask 7168  }
 0x254   : > { %605 = vmin.xlane.f32.xlu1 %v604_v39  ;;  %v739_v39 = vcvt.s32.f32 %v737_v29 }
 0x255   : > { %v4513_v41 = vpop.xlane.xlu1 %615 }
 0x256   : > { %vm617_vm3 = vcmp.eq.f32.partialorder %v4393_v58, %v4513_v41  ;;  %v622_v20 = vcvt.f32.s32 %v4513_v41 }
 0x257   : > { %v618_v15 = vsel %vm617_vm3, %v613_v45, inf }
 0x258   : > { %619 = vmin.xlane.f32.xlu1 %v618_v15 }
 0x259   : > { %v4518_v21 = vpop.xlane.xlu1 %629 }
 0x25a   : > { %vm631_vm4 = vcmp.eq.f32.partialorder %v4401_v4, %v4518_v21  ;;  %v3896_v4 = vmov 0  }
 0x25b   : > { %v632_v51 = vsel %vm631_vm4, %v627_v56, inf  ;;  %517 = vst [vmem:[%s4531_s5] sm:$0xff] %v3896_v4  ;;  %518 = vst [vmem:[%s4531_s5 + $0x8] sm:$0xff] %v3896_v4  ;;  %v669_v56 = vcvt.s32.f32 %v667_v19 }
 0x25c   : > { %633 = vmin.xlane.f32.xlu1 %v632_v51  ;;  %519 = vst [vmem:[%s4531_s5 + $0x10] sm:$0xff] %v3896_v4  ;;  %520 = vst [vmem:[%s4531_s5 + $0x18] sm:$0xff] %v3896_v4  ;;  %v781_v51 = vcvt.s32.f32 %v779_v23  ;;  %v636_v23 = vcvt.f32.s32 %v4518_v21 }
 0x25d   : > { %v4523_v6 = vpop.xlane.xlu1 %643  ;;  %521 = vst [vmem:[%s4531_s5 + $0x20] sm:$0xff] %v3896_v4  ;;  %522 = vst [vmem:[%s4531_s5 + $0x28] sm:$0xff] %v3896_v4 }
 0x25e   : > { %vm645_vm5 = vcmp.eq.f32.partialorder %v4409_v53, %v4523_v6  ;;  %523 = vst [vmem:[%s4531_s5 + $0x30] sm:$0xff] %v3896_v4  ;;  %524 = vst [vmem:[%s4531_s5 + $0x38] sm:$0xff] %v3896_v4  ;;  %v711_v53 = vcvt.s32.f32 %v709_v1  ;;  %v655_v1 = vcvt.s32.f32 %v653_v28  ;;  %v650_v28 = vcvt.f32.s32 %v4523_v6 }
 0x25f   : > { %v646_v58 = vsel %vm645_vm5, %v641_v7, inf  ;;  %525 = vst [vmem:[%s4531_s5 + $0x40] sm:$0xff] %v3896_v4  ;;  %526 = vst [vmem:[%s4531_s5 + $0x48] sm:$0xff] %v3896_v4 }
 0x260   : > { %647 = vmin.xlane.f32.xlu1 %v646_v58  ;;  %527 = vst [vmem:[%s4531_s5 + $0x50] sm:$0xff] %v3896_v4  ;;  %528 = vst [vmem:[%s4531_s5 + $0x58] sm:$0xff] %v3896_v4 }
 0x261   : > { %529 = vst [vmem:[%s4531_s5 + $0x60] sm:$0xff] %v3896_v4  ;;  %530 = vst [vmem:[%s4531_s5 + $0x68] sm:$0xff] %v3896_v4  ;;  %v4549_v5 = vpop.xlane.xlu1 %713 }
 0x262   : > { %531 = vst [vmem:[%s4531_s5 + $0x70] sm:$0xff] %v3896_v4  ;;  %532 = vst [vmem:[%s4531_s5 + $0x78] sm:$0xff] %v3896_v4  ;;  %vm715_vm6 = vcmp.eq.f32.partialorder %v4417_v61, %v4549_v5  ;;  %v767_v4 = vcvt.s32.f32 %v765_v33  ;;  %v651_v33 = vshll.u32 %v650_v28, 16 }
 0x263   : > { %v716_v14 = vsel %vm715_vm6, %v711_v53, inf }
 0x264   : > { %717 = vmin.xlane.f32.xlu1 %v716_v14  ;;  %v793_v14 = vand.u32 65535, %v4492_v10 }
 0x265   : > { %v4554_v16 = vpop.xlane.xlu1 %727 }
 0x266   : > { %vm729_vm7 = vcmp.eq.f32.partialorder %v4425_v17, %v4554_v16 }
 0x267   : > { %v730_v34 = vsel %vm729_vm7, %v725_v25, inf }
 0x268   : > { %731 = vmin.xlane.f32.xlu0 %v730_v34  ;;  %v795_v34 = vcvt.s32.f32 %v793_v14 }
 0x269   : > { %v4559_v35 = vpop.xlane.xlu1 %741 }
 0x26a   : > { %vm743_vm8 = vcmp.eq.f32.partialorder %v4433_v22, %v4559_v35 }
 0x26b   : > { %v744_v61 = vsel %vm743_vm8, %v739_v39, inf  ;;  %v809_v39 = vcvt.s32.f32 %v807_v3 }
 0x26c   : > { %745 = vmin.xlane.f32.xlu1 %v744_v61 }
 0x26d   : > { %v4564_v45 = vpop.xlane.xlu0 %755 }
 0x26e   : > { %vm757_vm9 = vcmp.eq.f32.partialorder %v4441_v27, %v4564_v45 }
 0x26f   : > { %v758_v17 = vsel %vm757_vm9, %v753_v47, inf  ;;  %v609_v47 = vshll.u32 %v608_v13, 16 }
 0x270   : > { %759 = vmin.xlane.f32.xlu0 %v758_v17 }
 0x271   : > { %v4569_v15 = vpop.xlane.xlu1 %671 }
 0x272   : > { %vm673_vm10 = vcmp.eq.f32.partialorder %v4449_v55, %v4569_v15 }
 0x273   : > { %v674_v22 = vsel %vm673_vm10, %v669_v56, inf  ;;  %v623_v56 = vshll.u32 %v622_v20, 16 }
 0x274   : > { %675 = vmin.xlane.f32.xlu1 %v674_v22 }
 0x275   : > { %v4574_v57 = vpop.xlane.xlu1 %783 }
 0x276   : > { %vm785_vm11 = vcmp.eq.f32.partialorder %v4457_v38, %v4574_v57 }
 0x277   : > { %v786_v27 = vsel %vm785_vm11, %v781_v51, inf  ;;  %v637_v51 = vshll.u32 %v636_v23, 16 }
 0x278   : > { %787 = vmin.xlane.f32.xlu0 %v786_v27 }
 0x279   : > { %v4579_v7 = vpop.xlane.xlu1 %657 }
 0x27a   : > { %vm659_vm12 = vcmp.eq.f32.partialorder %v4465_v43, %v4579_v7 }
 0x27b   : > { %v660_v55 = vsel %vm659_vm12, %v655_v1, inf }
 0x27c   : > { %661 = vmin.xlane.f32.xlu1 %v660_v55  ;;  %v720_v55 = vcvt.f32.s32 %v4549_v5 }
 0x27d   : > { %v4584_v58 = vpop.xlane.xlu1 %769 }
 0x27e   : > { %vm771_vm13 = vcmp.eq.f32.partialorder %v4473_v48, %v4584_v58  ;;  %v776_v28 = vcvt.f32.s32 %v4584_v58 }
 0x27f   : > { %v772_v38 = vsel %vm771_vm13, %v767_v4, inf }
 0x280   : > { %773 = vmin.xlane.f32.xlu1 %v772_v38  ;;  %v721_v38 = vshll.u32 %v720_v55, 16 }
 0x281   : > { %v4589_v53 = vpop.xlane.xlu1 %699 }
 0x282   : > { %vm701_vm14 = vcmp.eq.f32.partialorder %v4481_v2, %v4589_v53 }
 0x283   : > { %v702_v43 = vsel %vm701_vm14, %v697_v8, inf  ;;  %v734_v8 = vcvt.f32.s32 %v4554_v16 }
 0x284   : > { %703 = vmin.xlane.f32.xlu0 %v702_v43 }
 0x285   : > { %v4595_v25 = vpop.xlane.xlu1 %685  ;;  %v735_v14 = vshll.u32 %v734_v8, 16 }
 0x286   : > { %vm687_vm15 = vcmp.eq.f32.partialorder %v4489_v9, %v4595_v25 }
 0x287   : > { %v688_v48 = vsel %vm687_vm15, %v683_v50, inf  ;;  %v748_v50 = vcvt.f32.s32 %v4559_v35 }
 0x288   : > { %689 = vmin.xlane.f32.xlu1 %v688_v48 }
 0x289   : > { %v4599_v29 = vpop.xlane.xlu1 %797  ;;  %v749_v3 = vshll.u32 %v748_v50, 16 }
 0x28a   : > { %vm799_vm0 = vcmp.eq.f32.partialorder %v4497_v52, %v4599_v29 }
 0x28b   : > { %v800_v2 = vsel %vm799_vm0, %v795_v34, inf }
 0x28c   : > { %801 = vmin.xlane.f32.xlu1 %v800_v2  ;;  %v762_v2 = vcvt.f32.s32 %v4564_v45 }
 0x28d   : > { %v4604_v10 = vpop.xlane.xlu1 %811 }
 0x28e   : > { %vm813_vm1 = vcmp.eq.f32.partialorder %v4504_v60, %v4604_v10  ;;  %v763_v13 = vshll.u32 %v762_v2, 16 }
 0x28f   : > { %v814_v9 = vsel %vm813_vm1, %v809_v39, inf }
 0x290   : > { %815 = vmin.xlane.f32.xlu0 %v814_v9 }
 0x2dd   : > { %v606_v61 = vpop.xlane.xlu1 %605 }
 0x2de   : > { %v607_v19 = vcvt.f32.s32 %v606_v61  ;;  %v678_v61 = vcvt.f32.s32 %v4569_v15 }
 0x2e0   : > { %v610_v52 = vadd.s32 %v609_v47, %v607_v19  ;;  %v679_v19 = vshll.u32 %v678_v61, 16 }
 0x2e1   : > { %v620_v17 = vpop.xlane.xlu1 %619 }
 0x2e2   : > { %822 = vst.msk [vmem:[%s4531_s5] sm:$0xff] %vm821_vm2, %v610_v52  ;;  %v621_v22 = vcvt.f32.s32 %v620_v17  ;;  %vm838_vm3 = vcmp.eq.s32.totalorder %v4263_v11, %v610_v52  ;;  %v790_v52 = vcvt.f32.s32 %v4574_v57 }
 0x2e3   : > { %v4615_v60 = vsel %vm838_vm3, -inf, %v4276_v24 }
 0x2e4   : > { %v624_v32 = vadd.s32 %v623_v56, %v621_v22  ;;  %870 = vmax.xlane.f32.xlu1 %v4615_v60  ;;  %v791_v23 = vshll.u32 %v790_v52, 16  ;;  %v664_v22 = vcvt.f32.s32 %v4579_v7 }
 0x2e5   : > { %v634_v41 = vpop.xlane.xlu1 %633 }
 0x2e6   : > { %823 = vst.msk [vmem:[%s4531_s5 + $0x8] sm:$0xff] %vm821_vm2, %v624_v32  ;;  %v635_v27 = vcvt.f32.s32 %v634_v41  ;;  %vm839_vm4 = vcmp.eq.s32.totalorder %v4263_v11, %v624_v32 }
 0x2e7   : > { %v4623_v21 = vsel %vm839_vm4, -inf, %v4282_v30 }
 0x2e8   : > { %v638_v1 = vadd.s32 %v637_v51, %v635_v27  ;;  %872 = vmax.xlane.f32.xlu0 %v4623_v21  ;;  %v665_v51 = vshll.u32 %v664_v22, 16 }
 0x2e9   : > { %v648_v24 = vpop.xlane.xlu1 %647 }
 0x2ea   : > { %824 = vst.msk [vmem:[%s4531_s5 + $0x10] sm:$0xff] %vm821_vm2, %v638_v1  ;;  %v649_v4 = vcvt.f32.s32 %v648_v24  ;;  %vm840_vm5 = vcmp.eq.s32.totalorder %v4263_v11, %v638_v1  ;;  %v777_v24 = vshll.u32 %v776_v28, 16 }
 0x2eb   : > { %v4631_v6 = vsel %vm840_vm5, -inf, %v4288_v37 }
 0x2ec   : > { %v652_v54 = vadd.s32 %v651_v33, %v649_v4  ;;  %874 = vmax.xlane.f32.xlu1 %v4631_v6  ;;  %v706_v33 = vcvt.f32.s32 %v4589_v53 }
 0x2ed   : > { %v718_v30 = vpop.xlane.xlu1 %717 }
 0x2ee   : > { %825 = vst.msk [vmem:[%s4531_s5 + $0x18] sm:$0xff] %vm821_vm2, %v652_v54  ;;  %v719_v44 = vcvt.f32.s32 %v718_v30  ;;  %vm841_vm6 = vcmp.eq.s32.totalorder %v4263_v11, %v652_v54  ;;  %v707_v54 = vshll.u32 %v706_v33, 16  ;;  %v692_v30 = vcvt.f32.s32 %v4595_v25 }
 0x2ef   : > { %v4639_v5 = vsel %vm841_vm6, -inf, %v4296_v42 }
 0x2f0   : > { %v722_v43 = vadd.s32 %v721_v38, %v719_v44  ;;  %876 = vmax.xlane.f32.xlu0 %v4639_v5  ;;  %v693_v44 = vshll.u32 %v692_v30, 16 }
 0x2f1   : > { %v732_v37 = vpop.xlane.xlu0 %731 }
 0x2f2   : > { %830 = vst.msk [vmem:[%s4531_s5 + $0x40] sm:$0xff] %vm821_vm2, %v722_v43  ;;  %v733_v48 = vcvt.f32.s32 %v732_v37  ;;  %vm846_vm7 = vcmp.eq.s32.totalorder %v4263_v11, %v722_v43  ;;  %v804_v43 = vcvt.f32.s32 %v4599_v29 }
 0x2f3   : > { %v4647_v16 = vsel %vm846_vm7, -inf, %v4302_v49 }
 0x2f4   : > { %v736_v34 = vadd.s32 %v735_v14, %v733_v48  ;;  %886 = vmax.xlane.f32.xlu1 %v4647_v16  ;;  %v805_v50 = vshll.u32 %v804_v43, 16  ;;  %v818_v48 = vcvt.f32.s32 %v4604_v10 }
 0x2f5   : > { %v746_v42 = vpop.xlane.xlu1 %745 }
 0x2f6   : > { %831 = vst.msk [vmem:[%s4531_s5 + $0x48] sm:$0xff] %vm821_vm2, %v736_v34  ;;  %v747_v39 = vcvt.f32.s32 %v746_v42  ;;  %vm847_vm8 = vcmp.eq.s32.totalorder %v4263_v11, %v736_v34 }
 0x2f7   : > { %v4655_v35 = vsel %vm847_vm8, -inf, %v4310_v0 }
 0x2f8   : > { %v750_v9 = vadd.s32 %v749_v3, %v747_v39  ;;  %888 = vmax.xlane.f32.xlu0 %v4655_v35  ;;  %v819_v3 = vshll.u32 %v818_v48, 16 }
 0x2f9   : > { %v760_v49 = vpop.xlane.xlu0 %759 }
 0x2fa   : > { %832 = vst.msk [vmem:[%s4531_s5 + $0x50] sm:$0xff] %vm821_vm2, %v750_v9  ;;  %v761_v47 = vcvt.f32.s32 %v760_v49  ;;  %vm848_vm9 = vcmp.eq.s32.totalorder %v4263_v11, %v750_v9 }
 0x2fb   : > { %v4663_v45 = vsel %vm848_vm9, -inf, %v4317_v59 }
 0x2fc   : > { %v764_v20 = vadd.s32 %v763_v13, %v761_v47  ;;  %890 = vmax.xlane.f32.xlu1 %v4663_v45 }
 0x2fd   : > { %v676_v0 = vpop.xlane.xlu1 %675 }
 0x2fe   : > { %833 = vst.msk [vmem:[%s4531_s5 + $0x58] sm:$0xff] %vm821_vm2, %v764_v20  ;;  %v677_v17 = vcvt.f32.s32 %v676_v0  ;;  %vm849_vm10 = vcmp.eq.s32.totalorder %v4263_v11, %v764_v20 }
 0x2ff   : > { %v4671_v15 = vsel %vm849_vm10, -inf, %v4324_v12 }
 0x300   : > { %v680_v56 = vadd.s32 %v679_v19, %v677_v17  ;;  %892 = vmax.xlane.f32.xlu0 %v4671_v15 }
 0x301   : > { %v788_v59 = vpop.xlane.xlu0 %787 }
 0x302   : > { %827 = vst.msk [vmem:[%s4531_s5 + $0x28] sm:$0xff] %vm821_vm2, %v680_v56  ;;  %v789_v32 = vcvt.f32.s32 %v788_v59  ;;  %vm843_vm11 = vcmp.eq.s32.totalorder %v4263_v11, %v680_v56 }
 0x303   : > { %v4679_v57 = vsel %vm843_vm11, -inf, %v4331_v18 }
 0x304   : > { %v792_v41 = vadd.s32 %v791_v23, %v789_v32  ;;  %880 = vmax.xlane.f32.xlu0 %v4679_v57 }
 0x305   : > { %v662_v12 = vpop.xlane.xlu1 %661 }
 0x306   : > { %835 = vst.msk [vmem:[%s4531_s5 + $0x68] sm:$0xff] %vm821_vm2, %v792_v41  ;;  %v663_v27 = vcvt.f32.s32 %v662_v12  ;;  %vm851_vm12 = vcmp.eq.s32.totalorder %v4263_v11, %v792_v41 }
 0x307   : > { %v4687_v7 = vsel %vm851_vm12, -inf, %v4338_v26 }
 0x308   : > { %v666_v1 = vadd.s32 %v665_v51, %v663_v27  ;;  %896 = vmax.xlane.f32.xlu0 %v4687_v7 }
 0x309   : > { %v774_v18 = vpop.xlane.xlu1 %773 }
 0x30a   : > { %826 = vst.msk [vmem:[%s4531_s5 + $0x20] sm:$0xff] %vm821_vm2, %v666_v1  ;;  %v775_v55 = vcvt.f32.s32 %v774_v18  ;;  %vm842_vm13 = vcmp.eq.s32.totalorder %v4263_v11, %v666_v1 }
 0x30b   : > { %v4695_v58 = vsel %vm842_vm13, -inf, %v4345_v31 }
 0x30c   : > { %v778_v4 = vadd.s32 %v777_v24, %v775_v55  ;;  %878 = vmax.xlane.f32.xlu1 %v4695_v58 }
 0x30d   : > { %v704_v26 = vpop.xlane.xlu0 %703 }
 0x30e   : > { %834 = vst.msk [vmem:[%s4531_s5 + $0x60] sm:$0xff] %vm821_vm2, %v778_v4  ;;  %v705_v38 = vcvt.f32.s32 %v704_v26  ;;  %vm850_vm14 = vcmp.eq.s32.totalorder %v4263_v11, %v778_v4 }
 0x30f   : > { %v4703_v53 = vsel %vm850_vm14, -inf, %v4353_v36 }
 0x310   : > { %v708_v8 = vadd.s32 %v707_v54, %v705_v38  ;;  %894 = vmax.xlane.f32.xlu1 %v4703_v53 }
 0x311   : > { %v690_v31 = vpop.xlane.xlu1 %689 }
 0x312   : > { %829 = vst.msk [vmem:[%s4531_s5 + $0x38] sm:$0xff] %vm821_vm2, %v708_v8  ;;  %v691_v37 = vcvt.f32.s32 %v690_v31  ;;  %vm845_vm15 = vcmp.eq.s32.totalorder %v4263_v11, %v708_v8 }
 0x313   : > { %v4711_v25 = vsel %vm845_vm15, -inf, %v4360_v40 }
 0x314   : > { %v694_v14 = vadd.s32 %v693_v44, %v691_v37  ;;  %884 = vmax.xlane.f32.xlu0 %v4711_v25 }
 0x315   : > { %v802_v36 = vpop.xlane.xlu1 %801 }
 0x316   : > { %828 = vst.msk [vmem:[%s4531_s5 + $0x30] sm:$0xff] %vm821_vm2, %v694_v14  ;;  %v803_v29 = vcvt.f32.s32 %v802_v36  ;;  %vm844_vm0 = vcmp.eq.s32.totalorder %v4263_v11, %v694_v14 }
 0x317   : > { %v4719_v34 = vsel %vm844_vm0, -inf, %v4365_v62 }
 0x318   : > { %v806_v42 = vadd.s32 %v805_v50, %v803_v29  ;;  %882 = vmax.xlane.f32.xlu1 %v4719_v34 }
 0x319   : > { %v816_v40 = vpop.xlane.xlu0 %815 }
 0x31a   : > { %836 = vst.msk [vmem:[%s4531_s5 + $0x70] sm:$0xff] %vm821_vm2, %v806_v42  ;;  %v817_v2 = vcvt.f32.s32 %v816_v40  ;;  %vm852_vm1 = vcmp.eq.s32.totalorder %v4263_v11, %v806_v42 }
 0x31b   : > { %v4726_v10 = vsel %vm852_vm1, -inf, %v4371_v63 }
 0x31c   : > { %v820_v39 = vadd.s32 %v819_v3, %v817_v2  ;;  %898 = vmax.xlane.f32.xlu1 %v4726_v10 }
 0x31e   : > { %837 = vst.msk [vmem:[%s4531_s5 + $0x78] sm:$0xff] %vm821_vm2, %v820_v39  ;;  %vm853_vm3 = vcmp.eq.s32.totalorder %v4263_v11, %v820_v39 }
 0x31f   : > { %v4733_v62 = vsel %vm853_vm3, -inf, %v4376_v46 }
 0x320   : > { %900 = vmax.xlane.f32.xlu0 %v4733_v62 }
 0x36d   : > { %v871_v9 = vpop.xlane.xlu1 %870 }
 0x36e   : > { %vm902_vm4 = vcmp.eq.f32.partialorder %v4615_v60, %v871_v9 }
 0x36f   : > { %v4738_v49 = vsel %vm902_vm4, %v4263_v11, 128 }
 0x370   : > { %v935_v63 = vshra.s32 %v4738_v49, 16 }
 0x371   : > { %v873_v13 = vpop.xlane.xlu0 %872 }
 0x372   : > { %vm903_vm5 = vcmp.eq.f32.partialorder %v4623_v21, %v873_v13  ;;  %v4742_v61 = vcvt.s32.f32 %v935_v63 }
 0x373   : > { %v4745_v47 = vsel %vm903_vm5, %v4263_v11, 128 }
 0x374   : > { %938 = vmin.xlane.f32.xlu1 %v4742_v61  ;;  %v949_v46 = vshra.s32 %v4745_v47, 16 }
 0x375   : > { %v875_v20 = vpop.xlane.xlu1 %874 }
 0x376   : > { %vm904_vm2 = vcmp.eq.f32.partialorder %v4631_v6, %v875_v20  ;;  %v4750_v0 = vcvt.s32.f32 %v949_v46 }
 0x377   : > { %v4753_v19 = vsel %vm904_vm2, %v4263_v11, 128 }
 0x378   : > { %v963_v52 = vshra.s32 %v4753_v19, 16  ;;  %952 = vmin.xlane.f32.xlu0 %v4750_v0 }
 0x379   : > { %v877_v17 = vpop.xlane.xlu0 %876 }
 0x37a   : > { %vm905_vm6 = vcmp.eq.f32.partialorder %v4639_v5, %v877_v17  ;;  %v4758_v56 = vcvt.s32.f32 %v963_v52 }
 0x37b   : > { %v4761_v59 = vsel %vm905_vm6, %v4263_v11, 128 }
 0x37c   : > { %966 = vmin.xlane.f32.xlu1 %v4758_v56  ;;  %v977_v23 = vshra.s32 %v4761_v59, 16 }
 0x37d   : > { %v887_v22 = vpop.xlane.xlu1 %886 }
 0x37e   : > { %vm910_vm7 = vcmp.eq.f32.partialorder %v4647_v16, %v887_v22  ;;  %v4766_v32 = vcvt.s32.f32 %v977_v23 }
 0x37f   : > { %v4769_v41 = vsel %vm910_vm7, %v4263_v11, 128 }
 0x380   : > { %v1047_v12 = vshra.s32 %v4769_v41, 16  ;;  %980 = vmin.xlane.f32.xlu0 %v4766_v32 }
 0x381   : > { %v889_v51 = vpop.xlane.xlu0 %888 }
 0x382   : > { %vm911_vm8 = vcmp.eq.f32.partialorder %v4655_v35, %v889_v51  ;;  %v4774_v28 = vcvt.s32.f32 %v1047_v12 }
 0x383   : > { %v4777_v27 = vsel %vm911_vm8, %v4263_v11, 128 }
 0x384   : > { %1050 = vmin.xlane.f32.xlu1 %v4774_v28  ;;  %v1061_v1 = vshra.s32 %v4777_v27, 16 }
 0x385   : > { %v891_v18 = vpop.xlane.xlu1 %890 }
 0x386   : > { %vm912_vm9 = vcmp.eq.f32.partialorder %v4663_v45, %v891_v18  ;;  %v4782_v24 = vcvt.s32.f32 %v1061_v1 }
 0x387   : > { %v4785_v33 = vsel %vm912_vm9, %v4263_v11, 128 }
 0x388   : > { %v1075_v55 = vshra.s32 %v4785_v33, 16  ;;  %1064 = vmin.xlane.f32.xlu0 %v4782_v24 }
 0x389   : > { %v893_v4 = vpop.xlane.xlu0 %892 }
 0x38a   : > { %vm913_vm10 = vcmp.eq.f32.partialorder %v4671_v15, %v893_v4  ;;  %v4790_v26 = vcvt.s32.f32 %v1075_v55 }
 0x38b   : > { %v4793_v54 = vsel %vm913_vm10, %v4263_v11, 128 }
 0x38c   : > { %1078 = vmin.xlane.f32.xlu1 %v4790_v26  ;;  %v1089_v30 = vshra.s32 %v4793_v54, 16 }
 0x38d   : > { %v881_v38 = vpop.xlane.xlu0 %880 }
 0x38e   : > { %vm907_vm11 = vcmp.eq.f32.partialorder %v4679_v57, %v881_v38  ;;  %v4798_v8 = vcvt.s32.f32 %v1089_v30 }
 0x38f   : > { %v4801_v31 = vsel %vm907_vm11, %v4263_v11, 128 }
 0x390   : > { %1092 = vmin.xlane.f32.xlu0 %v4798_v8  ;;  %v1005_v44 = vshra.s32 %v4801_v31, 16 }
 0x391   : > { %v897_v43 = vpop.xlane.xlu0 %896 }
 0x392   : > { %vm915_vm12 = vcmp.eq.f32.partialorder %v4687_v7, %v897_v43  ;;  %v4806_v37 = vcvt.s32.f32 %v1005_v44  ;;  %v934_v44 = vand.u32 65535, %v4738_v49 }
 0x393   : > { %v4809_v14 = vsel %vm915_vm12, %v4263_v11, 128 }
 0x394   : > { %1008 = vmin.xlane.f32.xlu0 %v4806_v37  ;;  %v1117_v36 = vshra.s32 %v4809_v14, 16 }
 0x395   : > { %v879_v50 = vpop.xlane.xlu1 %878 }
 0x396   : > { %vm906_vm13 = vcmp.eq.f32.partialorder %v4695_v58, %v879_v50  ;;  %v4814_v48 = vcvt.s32.f32 %v1117_v36  ;;  %v936_v36 = vcvt.s32.f32 %v934_v44  ;;  %v948_v50 = vand.u32 65535, %v4745_v47 }
 0x397   : > { %v4817_v29 = vsel %vm906_vm13, %v4263_v11, 128  ;;  %v976_v47 = vand.u32 65535, %v4761_v59  ;;  %v1060_v59 = vand.u32 65535, %v4777_v27  ;;  %v1088_v27 = vand.u32 65535, %v4793_v54 }
 0x398   : > { %v991_v42 = vshra.s32 %v4817_v29, 16  ;;  %1120 = vmin.xlane.f32.xlu0 %v4814_v48  ;;  %v1116_v54 = vand.u32 65535, %v4809_v14 }
 0x399   : > { %v895_v40 = vpop.xlane.xlu1 %894  ;;  %v1062_v44 = vcvt.s32.f32 %v1060_v59 }
 0x39a   : > { %vm914_vm14 = vcmp.eq.f32.partialorder %v4703_v53, %v895_v40  ;;  %v4822_v3 = vcvt.s32.f32 %v991_v42  ;;  %v962_v40 = vand.u32 65535, %v4753_v19  ;;  %v1046_v19 = vand.u32 65535, %v4769_v41 }
 0x39b   : > { %v4825_v2 = vsel %vm914_vm14, %v4263_v11, 128  ;;  %v1074_v41 = vand.u32 65535, %v4785_v33  ;;  %v1090_v33 = vcvt.s32.f32 %v1088_v27 }
 0x39c   : > { %v1103_v39 = vshra.s32 %v4825_v2, 16  ;;  %994 = vmin.xlane.f32.xlu1 %v4822_v3 }
 0x39d   : > { %v885_v9 = vpop.xlane.xlu0 %884 }
 0x39e   : > { %vm909_vm15 = vcmp.eq.f32.partialorder %v4711_v25, %v885_v9  ;;  %v4830_v63 = vcvt.s32.f32 %v1103_v39  ;;  %v950_v9 = vcvt.s32.f32 %v948_v50  ;;  %v1076_v50 = vcvt.s32.f32 %v1074_v41 }
 0x39f   : > { %v4833_v13 = vsel %vm909_vm15, %v4263_v11, 128 }
 0x3a0   : > { %1106 = vmin.xlane.f32.xlu1 %v4830_v63  ;;  %v1033_v46 = vshra.s32 %v4833_v13, 16 }
 0x3a1   : > { %v883_v20 = vpop.xlane.xlu1 %882 }
 0x3a2   : > { %vm908_vm0 = vcmp.eq.f32.partialorder %v4719_v34, %v883_v20  ;;  %v4838_v52 = vcvt.s32.f32 %v1033_v46  ;;  %v964_v20 = vcvt.s32.f32 %v962_v40  ;;  %v1004_v40 = vand.u32 65535, %v4801_v31 }
 0x3a3   : > { %v4841_v17 = vsel %vm908_vm0, %v4263_v11, 128  ;;  %v1118_v31 = vcvt.s32.f32 %v1116_v54 }
 0x3a4   : > { %v1019_v23 = vshra.s32 %v4841_v17, 16  ;;  %1036 = vmin.xlane.f32.xlu0 %v4838_v52 }
 0x3a5   : > { %v899_v22 = vpop.xlane.xlu1 %898 }
 0x3a6   : > { %vm916_vm1 = vcmp.eq.f32.partialorder %v4726_v10, %v899_v22  ;;  %v4846_v12 = vcvt.s32.f32 %v1019_v23  ;;  %v978_v22 = vcvt.s32.f32 %v976_v47 }
 0x3a7   : > { %v4849_v51 = vsel %vm916_vm1, %v4263_v11, 128 }
 0x3a8   : > { %v1131_v1 = vshra.s32 %v4849_v51, 16  ;;  %1022 = vmin.xlane.f32.xlu1 %v4846_v12 }
 0x3a9   : > { %v901_v18 = vpop.xlane.xlu0 %900 }
 0x3aa   : > { %vm917_vm3 = vcmp.eq.f32.partialorder %v4733_v62, %v901_v18  ;;  %v4854_v55 = vcvt.s32.f32 %v1131_v1  ;;  %v1048_v18 = vcvt.s32.f32 %v1046_v19 }
 0x3ab   : > { %v4857_v4 = vsel %vm917_vm3, %v4263_v11, 128 }
 0x3ac   : > { %1134 = vmin.xlane.f32.xlu1 %v4854_v55  ;;  %v1145_v30 = vshra.s32 %v4857_v4, 16 }
 0x3ae   : > { %v4861_v38 = vcvt.s32.f32 %v1145_v30 }
 0x3b0   : > { %1148 = vmin.xlane.f32.xlu0 %v4861_v38 }
 0x3fd   : > { %v4865_v43 = vpop.xlane.xlu1 %938 }
 0x3fe   : > { %vm940_vm4 = vcmp.eq.f32.partialorder %v4742_v61, %v4865_v43  ;;  %v945_v27 = vcvt.f32.s32 %v4865_v43 }
 0x3ff   : > { %v941_v42 = vsel %vm940_vm4, %v936_v36, inf  ;;  %vm1158_vm4 = vcmask 15368  }
 0x400   : > { %942 = vmin.xlane.f32.xlu1 %v941_v42 }
 0x401   : > { %v4871_v39 = vpop.xlane.xlu0 %952 }
 0x402   : > { %vm954_vm5 = vcmp.eq.f32.partialorder %v4750_v0, %v4871_v39 }
 0x403   : > { %v955_v46 = vsel %vm954_vm5, %v950_v9, inf }
 0x404   : > { %956 = vmin.xlane.f32.xlu0 %v955_v46  ;;  %v1006_v46 = vcvt.s32.f32 %v1004_v40 }
 0x405   : > { %v4875_v49 = vpop.xlane.xlu1 %966 }
 0x406   : > { %vm968_vm2 = vcmp.eq.f32.partialorder %v4758_v56, %v4875_v49  ;;  %v973_v54 = vcvt.f32.s32 %v4875_v49 }
 0x407   : > { %v969_v61 = vsel %vm968_vm2, %v964_v20, inf  ;;  %v990_v20 = vand.u32 65535, %v4817_v29 }
 0x408   : > { %970 = vmin.xlane.f32.xlu1 %v969_v61  ;;  %v1102_v61 = vand.u32 65535, %v4825_v2  ;;  %v1018_v2 = vand.u32 65535, %v4841_v17 }
 0x409   : > { %v4881_v23 = vpop.xlane.xlu0 %980  ;;  %v992_v14 = vcvt.s32.f32 %v990_v20  ;;  %v974_v20 = vshll.u32 %v973_v54, 16 }
 0x40a   : > { %vm982_vm6 = vcmp.eq.f32.partialorder %v4766_v32, %v4881_v23  ;;  %v1104_v29 = vcvt.s32.f32 %v1102_v61 }
 0x40b   : > { %v983_v0 = vsel %vm982_vm6, %v978_v22, inf }
 0x40c   : > { %984 = vmin.xlane.f32.xlu0 %v983_v0  ;;  %v1032_v0 = vand.u32 65535, %v4833_v13  ;;  %v1020_v13 = vcvt.s32.f32 %v1018_v2 }
 0x40d   : > { %v4885_v1 = vpop.xlane.xlu1 %1050 }
 0x40e   : > { %vm1052_vm7 = vcmp.eq.f32.partialorder %v4774_v28, %v4885_v1  ;;  %v1034_v59 = vcvt.s32.f32 %v1032_v0 }
 0x40f   : > { %v1053_v56 = vsel %vm1052_vm7, %v1048_v18, inf }
 0x410   : > { %1054 = vmin.xlane.f32.xlu1 %v1053_v56  ;;  %v1130_v56 = vand.u32 65535, %v4849_v51 }
 0x411   : > { %v4891_v30 = vpop.xlane.xlu0 %1064 }
 0x412   : > { %vm1066_vm8 = vcmp.eq.f32.partialorder %v4782_v24, %v4891_v30  ;;  %v1132_v17 = vcvt.s32.f32 %v1130_v56  ;;  %v1071_v2 = vcvt.f32.s32 %v4891_v30 }
 0x413   : > { %v1067_v32 = vsel %vm1066_vm8, %v1062_v44, inf }
 0x414   : > { %1068 = vmin.xlane.f32.xlu0 %v1067_v32  ;;  %v1144_v32 = vand.u32 65535, %v4857_v4  ;;  %v959_v4 = vcvt.f32.s32 %v4871_v39  ;;  %v1072_v56 = vshll.u32 %v1071_v2, 16 }
 0x415   : > { %v4895_v36 = vpop.xlane.xlu1 %1078 }
 0x416   : > { %vm1080_vm9 = vcmp.eq.f32.partialorder %v4790_v26, %v4895_v36 }
 0x417   : > { %v1081_v28 = vsel %vm1080_vm9, %v1076_v50, inf  ;;  %v1146_v50 = vcvt.s32.f32 %v1144_v32 }
 0x418   : > { %1082 = vmin.xlane.f32.xlu1 %v1081_v28 }
 0x419   : > { %v4900_v42 = vpop.xlane.xlu0 %1092 }
 0x41a   : > { %vm1094_vm10 = vcmp.eq.f32.partialorder %v4798_v8, %v4900_v42 }
 0x41b   : > { %v1095_v24 = vsel %vm1094_vm10, %v1090_v33, inf  ;;  %v946_v33 = vshll.u32 %v945_v27, 16 }
 0x41c   : > { %1096 = vmin.xlane.f32.xlu0 %v1095_v24 }
 0x41d   : > { %v4905_v9 = vpop.xlane.xlu0 %1008 }
 0x41e   : > { %vm1010_vm11 = vcmp.eq.f32.partialorder %v4806_v37, %v4905_v9 }
 0x41f   : > { %v1011_v26 = vsel %vm1010_vm11, %v1006_v46, inf  ;;  %v960_v46 = vshll.u32 %v959_v4, 16 }
 0x420   : > { %1012 = vmin.xlane.f32.xlu0 %v1011_v26 }
 0x421   : > { %v4911_v47 = vpop.xlane.xlu0 %1120 }
 0x422   : > { %vm1122_vm12 = vcmp.eq.f32.partialorder %v4814_v48, %v4911_v47 }
 0x423   : > { %v1123_v8 = vsel %vm1122_vm12, %v1118_v31, inf  ;;  %v987_v31 = vcvt.f32.s32 %v4881_v23 }
 0x424   : > { %1124 = vmin.xlane.f32.xlu0 %v1123_v8 }
 0x425   : > { %v4916_v19 = vpop.xlane.xlu1 %994 }
 0x426   : > { %vm996_vm13 = vcmp.eq.f32.partialorder %v4822_v3, %v4916_v19 }
 0x427   : > { %v997_v37 = vsel %vm996_vm13, %v992_v14, inf  ;;  %v988_v14 = vshll.u32 %v987_v31, 16 }
 0x428   : > { %998 = vmin.xlane.f32.xlu1 %v997_v37  ;;  %v1057_v37 = vcvt.f32.s32 %v4885_v1 }
 0x429   : > { %v4920_v22 = vpop.xlane.xlu1 %1106 }
 0x42a   : > { %vm1108_vm14 = vcmp.eq.f32.partialorder %v4830_v63, %v4920_v22  ;;  %v1113_v31 = vcvt.f32.s32 %v4920_v22 }
 0x42b   : > { %v1109_v48 = vsel %vm1108_vm14, %v1104_v29, inf }
 0x42c   : > { %1110 = vmin.xlane.f32.xlu1 %v1109_v48  ;;  %v1058_v48 = vshll.u32 %v1057_v37, 16 }
 0x42d   : > { %v4926_v18 = vpop.xlane.xlu0 %1036 }
 0x42e   : > { %vm1038_vm15 = vcmp.eq.f32.partialorder %v4838_v52, %v4926_v18 }
 0x42f   : > { %v1039_v3 = vsel %vm1038_vm15, %v1034_v59, inf }
 0x430   : > { %1040 = vmin.xlane.f32.xlu0 %v1039_v3 }
 0x431   : > { %v4931_v41 = vpop.xlane.xlu1 %1022 }
 0x432   : > { %vm1024_vm0 = vcmp.eq.f32.partialorder %v4846_v12, %v4931_v41 }
 0x433   : > { %v1025_v63 = vsel %vm1024_vm0, %v1020_v13, inf  ;;  %v1085_v13 = vcvt.f32.s32 %v4895_v36 }
 0x434   : > { %1026 = vmin.xlane.f32.xlu1 %v1025_v63 }
 0x435   : > { %v4935_v44 = vpop.xlane.xlu1 %1134  ;;  %v1086_v32 = vshll.u32 %v1085_v13, 16 }
 0x436   : > { %vm1136_vm1 = vcmp.eq.f32.partialorder %v4854_v55, %v4935_v44 }
 0x437   : > { %v1137_v52 = vsel %vm1136_vm1, %v1132_v17, inf }
 0x438   : > { %1138 = vmin.xlane.f32.xlu1 %v1137_v52  ;;  %v1099_v52 = vcvt.f32.s32 %v4900_v42 }
 0x439   : > { %v4940_v51 = vpop.xlane.xlu0 %1148 }
 0x43a   : > { %vm1150_vm3 = vcmp.eq.f32.partialorder %v4861_v38, %v4940_v51  ;;  %v1100_v27 = vshll.u32 %v1099_v52, 16 }
 0x43b   : > { %v1151_v12 = vsel %vm1150_vm3, %v1146_v50, inf }
 0x43c   : > { %1152 = vmin.xlane.f32.xlu0 %v1151_v12 }
 0x489   : > { %v943_v28 = vpop.xlane.xlu1 %942 }
 0x48a   : > { %v944_v40 = vcvt.f32.s32 %v943_v28  ;;  %v1015_v28 = vcvt.f32.s32 %v4905_v9 }
 0x48c   : > { %v947_v55 = vadd.s32 %v946_v33, %v944_v40  ;;  %v1016_v40 = vshll.u32 %v1015_v28, 16 }
 0x48d   : > { %v957_v24 = vpop.xlane.xlu0 %956 }
 0x48e   : > { %1159 = vst.msk [vmem:[%s4531_s5] sm:$0xff] %vm1158_vm4, %v947_v55  ;;  %v958_v26 = vcvt.f32.s32 %v957_v24  ;;  %vm1175_vm5 = vcmp.eq.s32.totalorder %v4263_v11, %v947_v55  ;;  %v1127_v55 = vcvt.f32.s32 %v4911_v47 }
 0x48f   : > { %v4951_v38 = vsel %vm1175_vm5, -inf, %v4615_v60 }
 0x490   : > { %v961_v43 = vadd.s32 %v960_v46, %v958_v26  ;;  %1207 = vmax.xlane.f32.xlu1 %v4951_v38  ;;  %v1128_v54 = vshll.u32 %v1127_v55, 16  ;;  %v1001_v26 = vcvt.f32.s32 %v4916_v19 }
 0x491   : > { %v971_v39 = vpop.xlane.xlu1 %970 }
 0x492   : > { %1160 = vst.msk [vmem:[%s4531_s5 + $0x8] sm:$0xff] %vm1158_vm4, %v961_v43  ;;  %v972_v8 = vcvt.f32.s32 %v971_v39  ;;  %vm1176_vm2 = vcmp.eq.s32.totalorder %v4263_v11, %v961_v43 }
 0x493   : > { %v4959_v49 = vsel %vm1176_vm2, -inf, %v4623_v21 }
 0x494   : > { %v975_v61 = vadd.s32 %v974_v20, %v972_v8  ;;  %1209 = vmax.xlane.f32.xlu0 %v4959_v49  ;;  %v1002_v20 = vshll.u32 %v1001_v26, 16 }
 0x495   : > { %v985_v60 = vpop.xlane.xlu0 %984 }
 0x496   : > { %1161 = vst.msk [vmem:[%s4531_s5 + $0x10] sm:$0xff] %vm1158_vm4, %v975_v61  ;;  %v986_v29 = vcvt.f32.s32 %v985_v60  ;;  %vm1177_vm6 = vcmp.eq.s32.totalorder %v4263_v11, %v975_v61  ;;  %v1114_v60 = vshll.u32 %v1113_v31, 16 }
 0x497   : > { %v4967_v23 = vsel %vm1177_vm6, -inf, %v4631_v6 }
 0x498   : > { %v989_v0 = vadd.s32 %v988_v14, %v986_v29  ;;  %1211 = vmax.xlane.f32.xlu1 %v4967_v23  ;;  %v1043_v14 = vcvt.f32.s32 %v4926_v18 }
 0x499   : > { %v1055_v21 = vpop.xlane.xlu1 %1054 }
 0x49a   : > { %1162 = vst.msk [vmem:[%s4531_s5 + $0x18] sm:$0xff] %vm1158_vm4, %v989_v0  ;;  %v1056_v59 = vcvt.f32.s32 %v1055_v21  ;;  %vm1178_vm7 = vcmp.eq.s32.totalorder %v4263_v11, %v989_v0  ;;  %v1044_v0 = vshll.u32 %v1043_v14, 16  ;;  %v1029_v21 = vcvt.f32.s32 %v4931_v41 }
 0x49b   : > { %v4975_v1 = vsel %vm1178_vm7, -inf, %v4639_v5 }
 0x49c   : > { %v1059_v3 = vadd.s32 %v1058_v48, %v1056_v59  ;;  %1213 = vmax.xlane.f32.xlu0 %v4975_v1  ;;  %v1030_v59 = vshll.u32 %v1029_v21, 16 }
 0x49d   : > { %v1069_v6 = vpop.xlane.xlu0 %1068 }
 0x49e   : > { %1167 = vst.msk [vmem:[%s4531_s5 + $0x40] sm:$0xff] %vm1158_vm4, %v1059_v3  ;;  %v1070_v63 = vcvt.f32.s32 %v1069_v6  ;;  %vm1183_vm8 = vcmp.eq.s32.totalorder %v4263_v11, %v1059_v3  ;;  %v1141_v3 = vcvt.f32.s32 %v4935_v44 }
 0x49f   : > { %v4983_v30 = vsel %vm1183_vm8, -inf, %v4647_v16 }
 0x4a0   : > { %v1073_v17 = vadd.s32 %v1072_v56, %v1070_v63  ;;  %1223 = vmax.xlane.f32.xlu1 %v4983_v30  ;;  %v1142_v13 = vshll.u32 %v1141_v3, 16  ;;  %v1155_v63 = vcvt.f32.s32 %v4940_v51 }
 0x4a1   : > { %v1083_v5 = vpop.xlane.xlu1 %1082 }
 0x4a2   : > { %1168 = vst.msk [vmem:[%s4531_s5 + $0x48] sm:$0xff] %vm1158_vm4, %v1073_v17  ;;  %v1084_v50 = vcvt.f32.s32 %v1083_v5  ;;  %vm1184_vm9 = vcmp.eq.s32.totalorder %v4263_v11, %v1073_v17 }
 0x4a3   : > { %v4991_v36 = vsel %vm1184_vm9, -inf, %v4655_v35 }
 0x4a4   : > { %v1087_v12 = vadd.s32 %v1086_v32, %v1084_v50  ;;  %1225 = vmax.xlane.f32.xlu0 %v4991_v36  ;;  %v1156_v32 = vshll.u32 %v1155_v63, 16 }
 0x4a5   : > { %v1097_v16 = vpop.xlane.xlu0 %1096 }
 0x4a6   : > { %1169 = vst.msk [vmem:[%s4531_s5 + $0x50] sm:$0xff] %vm1158_vm4, %v1087_v12  ;;  %v1098_v33 = vcvt.f32.s32 %v1097_v16  ;;  %vm1185_vm10 = vcmp.eq.s32.totalorder %v4263_v11, %v1087_v12 }
 0x4a7   : > { %v4999_v42 = vsel %vm1185_vm10, -inf, %v4663_v45 }
 0x4a8   : > { %v1101_v4 = vadd.s32 %v1100_v27, %v1098_v33  ;;  %1227 = vmax.xlane.f32.xlu1 %v4999_v42 }
 0x4a9   : > { %v1013_v35 = vpop.xlane.xlu0 %1012 }
 0x4aa   : > { %1170 = vst.msk [vmem:[%s4531_s5 + $0x58] sm:$0xff] %vm1158_vm4, %v1101_v4  ;;  %v1014_v24 = vcvt.f32.s32 %v1013_v35  ;;  %vm1186_vm11 = vcmp.eq.s32.totalorder %v4263_v11, %v1101_v4 }
 0x4ab   : > { %v5007_v9 = vsel %vm1186_vm11, -inf, %v4671_v15 }
 0x4ac   : > { %v1017_v46 = vadd.s32 %v1016_v40, %v1014_v24  ;;  %1229 = vmax.xlane.f32.xlu0 %v5007_v9 }
 0x4ad   : > { %v1125_v45 = vpop.xlane.xlu0 %1124 }
 0x4ae   : > { %1164 = vst.msk [vmem:[%s4531_s5 + $0x28] sm:$0xff] %vm1158_vm4, %v1017_v46  ;;  %v1126_v43 = vcvt.f32.s32 %v1125_v45  ;;  %vm1180_vm12 = vcmp.eq.s32.totalorder %v4263_v11, %v1017_v46 }
 0x4af   : > { %v5015_v47 = vsel %vm1180_vm12, -inf, %v4679_v57 }
 0x4b0   : > { %v1129_v39 = vadd.s32 %v1128_v54, %v1126_v43  ;;  %1217 = vmax.xlane.f32.xlu0 %v5015_v47 }
 0x4b1   : > { %v999_v15 = vpop.xlane.xlu1 %998 }
 0x4b2   : > { %1172 = vst.msk [vmem:[%s4531_s5 + $0x68] sm:$0xff] %vm1158_vm4, %v1129_v39  ;;  %v1000_v8 = vcvt.f32.s32 %v999_v15  ;;  %vm1188_vm13 = vcmp.eq.s32.totalorder %v4263_v11, %v1129_v39 }
 0x4b3   : > { %v5023_v19 = vsel %vm1188_vm13, -inf, %v4687_v7 }
 0x4b4   : > { %v1003_v61 = vadd.s32 %v1002_v20, %v1000_v8  ;;  %1233 = vmax.xlane.f32.xlu0 %v5023_v19 }
 0x4b5   : > { %v1111_v57 = vpop.xlane.xlu1 %1110 }
 0x4b6   : > { %1163 = vst.msk [vmem:[%s4531_s5 + $0x20] sm:$0xff] %vm1158_vm4, %v1003_v61  ;;  %v1112_v37 = vcvt.f32.s32 %v1111_v57  ;;  %vm1179_vm14 = vcmp.eq.s32.totalorder %v4263_v11, %v1003_v61 }
 0x4b7   : > { %v5031_v22 = vsel %vm1179_vm14, -inf, %v4695_v58 }
 0x4b8   : > { %v1115_v29 = vadd.s32 %v1114_v60, %v1112_v37  ;;  %1215 = vmax.xlane.f32.xlu1 %v5031_v22 }
 0x4b9   : > { %v1041_v7 = vpop.xlane.xlu0 %1040 }
 0x4ba   : > { %1171 = vst.msk [vmem:[%s4531_s5 + $0x60] sm:$0xff] %vm1158_vm4, %v1115_v29  ;;  %v1042_v48 = vcvt.f32.s32 %v1041_v7  ;;  %vm1187_vm15 = vcmp.eq.s32.totalorder %v4263_v11, %v1115_v29 }
 0x4bb   : > { %v5039_v18 = vsel %vm1187_vm15, -inf, %v4703_v53 }
 0x4bc   : > { %v1045_v2 = vadd.s32 %v1044_v0, %v1042_v48  ;;  %1231 = vmax.xlane.f32.xlu1 %v5039_v18 }
 0x4bd   : > { %v1027_v58 = vpop.xlane.xlu1 %1026 }
 0x4be   : > { %1166 = vst.msk [vmem:[%s4531_s5 + $0x38] sm:$0xff] %vm1158_vm4, %v1045_v2  ;;  %v1028_v6 = vcvt.f32.s32 %v1027_v58  ;;  %vm1182_vm0 = vcmp.eq.s32.totalorder %v4263_v11, %v1045_v2 }
 0x4bf   : > { %v5047_v41 = vsel %vm1182_vm0, -inf, %v4711_v25 }
 0x4c0   : > { %v1031_v56 = vadd.s32 %v1030_v59, %v1028_v6  ;;  %1221 = vmax.xlane.f32.xlu0 %v5047_v41 }
 0x4c1   : > { %v1139_v53 = vpop.xlane.xlu1 %1138 }
 0x4c2   : > { %1165 = vst.msk [vmem:[%s4531_s5 + $0x30] sm:$0xff] %vm1158_vm4, %v1031_v56  ;;  %v1140_v44 = vcvt.f32.s32 %v1139_v53  ;;  %vm1181_vm1 = vcmp.eq.s32.totalorder %v4263_v11, %v1031_v56 }
 0x4c3   : > { %v5055_v17 = vsel %vm1181_vm1, -inf, %v4719_v34 }
 0x4c4   : > { %v1143_v5 = vadd.s32 %v1142_v13, %v1140_v44  ;;  %1219 = vmax.xlane.f32.xlu1 %v5055_v17 }
 0x4c5   : > { %v1153_v25 = vpop.xlane.xlu0 %1152 }
 0x4c6   : > { %1173 = vst.msk [vmem:[%s4531_s5 + $0x70] sm:$0xff] %vm1158_vm4, %v1143_v5  ;;  %v1154_v52 = vcvt.f32.s32 %v1153_v25  ;;  %vm1189_vm3 = vcmp.eq.s32.totalorder %v4263_v11, %v1143_v5 }
 0x4c7   : > { %v5062_v51 = vsel %vm1189_vm3, -inf, %v4726_v10 }
 0x4c8   : > { %v1157_v50 = vadd.s32 %v1156_v32, %v1154_v52  ;;  %1235 = vmax.xlane.f32.xlu1 %v5062_v51 }
 0x4ca   : > { %1174 = vst.msk [vmem:[%s4531_s5 + $0x78] sm:$0xff] %vm1158_vm4, %v1157_v50  ;;  %vm1190_vm5 = vcmp.eq.s32.totalorder %v4263_v11, %v1157_v50 }
 0x4cb   : > { %v5069_v34 = vsel %vm1190_vm5, -inf, %v4733_v62 }
 0x4cc   : > { %1237 = vmax.xlane.f32.xlu0 %v5069_v34 }
 0x519   : > { %v1208_v12 = vpop.xlane.xlu1 %1207 }
 0x51a   : > { %vm1239_vm2 = vcmp.eq.f32.partialorder %v4951_v38, %v1208_v12 }
 0x51b   : > { %v5074_v16 = vsel %vm1239_vm2, %v4263_v11, 128 }
 0x51c   : > { %v1272_v10 = vshra.s32 %v5074_v16, 16 }
 0x51d   : > { %v1210_v27 = vpop.xlane.xlu0 %1209 }
 0x51e   : > { %vm1240_vm6 = vcmp.eq.f32.partialorder %v4959_v49, %v1210_v27  ;;  %v5078_v28 = vcvt.s32.f32 %v1272_v10 }
 0x51f   : > { %v5081_v33 = vsel %vm1240_vm6, %v4263_v11, 128 }
 0x520   : > { %1275 = vmin.xlane.f32.xlu1 %v5078_v28  ;;  %v1286_v62 = vshra.s32 %v5081_v33, 16 }
 0x521   : > { %v1212_v4 = vpop.xlane.xlu1 %1211 }
 0x522   : > { %vm1241_vm4 = vcmp.eq.f32.partialorder %v4967_v23, %v1212_v4  ;;  %v5086_v35 = vcvt.s32.f32 %v1286_v62 }
 0x523   : > { %v5089_v40 = vsel %vm1241_vm4, %v4263_v11, 128 }
 0x524   : > { %v1300_v55 = vshra.s32 %v5089_v40, 16  ;;  %1289 = vmin.xlane.f32.xlu0 %v5086_v35 }
 0x525   : > { %v1214_v24 = vpop.xlane.xlu0 %1213 }
 0x526   : > { %vm1242_vm7 = vcmp.eq.f32.partialorder %v4975_v1, %v1214_v24  ;;  %v5094_v46 = vcvt.s32.f32 %v1300_v55 }
 0x527   : > { %v5097_v45 = vsel %vm1242_vm7, %v4263_v11, 128 }
 0x528   : > { %1303 = vmin.xlane.f32.xlu1 %v5094_v46  ;;  %v1314_v54 = vshra.s32 %v5097_v45, 16 }
 0x529   : > { %v1224_v26 = vpop.xlane.xlu1 %1223 }
 0x52a   : > { %vm1247_vm8 = vcmp.eq.f32.partialorder %v4983_v30, %v1224_v26  ;;  %v5102_v43 = vcvt.s32.f32 %v1314_v54 }
 0x52b   : > { %v5105_v39 = vsel %vm1247_vm8, %v4263_v11, 128 }
 0x52c   : > { %v1384_v15 = vshra.s32 %v5105_v39, 16  ;;  %1317 = vmin.xlane.f32.xlu0 %v5102_v43 }
 0x52d   : > { %v1226_v20 = vpop.xlane.xlu0 %1225 }
 0x52e   : > { %vm1248_vm9 = vcmp.eq.f32.partialorder %v4991_v36, %v1226_v20  ;;  %v5110_v31 = vcvt.s32.f32 %v1384_v15 }
 0x52f   : > { %v5113_v8 = vsel %vm1248_vm9, %v4263_v11, 128 }
 0x530   : > { %v1398_v61 = vshra.s32 %v5113_v8, 16  ;;  %1387 = vmin.xlane.f32.xlu1 %v5110_v31 }
 0x531   : > { %v1228_v57 = vpop.xlane.xlu1 %1227 }
 0x532   : > { %vm1249_vm10 = vcmp.eq.f32.partialorder %v4999_v42, %v1228_v57  ;;  %v5118_v60 = vcvt.s32.f32 %v1398_v61 }
 0x533   : > { %v5121_v14 = vsel %vm1249_vm10, %v4263_v11, 128 }
 0x534   : > { %v1412_v37 = vshra.s32 %v5121_v14, 16  ;;  %1401 = vmin.xlane.f32.xlu0 %v5118_v60 }
 0x535   : > { %v1230_v29 = vpop.xlane.xlu0 %1229 }
 0x536   : > { %vm1250_vm11 = vcmp.eq.f32.partialorder %v5007_v9, %v1230_v29  ;;  %v5126_v7 = vcvt.s32.f32 %v1412_v37 }
 0x537   : > { %v5129_v0 = vsel %vm1250_vm11, %v4263_v11, 128 }
 0x538   : > { %v1426_v21 = vshra.s32 %v5129_v0, 16  ;;  %1415 = vmin.xlane.f32.xlu1 %v5126_v7 }
 0x539   : > { %v1218_v48 = vpop.xlane.xlu0 %1217 }
 0x53a   : > { %vm1244_vm12 = vcmp.eq.f32.partialorder %v5015_v47, %v1218_v48  ;;  %v5134_v2 = vcvt.s32.f32 %v1426_v21 }
 0x53b   : > { %v5137_v58 = vsel %vm1244_vm12, %v4263_v11, 128 }
 0x53c   : > { %v1342_v59 = vshra.s32 %v5137_v58, 16  ;;  %1429 = vmin.xlane.f32.xlu0 %v5134_v2 }
 0x53d   : > { %v1234_v3 = vpop.xlane.xlu0 %1233 }
 0x53e   : > { %vm1252_vm13 = vcmp.eq.f32.partialorder %v5023_v19, %v1234_v3  ;;  %v5142_v6 = vcvt.s32.f32 %v1342_v59  ;;  %v1271_v59 = vand.u32 65535, %v5074_v16  ;;  %v1285_v3 = vand.u32 65535, %v5081_v33 }
 0x53f   : > { %v5145_v56 = vsel %vm1252_vm13, %v4263_v11, 128  ;;  %v1313_v16 = vand.u32 65535, %v5097_v45  ;;  %v1397_v45 = vand.u32 65535, %v5113_v8  ;;  %v1425_v8 = vand.u32 65535, %v5129_v0 }
 0x540   : > { %v1454_v53 = vshra.s32 %v5145_v56, 16  ;;  %1345 = vmin.xlane.f32.xlu0 %v5142_v6  ;;  %v1453_v0 = vand.u32 65535, %v5145_v56 }
 0x541   : > { %v1216_v13 = vpop.xlane.xlu1 %1215 }
 0x542   : > { %vm1243_vm14 = vcmp.eq.f32.partialorder %v5031_v22, %v1216_v13  ;;  %v5150_v63 = vcvt.s32.f32 %v1454_v53  ;;  %v1273_v13 = vcvt.s32.f32 %v1271_v59  ;;  %v1399_v59 = vcvt.s32.f32 %v1397_v45 }
 0x543   : > { %v5153_v44 = vsel %vm1243_vm14, %v4263_v11, 128 }
 0x544   : > { %v1328_v5 = vshra.s32 %v5153_v44, 16  ;;  %1457 = vmin.xlane.f32.xlu0 %v5150_v63 }
 0x545   : > { %v1232_v25 = vpop.xlane.xlu1 %1231 }
 0x546   : > { %vm1251_vm15 = vcmp.eq.f32.partialorder %v5039_v18, %v1232_v25  ;;  %v5158_v32 = vcvt.s32.f32 %v1328_v5  ;;  %v1299_v25 = vand.u32 65535, %v5089_v40  ;;  %v1383_v40 = vand.u32 65535, %v5105_v39 }
 0x547   : > { %v5161_v52 = vsel %vm1251_vm15, %v4263_v11, 128  ;;  %v1411_v39 = vand.u32 65535, %v5121_v14  ;;  %v1341_v14 = vand.u32 65535, %v5137_v58  ;;  %v1327_v58 = vand.u32 65535, %v5153_v44 }
 0x548   : > { %v1440_v50 = vshra.s32 %v5161_v52, 16  ;;  %1331 = vmin.xlane.f32.xlu1 %v5158_v32  ;;  %v1439_v56 = vand.u32 65535, %v5161_v52 }
 0x549   : > { %v1222_v12 = vpop.xlane.xlu0 %1221 }
 0x54a   : > { %vm1246_vm0 = vcmp.eq.f32.partialorder %v5047_v41, %v1222_v12  ;;  %v5166_v10 = vcvt.s32.f32 %v1440_v50  ;;  %v1287_v12 = vcvt.s32.f32 %v1285_v3 }
 0x54b   : > { %v5169_v27 = vsel %vm1246_vm0, %v4263_v11, 128 }
 0x54c   : > { %v1370_v62 = vshra.s32 %v5169_v27, 16  ;;  %1443 = vmin.xlane.f32.xlu1 %v5166_v10  ;;  %v1369_v44 = vand.u32 65535, %v5169_v27 }
 0x54d   : > { %v1220_v4 = vpop.xlane.xlu1 %1219 }
 0x54e   : > { %vm1245_vm1 = vcmp.eq.f32.partialorder %v5055_v17, %v1220_v4  ;;  %v5174_v55 = vcvt.s32.f32 %v1370_v62  ;;  %v1301_v4 = vcvt.s32.f32 %v1299_v25  ;;  %v1427_v25 = vcvt.s32.f32 %v1425_v8 }
 0x54f   : > { %v5177_v24 = vsel %vm1245_vm1, %v4263_v11, 128 }
 0x550   : > { %v1356_v54 = vshra.s32 %v5177_v24, 16  ;;  %1373 = vmin.xlane.f32.xlu0 %v5174_v55  ;;  %v1355_v52 = vand.u32 65535, %v5177_v24 }
 0x551   : > { %v1236_v26 = vpop.xlane.xlu1 %1235 }
 0x552   : > { %vm1253_vm3 = vcmp.eq.f32.partialorder %v5062_v51, %v1236_v26  ;;  %v5182_v15 = vcvt.s32.f32 %v1356_v54  ;;  %v1315_v26 = vcvt.s32.f32 %v1313_v16 }
 0x553   : > { %v5185_v20 = vsel %vm1253_vm3, %v4263_v11, 128 }
 0x554   : > { %v1468_v61 = vshra.s32 %v5185_v20, 16  ;;  %1359 = vmin.xlane.f32.xlu1 %v5182_v15  ;;  %v1467_v27 = vand.u32 65535, %v5185_v20 }
 0x555   : > { %v1238_v57 = vpop.xlane.xlu0 %1237 }
 0x556   : > { %vm1254_vm5 = vcmp.eq.f32.partialorder %v5069_v34, %v1238_v57  ;;  %v5190_v37 = vcvt.s32.f32 %v1468_v61  ;;  %v1385_v57 = vcvt.s32.f32 %v1383_v40  ;;  %v1329_v40 = vcvt.s32.f32 %v1327_v58 }
 0x557   : > { %v5193_v29 = vsel %vm1254_vm5, %v4263_v11, 128 }
 0x558   : > { %v1482_v21 = vshra.s32 %v5193_v29, 16  ;;  %1471 = vmin.xlane.f32.xlu1 %v5190_v37  ;;  %v1481_v24 = vand.u32 65535, %v5193_v29 }
 0x55a   : > { %v5197_v48 = vcvt.s32.f32 %v1482_v21  ;;  %v1483_v8 = vcvt.s32.f32 %v1481_v24 }
 0x55c   : > { %1485 = vmin.xlane.f32.xlu0 %v5197_v48 }
 0x5a9   : > { %v5202_v53 = vpop.xlane.xlu1 %1275 }
 0x5aa   : > { %vm1277_vm2 = vcmp.eq.f32.partialorder %v5078_v28, %v5202_v53 }
 0x5ab   : > { %v1278_v5 = vsel %vm1277_vm2, %v1273_v13, inf  ;;  %v1413_v13 = vcvt.s32.f32 %v1411_v39  ;;  %v1357_v39 = vcvt.s32.f32 %v1355_v52  ;;  %vm1495_vm2 = vcmask 23568  }
 0x5ac   : > { %1279 = vmin.xlane.f32.xlu1 %v1278_v5 }
 0x5ad   : > { %v5207_v50 = vpop.xlane.xlu0 %1289 }
 0x5ae   : > { %vm1291_vm6 = vcmp.eq.f32.partialorder %v5086_v35, %v5207_v50 }
 0x5af   : > { %v1292_v62 = vsel %vm1291_vm6, %v1287_v12, inf }
 0x5b0   : > { %1293 = vmin.xlane.f32.xlu0 %v1292_v62  ;;  %v1343_v62 = vcvt.s32.f32 %v1341_v14  ;;  %v1296_v14 = vcvt.f32.s32 %v5207_v50 }
 0x5b1   : > { %v5212_v33 = vpop.xlane.xlu1 %1303 }
 0x5b2   : > { %vm1305_vm4 = vcmp.eq.f32.partialorder %v5094_v46, %v5212_v33 }
 0x5b3   : > { %v1306_v28 = vsel %vm1305_vm4, %v1301_v4, inf  ;;  %v1455_v4 = vcvt.s32.f32 %v1453_v0  ;;  %v1297_v0 = vshll.u32 %v1296_v14, 16 }
 0x5b4   : > { %1307 = vmin.xlane.f32.xlu1 %v1306_v28 }
 0x5b5   : > { %v5217_v54 = vpop.xlane.xlu0 %1317 }
 0x5b6   : > { %vm1319_vm7 = vcmp.eq.f32.partialorder %v5102_v43, %v5217_v54 }
 0x5b7   : > { %v1320_v35 = vsel %vm1319_vm7, %v1315_v26, inf }
 0x5b8   : > { %1321 = vmin.xlane.f32.xlu0 %v1320_v35  ;;  %v1441_v35 = vcvt.s32.f32 %v1439_v56 }
 0x5b9   : > { %v5222_v61 = vpop.xlane.xlu1 %1387 }
 0x5ba   : > { %vm1389_vm8 = vcmp.eq.f32.partialorder %v5110_v31, %v5222_v61 }
 0x5bb   : > { %v1390_v46 = vsel %vm1389_vm8, %v1385_v57, inf  ;;  %v1371_v57 = vcvt.s32.f32 %v1369_v44 }
 0x5bc   : > { %1391 = vmin.xlane.f32.xlu1 %v1390_v46 }
 0x5bd   : > { %v5227_v21 = vpop.xlane.xlu0 %1401 }
 0x5be   : > { %vm1403_vm9 = vcmp.eq.f32.partialorder %v5118_v60, %v5227_v21  ;;  %v1408_v52 = vcvt.f32.s32 %v5227_v21 }
 0x5bf   : > { %v1404_v43 = vsel %vm1403_vm9, %v1399_v59, inf }
 0x5c0   : > { %1405 = vmin.xlane.f32.xlu0 %v1404_v43  ;;  %v1469_v43 = vcvt.s32.f32 %v1467_v27  ;;  %v1409_v27 = vshll.u32 %v1408_v52, 16 }
 0x5c1   : > { %v5232_v3 = vpop.xlane.xlu1 %1415 }
 0x5c2   : > { %vm1417_vm10 = vcmp.eq.f32.partialorder %v5126_v7, %v5232_v3 }
 0x5c3   : > { %v1418_v31 = vsel %vm1417_vm10, %v1413_v13, inf  ;;  %v1282_v13 = vcvt.f32.s32 %v5202_v53 }
 0x5c4   : > { %1419 = vmin.xlane.f32.xlu1 %v1418_v31 }
 0x5c5   : > { %v5237_v5 = vpop.xlane.xlu0 %1429  ;;  %v1283_v31 = vshll.u32 %v1282_v13, 16 }
 0x5c6   : > { %vm1431_vm11 = vcmp.eq.f32.partialorder %v5134_v2, %v5237_v5 }
 0x5c7   : > { %v1432_v60 = vsel %vm1431_vm11, %v1427_v25, inf }
 0x5c8   : > { %1433 = vmin.xlane.f32.xlu0 %v1432_v60 }
 0x5c9   : > { %v5242_v12 = vpop.xlane.xlu0 %1345 }
 0x5ca   : > { %vm1347_vm12 = vcmp.eq.f32.partialorder %v5142_v6, %v5242_v12 }
 0x5cb   : > { %v1348_v7 = vsel %vm1347_vm12, %v1343_v62, inf  ;;  %v1310_v62 = vcvt.f32.s32 %v5212_v33 }
 0x5cc   : > { %1349 = vmin.xlane.f32.xlu0 %v1348_v7 }
 0x5cd   : > { %v5247_v16 = vpop.xlane.xlu0 %1457  ;;  %v1311_v58 = vshll.u32 %v1310_v62, 16 }
 0x5ce   : > { %vm1459_vm13 = vcmp.eq.f32.partialorder %v5150_v63, %v5247_v16 }
 0x5cf   : > { %v1460_v2 = vsel %vm1459_vm13, %v1455_v4, inf  ;;  %v1324_v4 = vcvt.f32.s32 %v5217_v54 }
 0x5d0   : > { %1461 = vmin.xlane.f32.xlu0 %v1460_v2 }
 0x5d1   : > { %v5252_v28 = vpop.xlane.xlu1 %1331 }
 0x5d2   : > { %vm1333_vm14 = vcmp.eq.f32.partialorder %v5158_v32, %v5252_v28 }
 0x5d3   : > { %v1334_v6 = vsel %vm1333_vm14, %v1329_v40, inf  ;;  %v1325_v40 = vshll.u32 %v1324_v4, 16 }
 0x5d4   : > { %1335 = vmin.xlane.f32.xlu1 %v1334_v6  ;;  %v1394_v6 = vcvt.f32.s32 %v5222_v61 }
 0x5d5   : > { %v5257_v26 = vpop.xlane.xlu1 %1443 }
 0x5d6   : > { %vm1445_vm15 = vcmp.eq.f32.partialorder %v5166_v10, %v5257_v26  ;;  %v1450_v4 = vcvt.f32.s32 %v5257_v26 }
 0x5d7   : > { %v1446_v63 = vsel %vm1445_vm15, %v1441_v35, inf }
 0x5d8   : > { %1447 = vmin.xlane.f32.xlu1 %v1446_v63  ;;  %v1395_v63 = vshll.u32 %v1394_v6, 16 }
 0x5d9   : > { %v5262_v45 = vpop.xlane.xlu0 %1373 }
 0x5da   : > { %vm1375_vm0 = vcmp.eq.f32.partialorder %v5174_v55, %v5262_v45 }
 0x5db   : > { %v1376_v32 = vsel %vm1375_vm0, %v1371_v57, inf }
 0x5dc   : > { %1377 = vmin.xlane.f32.xlu0 %v1376_v32 }
 0x5dd   : > { %v5267_v46 = vpop.xlane.xlu1 %1359 }
 0x5de   : > { %vm1361_vm1 = vcmp.eq.f32.partialorder %v5182_v15, %v5267_v46 }
 0x5df   : > { %v1362_v10 = vsel %vm1361_vm1, %v1357_v39, inf  ;;  %v1422_v39 = vcvt.f32.s32 %v5232_v3 }
 0x5e0   : > { %1363 = vmin.xlane.f32.xlu1 %v1362_v10 }
 0x5e1   : > { %v5272_v59 = vpop.xlane.xlu1 %1471 }
 0x5e2   : > { %vm1473_vm3 = vcmp.eq.f32.partialorder %v5190_v37, %v5272_v59 }
 0x5e3   : > { %v1474_v55 = vsel %vm1473_vm3, %v1469_v43, inf  ;;  %v1423_v43 = vshll.u32 %v1422_v39, 16 }
 0x5e4   : > { %1475 = vmin.xlane.f32.xlu1 %v1474_v55  ;;  %v1436_v55 = vcvt.f32.s32 %v5237_v5 }
 0x5e5   : > { %v5276_v20 = vpop.xlane.xlu0 %1485 }
 0x5e6   : > { %vm1487_vm5 = vcmp.eq.f32.partialorder %v5197_v48, %v5276_v20  ;;  %v1437_v13 = vshll.u32 %v1436_v55, 16 }
 0x5e7   : > { %v1488_v15 = vsel %vm1487_vm5, %v1483_v8, inf }
 0x5e8   : > { %1489 = vmin.xlane.f32.xlu0 %v1488_v15 }
 0x635   : > { %v1280_v29 = vpop.xlane.xlu1 %1279 }
 0x636   : > { %v1281_v25 = vcvt.f32.s32 %v1280_v29  ;;  %v1352_v29 = vcvt.f32.s32 %v5242_v12 }
 0x638   : > { %v1284_v37 = vadd.s32 %v1283_v31, %v1281_v25  ;;  %v1353_v25 = vshll.u32 %v1352_v29, 16 }
 0x639   : > { %v1294_v60 = vpop.xlane.xlu0 %1293 }
 0x63a   : > { %1496 = vst.msk [vmem:[%s4531_s5] sm:$0xff] %vm1495_vm2, %v1284_v37  ;;  %v1295_v7 = vcvt.f32.s32 %v1294_v60  ;;  %vm1512_vm6 = vcmp.eq.s32.totalorder %v4263_v11, %v1284_v37  ;;  %v1464_v37 = vcvt.f32.s32 %v5247_v16 }
 0x63b   : > { %v5287_v48 = vsel %vm1512_vm6, -inf, %v4951_v38 }
 0x63c   : > { %v1298_v53 = vadd.s32 %v1297_v0, %v1295_v7  ;;  %1544 = vmax.xlane.f32.xlu1 %v5287_v48  ;;  %v1465_v62 = vshll.u32 %v1464_v37, 16  ;;  %v1338_v7 = vcvt.f32.s32 %v5252_v28 }
 0x63d   : > { %v1308_v50 = vpop.xlane.xlu1 %1307 }
 0x63e   : > { %1497 = vst.msk [vmem:[%s4531_s5 + $0x8] sm:$0xff] %vm1495_vm2, %v1298_v53  ;;  %v1309_v2 = vcvt.f32.s32 %v1308_v50  ;;  %vm1513_vm4 = vcmp.eq.s32.totalorder %v4263_v11, %v1298_v53 }
 0x63f   : > { %v5295_v33 = vsel %vm1513_vm4, -inf, %v4959_v49 }
 0x640   : > { %v1312_v56 = vadd.s32 %v1311_v58, %v1309_v2  ;;  %1546 = vmax.xlane.f32.xlu0 %v5295_v33  ;;  %v1339_v58 = vshll.u32 %v1338_v7, 16 }
 0x641   : > { %v1322_v38 = vpop.xlane.xlu0 %1321 }
 0x642   : > { %1498 = vst.msk [vmem:[%s4531_s5 + $0x10] sm:$0xff] %vm1495_vm2, %v1312_v56  ;;  %v1323_v44 = vcvt.f32.s32 %v1322_v38  ;;  %vm1514_vm7 = vcmp.eq.s32.totalorder %v4263_v11, %v1312_v56  ;;  %v1451_v38 = vshll.u32 %v1450_v4, 16 }
 0x643   : > { %v5303_v54 = vsel %vm1514_vm7, -inf, %v4967_v23 }
 0x644   : > { %v1326_v35 = vadd.s32 %v1325_v40, %v1323_v44  ;;  %1548 = vmax.xlane.f32.xlu1 %v5303_v54  ;;  %v1380_v40 = vcvt.f32.s32 %v5262_v45 }
 0x645   : > { %v1392_v49 = vpop.xlane.xlu1 %1391 }
 0x646   : > { %1499 = vst.msk [vmem:[%s4531_s5 + $0x18] sm:$0xff] %vm1495_vm2, %v1326_v35  ;;  %v1393_v57 = vcvt.f32.s32 %v1392_v49  ;;  %vm1515_vm8 = vcmp.eq.s32.totalorder %v4263_v11, %v1326_v35  ;;  %v1381_v35 = vshll.u32 %v1380_v40, 16  ;;  %v1366_v49 = vcvt.f32.s32 %v5267_v46 }
 0x647   : > { %v5311_v61 = vsel %vm1515_vm8, -inf, %v4975_v1 }
 0x648   : > { %v1396_v32 = vadd.s32 %v1395_v63, %v1393_v57  ;;  %1550 = vmax.xlane.f32.xlu0 %v5311_v61  ;;  %v1367_v57 = vshll.u32 %v1366_v49, 16 }
 0x649   : > { %v1406_v23 = vpop.xlane.xlu0 %1405 }
 0x64a   : > { %1504 = vst.msk [vmem:[%s4531_s5 + $0x40] sm:$0xff] %vm1495_vm2, %v1396_v32  ;;  %v1407_v10 = vcvt.f32.s32 %v1406_v23  ;;  %vm1520_vm9 = vcmp.eq.s32.totalorder %v4263_v11, %v1396_v32  ;;  %v1478_v32 = vcvt.f32.s32 %v5272_v59 }
 0x64b   : > { %v5319_v21 = vsel %vm1520_vm9, -inf, %v4983_v30 }
 0x64c   : > { %v1410_v24 = vadd.s32 %v1409_v27, %v1407_v10  ;;  %1560 = vmax.xlane.f32.xlu1 %v5319_v21  ;;  %v1479_v39 = vshll.u32 %v1478_v32, 16  ;;  %v1492_v10 = vcvt.f32.s32 %v5276_v20 }
 0x64d   : > { %v1420_v1 = vpop.xlane.xlu1 %1419 }
 0x64e   : > { %1505 = vst.msk [vmem:[%s4531_s5 + $0x48] sm:$0xff] %vm1495_vm2, %v1410_v24  ;;  %v1421_v8 = vcvt.f32.s32 %v1420_v1  ;;  %vm1521_vm10 = vcmp.eq.s32.totalorder %v4263_v11, %v1410_v24 }
 0x64f   : > { %v5327_v3 = vsel %vm1521_vm10, -inf, %v4991_v36 }
 0x650   : > { %v1424_v15 = vadd.s32 %v1423_v43, %v1421_v8  ;;  %1562 = vmax.xlane.f32.xlu0 %v5327_v3  ;;  %v1493_v43 = vshll.u32 %v1492_v10, 16 }
 0x651   : > { %v1434_v30 = vpop.xlane.xlu0 %1433 }
 0x652   : > { %1506 = vst.msk [vmem:[%s4531_s5 + $0x50] sm:$0xff] %vm1495_vm2, %v1424_v15  ;;  %v1435_v31 = vcvt.f32.s32 %v1434_v30  ;;  %vm1522_vm11 = vcmp.eq.s32.totalorder %v4263_v11, %v1424_v15 }
 0x653   : > { %v5335_v5 = vsel %vm1522_vm11, -inf, %v4999_v42 }
 0x654   : > { %v1438_v14 = vadd.s32 %v1437_v13, %v1435_v31  ;;  %1564 = vmax.xlane.f32.xlu1 %v5335_v5 }
 0x655   : > { %v1350_v36 = vpop.xlane.xlu0 %1349 }
 0x656   : > { %1507 = vst.msk [vmem:[%s4531_s5 + $0x58] sm:$0xff] %vm1495_vm2, %v1438_v14  ;;  %v1351_v60 = vcvt.f32.s32 %v1350_v36  ;;  %vm1523_vm12 = vcmp.eq.s32.totalorder %v4263_v11, %v1438_v14 }
 0x657   : > { %v5343_v12 = vsel %vm1523_vm12, -inf, %v5007_v9 }
 0x658   : > { %v1354_v0 = vadd.s32 %v1353_v25, %v1351_v60  ;;  %1566 = vmax.xlane.f32.xlu0 %v5343_v12 }
 0x659   : > { %v1462_v42 = vpop.xlane.xlu0 %1461 }
 0x65a   : > { %1501 = vst.msk [vmem:[%s4531_s5 + $0x28] sm:$0xff] %vm1495_vm2, %v1354_v0  ;;  %v1463_v53 = vcvt.f32.s32 %v1462_v42  ;;  %vm1517_vm13 = vcmp.eq.s32.totalorder %v4263_v11, %v1354_v0 }
 0x65b   : > { %v5351_v16 = vsel %vm1517_vm13, -inf, %v5015_v47 }
 0x65c   : > { %v1466_v50 = vadd.s32 %v1465_v62, %v1463_v53  ;;  %1554 = vmax.xlane.f32.xlu0 %v5351_v16 }
 0x65d   : > { %v1336_v9 = vpop.xlane.xlu1 %1335 }
 0x65e   : > { %1509 = vst.msk [vmem:[%s4531_s5 + $0x68] sm:$0xff] %vm1495_vm2, %v1466_v50  ;;  %v1337_v2 = vcvt.f32.s32 %v1336_v9  ;;  %vm1525_vm14 = vcmp.eq.s32.totalorder %v4263_v11, %v1466_v50 }
 0x65f   : > { %v5359_v28 = vsel %vm1525_vm14, -inf, %v5023_v19 }
 0x660   : > { %v1340_v56 = vadd.s32 %v1339_v58, %v1337_v2  ;;  %1570 = vmax.xlane.f32.xlu0 %v5359_v28 }
 0x661   : > { %v1448_v47 = vpop.xlane.xlu1 %1447 }
 0x662   : > { %1500 = vst.msk [vmem:[%s4531_s5 + $0x20] sm:$0xff] %vm1495_vm2, %v1340_v56  ;;  %v1449_v6 = vcvt.f32.s32 %v1448_v47  ;;  %vm1516_vm15 = vcmp.eq.s32.totalorder %v4263_v11, %v1340_v56 }
 0x663   : > { %v5367_v26 = vsel %vm1516_vm15, -inf, %v5031_v22 }
 0x664   : > { %v1452_v44 = vadd.s32 %v1451_v38, %v1449_v6  ;;  %1552 = vmax.xlane.f32.xlu1 %v5367_v26 }
 0x665   : > { %v1378_v19 = vpop.xlane.xlu0 %1377 }
 0x666   : > { %1508 = vst.msk [vmem:[%s4531_s5 + $0x60] sm:$0xff] %vm1495_vm2, %v1452_v44  ;;  %v1379_v63 = vcvt.f32.s32 %v1378_v19  ;;  %vm1524_vm0 = vcmp.eq.s32.totalorder %v4263_v11, %v1452_v44 }
 0x667   : > { %v5375_v45 = vsel %vm1524_vm0, -inf, %v5039_v18 }
 0x668   : > { %v1382_v52 = vadd.s32 %v1381_v35, %v1379_v63  ;;  %1568 = vmax.xlane.f32.xlu1 %v5375_v45 }
 0x669   : > { %v1364_v22 = vpop.xlane.xlu1 %1363 }
 0x66a   : > { %1503 = vst.msk [vmem:[%s4531_s5 + $0x38] sm:$0xff] %vm1495_vm2, %v1382_v52  ;;  %v1365_v23 = vcvt.f32.s32 %v1364_v22  ;;  %vm1519_vm1 = vcmp.eq.s32.totalorder %v4263_v11, %v1382_v52 }
 0x66b   : > { %v5383_v46 = vsel %vm1519_vm1, -inf, %v5047_v41 }
 0x66c   : > { %v1368_v27 = vadd.s32 %v1367_v57, %v1365_v23  ;;  %1558 = vmax.xlane.f32.xlu0 %v5383_v46 }
 0x66d   : > { %v1476_v18 = vpop.xlane.xlu1 %1475 }
 0x66e   : > { %1502 = vst.msk [vmem:[%s4531_s5 + $0x30] sm:$0xff] %vm1495_vm2, %v1368_v27  ;;  %v1477_v59 = vcvt.f32.s32 %v1476_v18  ;;  %vm1518_vm3 = vcmp.eq.s32.totalorder %v4263_v11, %v1368_v27 }
 0x66f   : > { %v5391_v24 = vsel %vm1518_vm3, -inf, %v5055_v17 }
 0x670   : > { %v1480_v1 = vadd.s32 %v1479_v39, %v1477_v59  ;;  %1556 = vmax.xlane.f32.xlu1 %v5391_v24 }
 0x671   : > { %v1490_v41 = vpop.xlane.xlu0 %1489 }
 0x672   : > { %1510 = vst.msk [vmem:[%s4531_s5 + $0x70] sm:$0xff] %vm1495_vm2, %v1480_v1  ;;  %v1491_v55 = vcvt.f32.s32 %v1490_v41  ;;  %vm1526_vm5 = vcmp.eq.s32.totalorder %v4263_v11, %v1480_v1 }
 0x673   : > { %v5398_v20 = vsel %vm1526_vm5, -inf, %v5062_v51 }
 0x674   : > { %v1494_v8 = vadd.s32 %v1493_v43, %v1491_v55  ;;  %1572 = vmax.xlane.f32.xlu1 %v5398_v20 }
 0x676   : > { %1511 = vst.msk [vmem:[%s4531_s5 + $0x78] sm:$0xff] %vm1495_vm2, %v1494_v8  ;;  %vm1527_vm6 = vcmp.eq.s32.totalorder %v4263_v11, %v1494_v8 }
 0x677   : > { %v5405_v17 = vsel %vm1527_vm6, -inf, %v5069_v34 }
 0x678   : > { %1574 = vmax.xlane.f32.xlu0 %v5405_v17 }
 0x6c5   : > { %v1545_v15 = vpop.xlane.xlu1 %1544 }
 0x6c6   : > { %vm1576_vm4 = vcmp.eq.f32.partialorder %v5287_v48, %v1545_v15 }
 0x6c7   : > { %v5410_v30 = vsel %vm1576_vm4, %v4263_v11, 128 }
 0x6c8   : > { %v1609_v51 = vshra.s32 %v5410_v30, 16 }
 0x6c9   : > { %v1547_v13 = vpop.xlane.xlu0 %1546 }
 0x6ca   : > { %vm1577_vm7 = vcmp.eq.f32.partialorder %v5295_v33, %v1547_v13  ;;  %v5414_v29 = vcvt.s32.f32 %v1609_v51 }
 0x6cb   : > { %v5417_v31 = vsel %vm1577_vm7, %v4263_v11, 128 }
 0x6cc   : > { %v1623_v34 = vshra.s32 %v5417_v31, 16  ;;  %1612 = vmin.xlane.f32.xlu1 %v5414_v29 }
 0x6cd   : > { %v1549_v14 = vpop.xlane.xlu1 %1548 }
 0x6ce   : > { %vm1578_vm2 = vcmp.eq.f32.partialorder %v5303_v54, %v1549_v14  ;;  %v5422_v36 = vcvt.s32.f32 %v1623_v34 }
 0x6cf   : > { %v5425_v25 = vsel %vm1578_vm2, %v4263_v11, 128 }
 0x6d0   : > { %v1637_v37 = vshra.s32 %v5425_v25, 16  ;;  %1626 = vmin.xlane.f32.xlu0 %v5422_v36 }
 0x6d1   : > { %v1551_v60 = vpop.xlane.xlu0 %1550 }
 0x6d2   : > { %vm1579_vm8 = vcmp.eq.f32.partialorder %v5311_v61, %v1551_v60  ;;  %v5430_v0 = vcvt.s32.f32 %v1637_v37 }
 0x6d3   : > { %v5433_v42 = vsel %vm1579_vm8, %v4263_v11, 128 }
 0x6d4   : > { %v1651_v62 = vshra.s32 %v5433_v42, 16  ;;  %1640 = vmin.xlane.f32.xlu1 %v5430_v0 }
 0x6d5   : > { %v1561_v7 = vpop.xlane.xlu1 %1560 }
 0x6d6   : > { %vm1584_vm9 = vcmp.eq.f32.partialorder %v5319_v21, %v1561_v7  ;;  %v5438_v53 = vcvt.s32.f32 %v1651_v62 }
 0x6d7   : > { %v5441_v50 = vsel %vm1584_vm9, %v4263_v11, 128 }
 0x6d8   : > { %v1721_v9 = vshra.s32 %v5441_v50, 16  ;;  %1654 = vmin.xlane.f32.xlu0 %v5438_v53 }
 0x6d9   : > { %v1563_v58 = vpop.xlane.xlu0 %1562 }
 0x6da   : > { %vm1585_vm10 = vcmp.eq.f32.partialorder %v5327_v3, %v1563_v58  ;;  %v5446_v4 = vcvt.s32.f32 %v1721_v9 }
 0x6db   : > { %v5449_v2 = vsel %vm1585_vm10, %v4263_v11, 128 }
 0x6dc   : > { %v1735_v56 = vshra.s32 %v5449_v2, 16  ;;  %1724 = vmin.xlane.f32.xlu1 %v5446_v4 }
 0x6dd   : > { %v1565_v47 = vpop.xlane.xlu1 %1564 }
 0x6de   : > { %vm1586_vm11 = vcmp.eq.f32.partialorder %v5335_v5, %v1565_v47  ;;  %v5454_v38 = vcvt.s32.f32 %v1735_v56 }
 0x6df   : > { %v5457_v40 = vsel %vm1586_vm11, %v4263_v11, 128 }
 0x6e0   : > { %v1749_v6 = vshra.s32 %v5457_v40, 16  ;;  %1738 = vmin.xlane.f32.xlu0 %v5454_v38 }
 0x6e1   : > { %v1567_v44 = vpop.xlane.xlu0 %1566 }
 0x6e2   : > { %vm1587_vm12 = vcmp.eq.f32.partialorder %v5343_v12, %v1567_v44  ;;  %v5462_v19 = vcvt.s32.f32 %v1749_v6 }
 0x6e3   : > { %v5465_v35 = vsel %vm1587_vm12, %v4263_v11, 128 }
 0x6e4   : > { %v1763_v49 = vshra.s32 %v5465_v35, 16  ;;  %1752 = vmin.xlane.f32.xlu1 %v5462_v19 }
 0x6e5   : > { %v1555_v63 = vpop.xlane.xlu0 %1554 }
 0x6e6   : > { %vm1581_vm13 = vcmp.eq.f32.partialorder %v5351_v16, %v1555_v63  ;;  %v5470_v52 = vcvt.s32.f32 %v1763_v49 }
 0x6e7   : > { %v5473_v22 = vsel %vm1581_vm13, %v4263_v11, 128 }
 0x6e8   : > { %v1679_v57 = vshra.s32 %v5473_v22, 16  ;;  %1766 = vmin.xlane.f32.xlu0 %v5470_v52 }
 0x6e9   : > { %v1571_v32 = vpop.xlane.xlu0 %1570 }
 0x6ea   : > { %vm1589_vm14 = vcmp.eq.f32.partialorder %v5359_v28, %v1571_v32  ;;  %v5478_v23 = vcvt.s32.f32 %v1679_v57  ;;  %v1608_v57 = vand.u32 65535, %v5410_v30  ;;  %v1622_v32 = vand.u32 65535, %v5417_v31 }
 0x6eb   : > { %v5481_v27 = vsel %vm1589_vm14, %v4263_v11, 128  ;;  %v1650_v30 = vand.u32 65535, %v5433_v42  ;;  %v1734_v42 = vand.u32 65535, %v5449_v2  ;;  %v1762_v2 = vand.u32 65535, %v5465_v35 }
 0x6ec   : > { %v1791_v18 = vshra.s32 %v5481_v27, 16  ;;  %1682 = vmin.xlane.f32.xlu0 %v5478_v23  ;;  %v1790_v35 = vand.u32 65535, %v5481_v27 }
 0x6ed   : > { %v1553_v39 = vpop.xlane.xlu1 %1552 }
 0x6ee   : > { %vm1580_vm15 = vcmp.eq.f32.partialorder %v5367_v26, %v1553_v39  ;;  %v5486_v10 = vcvt.s32.f32 %v1791_v18  ;;  %v1610_v39 = vcvt.s32.f32 %v1608_v57  ;;  %v1736_v57 = vcvt.s32.f32 %v1734_v42 }
 0x6ef   : > { %v5489_v59 = vsel %vm1580_vm15, %v4263_v11, 128 }
 0x6f0   : > { %v1665_v1 = vshra.s32 %v5489_v59, 16  ;;  %1794 = vmin.xlane.f32.xlu0 %v5486_v10 }
 0x6f1   : > { %v1569_v41 = vpop.xlane.xlu1 %1568 }
 0x6f2   : > { %vm1588_vm0 = vcmp.eq.f32.partialorder %v5375_v45, %v1569_v41  ;;  %v5494_v43 = vcvt.s32.f32 %v1665_v1  ;;  %v1636_v41 = vand.u32 65535, %v5425_v25  ;;  %v1720_v25 = vand.u32 65535, %v5441_v50 }
 0x6f3   : > { %v5497_v55 = vsel %vm1588_vm0, %v4263_v11, 128  ;;  %v1748_v50 = vand.u32 65535, %v5457_v40  ;;  %v1678_v40 = vand.u32 65535, %v5473_v22  ;;  %v1664_v22 = vand.u32 65535, %v5489_v59 }
 0x6f4   : > { %v1777_v8 = vshra.s32 %v5497_v55, 16  ;;  %1668 = vmin.xlane.f32.xlu1 %v5494_v43  ;;  %v1776_v27 = vand.u32 65535, %v5497_v55 }
 0x6f5   : > { %v1559_v15 = vpop.xlane.xlu0 %1558 }
 0x6f6   : > { %vm1583_vm1 = vcmp.eq.f32.partialorder %v5383_v46, %v1559_v15  ;;  %v5502_v51 = vcvt.s32.f32 %v1777_v8  ;;  %v1624_v15 = vcvt.s32.f32 %v1622_v32 }
 0x6f7   : > { %v5505_v13 = vsel %vm1583_vm1, %v4263_v11, 128 }
 0x6f8   : > { %v1707_v34 = vshra.s32 %v5505_v13, 16  ;;  %1780 = vmin.xlane.f32.xlu1 %v5502_v51  ;;  %v1706_v59 = vand.u32 65535, %v5505_v13 }
 0x6f9   : > { %v1557_v14 = vpop.xlane.xlu1 %1556 }
 0x6fa   : > { %vm1582_vm3 = vcmp.eq.f32.partialorder %v5391_v24, %v1557_v14  ;;  %v5510_v37 = vcvt.s32.f32 %v1707_v34  ;;  %v1638_v14 = vcvt.s32.f32 %v1636_v41  ;;  %v1764_v41 = vcvt.s32.f32 %v1762_v2 }
 0x6fb   : > { %v5513_v60 = vsel %vm1582_vm3, %v4263_v11, 128 }
 0x6fc   : > { %v1693_v62 = vshra.s32 %v5513_v60, 16  ;;  %1710 = vmin.xlane.f32.xlu0 %v5510_v37  ;;  %v1692_v55 = vand.u32 65535, %v5513_v60 }
 0x6fd   : > { %v1573_v7 = vpop.xlane.xlu1 %1572 }
 0x6fe   : > { %vm1590_vm5 = vcmp.eq.f32.partialorder %v5398_v20, %v1573_v7  ;;  %v5518_v9 = vcvt.s32.f32 %v1693_v62  ;;  %v1652_v7 = vcvt.s32.f32 %v1650_v30 }
 0x6ff   : > { %v5521_v58 = vsel %vm1590_vm5, %v4263_v11, 128 }
 0x700   : > { %v1805_v56 = vshra.s32 %v5521_v58, 16  ;;  %1696 = vmin.xlane.f32.xlu1 %v5518_v9  ;;  %v1804_v13 = vand.u32 65535, %v5521_v58 }
 0x701   : > { %v1575_v47 = vpop.xlane.xlu0 %1574 }
 0x702   : > { %vm1591_vm6 = vcmp.eq.f32.partialorder %v5405_v17, %v1575_v47  ;;  %v5526_v6 = vcvt.s32.f32 %v1805_v56  ;;  %v1722_v47 = vcvt.s32.f32 %v1720_v25  ;;  %v1666_v25 = vcvt.s32.f32 %v1664_v22 }
 0x703   : > { %v5529_v44 = vsel %vm1591_vm6, %v4263_v11, 128 }
 0x704   : > { %v1819_v49 = vshra.s32 %v5529_v44, 16  ;;  %1808 = vmin.xlane.f32.xlu1 %v5526_v6  ;;  %v1818_v60 = vand.u32 65535, %v5529_v44 }
 0x706   : > { %v5533_v63 = vcvt.s32.f32 %v1819_v49  ;;  %v1820_v2 = vcvt.s32.f32 %v1818_v60 }
 0x708   : > { %1822 = vmin.xlane.f32.xlu0 %v5533_v63 }
 0x755   : > { %v5538_v18 = vpop.xlane.xlu1 %1612 }
 0x756   : > { %vm1614_vm4 = vcmp.eq.f32.partialorder %v5414_v29, %v5538_v18 }
 0x757   : > { %v1615_v1 = vsel %vm1614_vm4, %v1610_v39, inf  ;;  %v1750_v39 = vcvt.s32.f32 %v1748_v50  ;;  %v1694_v50 = vcvt.s32.f32 %v1692_v55  ;;  %vm1832_vm4 = vcmask 31768  }
 0x758   : > { %1616 = vmin.xlane.f32.xlu1 %v1615_v1 }
 0x759   : > { %v5543_v8 = vpop.xlane.xlu0 %1626 }
 0x75a   : > { %vm1628_vm7 = vcmp.eq.f32.partialorder %v5422_v36, %v5543_v8 }
 0x75b   : > { %v1629_v34 = vsel %vm1628_vm7, %v1624_v15, inf }
 0x75c   : > { %1630 = vmin.xlane.f32.xlu0 %v1629_v34  ;;  %v1680_v34 = vcvt.s32.f32 %v1678_v40  ;;  %v1633_v40 = vcvt.f32.s32 %v5543_v8 }
 0x75d   : > { %v5548_v31 = vpop.xlane.xlu1 %1640 }
 0x75e   : > { %vm1642_vm2 = vcmp.eq.f32.partialorder %v5430_v0, %v5548_v31 }
 0x75f   : > { %v1643_v29 = vsel %vm1642_vm2, %v1638_v14, inf  ;;  %v1792_v14 = vcvt.s32.f32 %v1790_v35  ;;  %v1634_v35 = vshll.u32 %v1633_v40, 16 }
 0x760   : > { %1644 = vmin.xlane.f32.xlu1 %v1643_v29 }
 0x761   : > { %v5553_v62 = vpop.xlane.xlu0 %1654 }
 0x762   : > { %vm1656_vm8 = vcmp.eq.f32.partialorder %v5438_v53, %v5553_v62 }
 0x763   : > { %v1657_v36 = vsel %vm1656_vm8, %v1652_v7, inf }
 0x764   : > { %1658 = vmin.xlane.f32.xlu0 %v1657_v36  ;;  %v1778_v36 = vcvt.s32.f32 %v1776_v27 }
 0x765   : > { %v5558_v56 = vpop.xlane.xlu1 %1724 }
 0x766   : > { %vm1726_vm9 = vcmp.eq.f32.partialorder %v5446_v4, %v5558_v56 }
 0x767   : > { %v1727_v0 = vsel %vm1726_vm9, %v1722_v47, inf  ;;  %v1708_v47 = vcvt.s32.f32 %v1706_v59 }
 0x768   : > { %1728 = vmin.xlane.f32.xlu1 %v1727_v0 }
 0x769   : > { %v5563_v49 = vpop.xlane.xlu0 %1738 }
 0x76a   : > { %vm1740_vm10 = vcmp.eq.f32.partialorder %v5454_v38, %v5563_v49  ;;  %v1745_v55 = vcvt.f32.s32 %v5563_v49 }
 0x76b   : > { %v1741_v53 = vsel %vm1740_vm10, %v1736_v57, inf }
 0x76c   : > { %1742 = vmin.xlane.f32.xlu0 %v1741_v53  ;;  %v1806_v53 = vcvt.s32.f32 %v1804_v13  ;;  %v1746_v13 = vshll.u32 %v1745_v55, 16 }
 0x76d   : > { %v5568_v32 = vpop.xlane.xlu1 %1752 }
 0x76e   : > { %vm1754_vm11 = vcmp.eq.f32.partialorder %v5462_v19, %v5568_v32 }
 0x76f   : > { %v1755_v4 = vsel %vm1754_vm11, %v1750_v39, inf  ;;  %v1619_v39 = vcvt.f32.s32 %v5538_v18 }
 0x770   : > { %1756 = vmin.xlane.f32.xlu1 %v1755_v4 }
 0x771   : > { %v5573_v1 = vpop.xlane.xlu0 %1766  ;;  %v1620_v4 = vshll.u32 %v1619_v39, 16 }
 0x772   : > { %vm1768_vm12 = vcmp.eq.f32.partialorder %v5470_v52, %v5573_v1 }
 0x773   : > { %v1769_v38 = vsel %vm1768_vm12, %v1764_v41, inf }
 0x774   : > { %1770 = vmin.xlane.f32.xlu0 %v1769_v38 }
 0x775   : > { %v5578_v15 = vpop.xlane.xlu0 %1682 }
 0x776   : > { %vm1684_vm13 = vcmp.eq.f32.partialorder %v5478_v23, %v5578_v15 }
 0x777   : > { %v1685_v19 = vsel %vm1684_vm13, %v1680_v34, inf  ;;  %v1647_v34 = vcvt.f32.s32 %v5548_v31 }
 0x778   : > { %1686 = vmin.xlane.f32.xlu0 %v1685_v19 }
 0x779   : > { %v5583_v30 = vpop.xlane.xlu0 %1794  ;;  %v1648_v22 = vshll.u32 %v1647_v34, 16 }
 0x77a   : > { %vm1796_vm14 = vcmp.eq.f32.partialorder %v5486_v10, %v5583_v30 }
 0x77b   : > { %v1797_v52 = vsel %vm1796_vm14, %v1792_v14, inf  ;;  %v1661_v14 = vcvt.f32.s32 %v5553_v62 }
 0x77c   : > { %1798 = vmin.xlane.f32.xlu0 %v1797_v52 }
 0x77d   : > { %v5588_v29 = vpop.xlane.xlu1 %1668 }
 0x77e   : > { %vm1670_vm15 = vcmp.eq.f32.partialorder %v5494_v43, %v5588_v29 }
 0x77f   : > { %v1671_v23 = vsel %vm1670_vm15, %v1666_v25, inf  ;;  %v1662_v25 = vshll.u32 %v1661_v14, 16 }
 0x780   : > { %1672 = vmin.xlane.f32.xlu1 %v1671_v23  ;;  %v1731_v23 = vcvt.f32.s32 %v5558_v56 }
 0x781   : > { %v5593_v7 = vpop.xlane.xlu1 %1780 }
 0x782   : > { %vm1782_vm0 = vcmp.eq.f32.partialorder %v5502_v51, %v5593_v7  ;;  %v1787_v14 = vcvt.f32.s32 %v5593_v7 }
 0x783   : > { %v1783_v10 = vsel %vm1782_vm0, %v1778_v36, inf }
 0x784   : > { %1784 = vmin.xlane.f32.xlu1 %v1783_v10  ;;  %v1732_v10 = vshll.u32 %v1731_v23, 16 }
 0x785   : > { %v5598_v42 = vpop.xlane.xlu0 %1710 }
 0x786   : > { %vm1712_vm1 = vcmp.eq.f32.partialorder %v5510_v37, %v5598_v42 }
 0x787   : > { %v1713_v43 = vsel %vm1712_vm1, %v1708_v47, inf }
 0x788   : > { %1714 = vmin.xlane.f32.xlu0 %v1713_v43 }
 0x789   : > { %v5603_v0 = vpop.xlane.xlu1 %1696 }
 0x78a   : > { %vm1698_vm3 = vcmp.eq.f32.partialorder %v5518_v9, %v5603_v0 }
 0x78b   : > { %v1699_v51 = vsel %vm1698_vm3, %v1694_v50, inf  ;;  %v1759_v50 = vcvt.f32.s32 %v5568_v32 }
 0x78c   : > { %1700 = vmin.xlane.f32.xlu1 %v1699_v51 }
 0x78d   : > { %v5608_v57 = vpop.xlane.xlu1 %1808 }
 0x78e   : > { %vm1810_vm5 = vcmp.eq.f32.partialorder %v5526_v6, %v5608_v57 }
 0x78f   : > { %v1811_v37 = vsel %vm1810_vm5, %v1806_v53, inf  ;;  %v1760_v53 = vshll.u32 %v1759_v50, 16 }
 0x790   : > { %1812 = vmin.xlane.f32.xlu1 %v1811_v37  ;;  %v1773_v37 = vcvt.f32.s32 %v5573_v1 }
 0x791   : > { %v5612_v58 = vpop.xlane.xlu0 %1822 }
 0x792   : > { %vm1824_vm6 = vcmp.eq.f32.partialorder %v5533_v63, %v5612_v58  ;;  %v1774_v39 = vshll.u32 %v1773_v37, 16 }
 0x793   : > { %v1825_v9 = vsel %vm1824_vm6, %v1820_v2, inf }
 0x794   : > { %1826 = vmin.xlane.f32.xlu0 %v1825_v9 }
 0x7e1   : > { %v1617_v44 = vpop.xlane.xlu1 %1616 }
 0x7e2   : > { %v1618_v41 = vcvt.f32.s32 %v1617_v44  ;;  %v1689_v44 = vcvt.f32.s32 %v5578_v15 }
 0x7e4   : > { %v1621_v6 = vadd.s32 %v1620_v4, %v1618_v41  ;;  %v1690_v41 = vshll.u32 %v1689_v44, 16 }
 0x7e5   : > { %v1631_v38 = vpop.xlane.xlu0 %1630 }
 0x7e6   : > { %1833 = vst.msk [vmem:[%s4531_s5] sm:$0xff] %vm1832_vm4, %v1621_v6  ;;  %v1632_v19 = vcvt.f32.s32 %v1631_v38  ;;  %vm1849_vm7 = vcmp.eq.s32.totalorder %v4263_v11, %v1621_v6  ;;  %v1801_v6 = vcvt.f32.s32 %v5583_v30 }
 0x7e7   : > { %v5623_v63 = vsel %vm1849_vm7, -inf, %v5287_v48 }
 0x7e8   : > { %v1635_v18 = vadd.s32 %v1634_v35, %v1632_v19  ;;  %1881 = vmax.xlane.f32.xlu1 %v5623_v63  ;;  %v1802_v34 = vshll.u32 %v1801_v6, 16  ;;  %v1675_v19 = vcvt.f32.s32 %v5588_v29 }
 0x7e9   : > { %v1645_v8 = vpop.xlane.xlu1 %1644 }
 0x7ea   : > { %1834 = vst.msk [vmem:[%s4531_s5 + $0x8] sm:$0xff] %vm1832_vm4, %v1635_v18  ;;  %v1646_v52 = vcvt.f32.s32 %v1645_v8  ;;  %vm1850_vm2 = vcmp.eq.s32.totalorder %v4263_v11, %v1635_v18 }
 0x7eb   : > { %v5631_v31 = vsel %vm1850_vm2, -inf, %v5295_v33 }
 0x7ec   : > { %v1649_v27 = vadd.s32 %v1648_v22, %v1646_v52  ;;  %1883 = vmax.xlane.f32.xlu0 %v5631_v31  ;;  %v1676_v22 = vshll.u32 %v1675_v19, 16 }
 0x7ed   : > { %v1659_v48 = vpop.xlane.xlu0 %1658 }
 0x7ee   : > { %1835 = vst.msk [vmem:[%s4531_s5 + $0x10] sm:$0xff] %vm1832_vm4, %v1649_v27  ;;  %v1660_v59 = vcvt.f32.s32 %v1659_v48  ;;  %vm1851_vm8 = vcmp.eq.s32.totalorder %v4263_v11, %v1649_v27  ;;  %v1788_v48 = vshll.u32 %v1787_v14, 16 }
 0x7ef   : > { %v5639_v62 = vsel %vm1851_vm8, -inf, %v5303_v54 }
 0x7f0   : > { %v1663_v36 = vadd.s32 %v1662_v25, %v1660_v59  ;;  %1885 = vmax.xlane.f32.xlu1 %v5639_v62  ;;  %v1717_v25 = vcvt.f32.s32 %v5598_v42 }
 0x7f1   : > { %v1729_v33 = vpop.xlane.xlu1 %1728 }
 0x7f2   : > { %1836 = vst.msk [vmem:[%s4531_s5 + $0x18] sm:$0xff] %vm1832_vm4, %v1663_v36  ;;  %v1730_v47 = vcvt.f32.s32 %v1729_v33  ;;  %vm1852_vm9 = vcmp.eq.s32.totalorder %v4263_v11, %v1663_v36  ;;  %v1718_v36 = vshll.u32 %v1717_v25, 16  ;;  %v1703_v33 = vcvt.f32.s32 %v5603_v0 }
 0x7f3   : > { %v5647_v56 = vsel %vm1852_vm9, -inf, %v5311_v61 }
 0x7f4   : > { %v1733_v43 = vadd.s32 %v1732_v10, %v1730_v47  ;;  %1887 = vmax.xlane.f32.xlu0 %v5647_v56  ;;  %v1704_v47 = vshll.u32 %v1703_v33, 16 }
 0x7f5   : > { %v1743_v54 = vpop.xlane.xlu0 %1742 }
 0x7f6   : > { %1841 = vst.msk [vmem:[%s4531_s5 + $0x40] sm:$0xff] %vm1832_vm4, %v1733_v43  ;;  %v1744_v51 = vcvt.f32.s32 %v1743_v54  ;;  %vm1857_vm10 = vcmp.eq.s32.totalorder %v4263_v11, %v1733_v43  ;;  %v1815_v43 = vcvt.f32.s32 %v5608_v57 }
 0x7f7   : > { %v5655_v49 = vsel %vm1857_vm10, -inf, %v5319_v21 }
 0x7f8   : > { %v1747_v60 = vadd.s32 %v1746_v13, %v1744_v51  ;;  %1897 = vmax.xlane.f32.xlu1 %v5655_v49  ;;  %v1816_v50 = vshll.u32 %v1815_v43, 16  ;;  %v1829_v51 = vcvt.f32.s32 %v5612_v58 }
 0x7f9   : > { %v1757_v61 = vpop.xlane.xlu1 %1756 }
 0x7fa   : > { %1842 = vst.msk [vmem:[%s4531_s5 + $0x48] sm:$0xff] %vm1832_vm4, %v1747_v60  ;;  %v1758_v2 = vcvt.f32.s32 %v1757_v61  ;;  %vm1858_vm11 = vcmp.eq.s32.totalorder %v4263_v11, %v1747_v60 }
 0x7fb   : > { %v5663_v32 = vsel %vm1858_vm11, -inf, %v5327_v3 }
 0x7fc   : > { %v1761_v9 = vadd.s32 %v1760_v53, %v1758_v2  ;;  %1899 = vmax.xlane.f32.xlu0 %v5663_v32  ;;  %v1830_v53 = vshll.u32 %v1829_v51, 16 }
 0x7fd   : > { %v1771_v21 = vpop.xlane.xlu0 %1770 }
 0x7fe   : > { %1843 = vst.msk [vmem:[%s4531_s5 + $0x50] sm:$0xff] %vm1832_vm4, %v1761_v9  ;;  %v1772_v4 = vcvt.f32.s32 %v1771_v21  ;;  %vm1859_vm12 = vcmp.eq.s32.totalorder %v4263_v11, %v1761_v9 }
 0x7ff   : > { %v5671_v1 = vsel %vm1859_vm12, -inf, %v5335_v5 }
 0x800   : > { %v1775_v40 = vadd.s32 %v1774_v39, %v1772_v4  ;;  %1901 = vmax.xlane.f32.xlu1 %v5671_v1 }
 0x801   : > { %v1687_v3 = vpop.xlane.xlu0 %1686 }
 0x802   : > { %1844 = vst.msk [vmem:[%s4531_s5 + $0x58] sm:$0xff] %vm1832_vm4, %v1775_v40  ;;  %v1688_v38 = vcvt.f32.s32 %v1687_v3  ;;  %vm1860_vm13 = vcmp.eq.s32.totalorder %v4263_v11, %v1775_v40 }
 0x803   : > { %v5679_v15 = vsel %vm1860_vm13, -inf, %v5343_v12 }
 0x804   : > { %v1691_v35 = vadd.s32 %v1690_v41, %v1688_v38  ;;  %1903 = vmax.xlane.f32.xlu0 %v5679_v15 }
 0x805   : > { %v1799_v5 = vpop.xlane.xlu0 %1798 }
 0x806   : > { %1838 = vst.msk [vmem:[%s4531_s5 + $0x28] sm:$0xff] %vm1832_vm4, %v1691_v35  ;;  %v1800_v18 = vcvt.f32.s32 %v1799_v5  ;;  %vm1854_vm14 = vcmp.eq.s32.totalorder %v4263_v11, %v1691_v35 }
 0x807   : > { %v5687_v30 = vsel %vm1854_vm14, -inf, %v5351_v16 }
 0x808   : > { %v1803_v8 = vadd.s32 %v1802_v34, %v1800_v18  ;;  %1891 = vmax.xlane.f32.xlu0 %v5687_v30 }
 0x809   : > { %v1673_v12 = vpop.xlane.xlu1 %1672 }
 0x80a   : > { %1846 = vst.msk [vmem:[%s4531_s5 + $0x68] sm:$0xff] %vm1832_vm4, %v1803_v8  ;;  %v1674_v52 = vcvt.f32.s32 %v1673_v12  ;;  %vm1862_vm15 = vcmp.eq.s32.totalorder %v4263_v11, %v1803_v8 }
 0x80b   : > { %v5695_v29 = vsel %vm1862_vm15, -inf, %v5359_v28 }
 0x80c   : > { %v1677_v27 = vadd.s32 %v1676_v22, %v1674_v52  ;;  %1907 = vmax.xlane.f32.xlu0 %v5695_v29 }
 0x80d   : > { %v1785_v16 = vpop.xlane.xlu1 %1784 }
 0x80e   : > { %1837 = vst.msk [vmem:[%s4531_s5 + $0x20] sm:$0xff] %vm1832_vm4, %v1677_v27  ;;  %v1786_v23 = vcvt.f32.s32 %v1785_v16  ;;  %vm1853_vm0 = vcmp.eq.s32.totalorder %v4263_v11, %v1677_v27 }
 0x80f   : > { %v5703_v7 = vsel %vm1853_vm0, -inf, %v5367_v26 }
 0x810   : > { %v1789_v59 = vadd.s32 %v1788_v48, %v1786_v23  ;;  %1889 = vmax.xlane.f32.xlu1 %v5703_v7 }
 0x811   : > { %v1715_v28 = vpop.xlane.xlu0 %1714 }
 0x812   : > { %1845 = vst.msk [vmem:[%s4531_s5 + $0x60] sm:$0xff] %vm1832_vm4, %v1789_v59  ;;  %v1716_v10 = vcvt.f32.s32 %v1715_v28  ;;  %vm1861_vm1 = vcmp.eq.s32.totalorder %v4263_v11, %v1789_v59 }
 0x813   : > { %v5711_v42 = vsel %vm1861_vm1, -inf, %v5375_v45 }
 0x814   : > { %v1719_v55 = vadd.s32 %v1718_v36, %v1716_v10  ;;  %1905 = vmax.xlane.f32.xlu1 %v5711_v42 }
 0x815   : > { %v1701_v26 = vpop.xlane.xlu1 %1700 }
 0x816   : > { %1840 = vst.msk [vmem:[%s4531_s5 + $0x38] sm:$0xff] %vm1832_vm4, %v1719_v55  ;;  %v1702_v54 = vcvt.f32.s32 %v1701_v26  ;;  %vm1856_vm3 = vcmp.eq.s32.totalorder %v4263_v11, %v1719_v55 }
 0x817   : > { %v5719_v0 = vsel %vm1856_vm3, -inf, %v5383_v46 }
 0x818   : > { %v1705_v13 = vadd.s32 %v1704_v47, %v1702_v54  ;;  %1895 = vmax.xlane.f32.xlu0 %v5719_v0 }
 0x819   : > { %v1813_v45 = vpop.xlane.xlu1 %1812 }
 0x81a   : > { %1839 = vst.msk [vmem:[%s4531_s5 + $0x30] sm:$0xff] %vm1832_vm4, %v1705_v13  ;;  %v1814_v57 = vcvt.f32.s32 %v1813_v45  ;;  %vm1855_vm5 = vcmp.eq.s32.totalorder %v4263_v11, %v1705_v13 }
 0x81b   : > { %v5727_v60 = vsel %vm1855_vm5, -inf, %v5391_v24 }
 0x81c   : > { %v1817_v61 = vadd.s32 %v1816_v50, %v1814_v57  ;;  %1893 = vmax.xlane.f32.xlu1 %v5727_v60 }
 0x81d   : > { %v1827_v46 = vpop.xlane.xlu0 %1826 }
 0x81e   : > { %1847 = vst.msk [vmem:[%s4531_s5 + $0x70] sm:$0xff] %vm1832_vm4, %v1817_v61  ;;  %v1828_v37 = vcvt.f32.s32 %v1827_v46  ;;  %vm1863_vm6 = vcmp.eq.s32.totalorder %v4263_v11, %v1817_v61 }
 0x81f   : > { %v5734_v58 = vsel %vm1863_vm6, -inf, %v5398_v20 }
 0x820   : > { %v1831_v2 = vadd.s32 %v1830_v53, %v1828_v37  ;;  %1909 = vmax.xlane.f32.xlu1 %v5734_v58 }
 0x822   : > { %1848 = vst.msk [vmem:[%s4531_s5 + $0x78] sm:$0xff] %vm1832_vm4, %v1831_v2  ;;  %vm1864_vm7 = vcmp.eq.s32.totalorder %v4263_v11, %v1831_v2 }
 0x823   : > { %v5741_v24 = vsel %vm1864_vm7, -inf, %v5405_v17 }
 0x824   : > { %1911 = vmax.xlane.f32.xlu0 %v5741_v24 }
 0x871   : > { %v1882_v9 = vpop.xlane.xlu1 %1881 }
 0x872   : > { %vm1913_vm2 = vcmp.eq.f32.partialorder %v5623_v63, %v1882_v9 }
 0x873   : > { %v5746_v21 = vsel %vm1913_vm2, %v4263_v11, 128 }
 0x874   : > { %v1946_v20 = vshra.s32 %v5746_v21, 16 }
 0x875   : > { %v1884_v39 = vpop.xlane.xlu0 %1883 }
 0x876   : > { %vm1914_vm8 = vcmp.eq.f32.partialorder %v5631_v31, %v1884_v39  ;;  %v5750_v44 = vcvt.s32.f32 %v1946_v20 }
 0x877   : > { %v5753_v4 = vsel %vm1914_vm8, %v4263_v11, 128 }
 0x878   : > { %v1960_v17 = vshra.s32 %v5753_v4, 16  ;;  %1949 = vmin.xlane.f32.xlu1 %v5750_v44 }
 0x879   : > { %v1886_v40 = vpop.xlane.xlu1 %1885 }
 0x87a   : > { %vm1915_vm4 = vcmp.eq.f32.partialorder %v5639_v62, %v1886_v40  ;;  %v5758_v3 = vcvt.s32.f32 %v1960_v17 }
 0x87b   : > { %v5761_v41 = vsel %vm1915_vm4, %v4263_v11, 128 }
 0x87c   : > { %v1974_v6 = vshra.s32 %v5761_v41, 16  ;;  %1963 = vmin.xlane.f32.xlu0 %v5758_v3 }
 0x87d   : > { %v1888_v38 = vpop.xlane.xlu0 %1887 }
 0x87e   : > { %vm1916_vm9 = vcmp.eq.f32.partialorder %v5647_v56, %v1888_v38  ;;  %v5766_v35 = vcvt.s32.f32 %v1974_v6 }
 0x87f   : > { %v5769_v5 = vsel %vm1916_vm9, %v4263_v11, 128 }
 0x880   : > { %v1988_v34 = vshra.s32 %v5769_v5, 16  ;;  %1977 = vmin.xlane.f32.xlu1 %v5766_v35 }
 0x881   : > { %v1898_v19 = vpop.xlane.xlu1 %1897 }
 0x882   : > { %vm1921_vm10 = vcmp.eq.f32.partialorder %v5655_v49, %v1898_v19  ;;  %v5774_v18 = vcvt.s32.f32 %v1988_v34 }
 0x883   : > { %v5777_v8 = vsel %vm1921_vm10, %v4263_v11, 128 }
 0x884   : > { %v2058_v12 = vshra.s32 %v5777_v8, 16  ;;  %1991 = vmin.xlane.f32.xlu0 %v5774_v18 }
 0x885   : > { %v1900_v22 = vpop.xlane.xlu0 %1899 }
 0x886   : > { %vm1922_vm11 = vcmp.eq.f32.partialorder %v5663_v32, %v1900_v22  ;;  %v5782_v14 = vcvt.s32.f32 %v2058_v12 }
 0x887   : > { %v5785_v52 = vsel %vm1922_vm11, %v4263_v11, 128 }
 0x888   : > { %v2072_v27 = vshra.s32 %v5785_v52, 16  ;;  %2061 = vmin.xlane.f32.xlu1 %v5782_v14 }
 0x889   : > { %v1902_v16 = vpop.xlane.xlu1 %1901 }
 0x88a   : > { %vm1923_vm12 = vcmp.eq.f32.partialorder %v5671_v1, %v1902_v16  ;;  %v5790_v48 = vcvt.s32.f32 %v2072_v27 }
 0x88b   : > { %v5793_v25 = vsel %vm1923_vm12, %v4263_v11, 128 }
 0x88c   : > { %v2086_v23 = vshra.s32 %v5793_v25, 16  ;;  %2075 = vmin.xlane.f32.xlu0 %v5790_v48 }
 0x88d   : > { %v1904_v59 = vpop.xlane.xlu0 %1903 }
 0x88e   : > { %vm1924_vm13 = vcmp.eq.f32.partialorder %v5679_v15, %v1904_v59  ;;  %v5798_v28 = vcvt.s32.f32 %v2086_v23 }
 0x88f   : > { %v5801_v36 = vsel %vm1924_vm13, %v4263_v11, 128 }
 0x890   : > { %v2100_v33 = vshra.s32 %v5801_v36, 16  ;;  %2089 = vmin.xlane.f32.xlu1 %v5798_v28 }
 0x891   : > { %v1892_v10 = vpop.xlane.xlu0 %1891 }
 0x892   : > { %vm1918_vm14 = vcmp.eq.f32.partialorder %v5687_v30, %v1892_v10  ;;  %v5806_v55 = vcvt.s32.f32 %v2100_v33 }
 0x893   : > { %v5809_v26 = vsel %vm1918_vm14, %v4263_v11, 128 }
 0x894   : > { %v2016_v47 = vshra.s32 %v5809_v26, 16  ;;  %2103 = vmin.xlane.f32.xlu0 %v5806_v55 }
 0x895   : > { %v1908_v43 = vpop.xlane.xlu0 %1907 }
 0x896   : > { %vm1926_vm15 = vcmp.eq.f32.partialorder %v5695_v29, %v1908_v43  ;;  %v5814_v54 = vcvt.s32.f32 %v2016_v47  ;;  %v1945_v47 = vand.u32 65535, %v5746_v21  ;;  %v1959_v43 = vand.u32 65535, %v5753_v4 }
 0x897   : > { %v5817_v13 = vsel %vm1926_vm15, %v4263_v11, 128  ;;  %v1987_v21 = vand.u32 65535, %v5769_v5  ;;  %v2071_v5 = vand.u32 65535, %v5785_v52  ;;  %v2099_v52 = vand.u32 65535, %v5801_v36 }
 0x898   : > { %v2128_v45 = vshra.s32 %v5817_v13, 16  ;;  %2019 = vmin.xlane.f32.xlu0 %v5814_v54  ;;  %v2127_v36 = vand.u32 65535, %v5817_v13 }
 0x899   : > { %v1890_v50 = vpop.xlane.xlu1 %1889 }
 0x89a   : > { %vm1917_vm0 = vcmp.eq.f32.partialorder %v5703_v7, %v1890_v50  ;;  %v5822_v51 = vcvt.s32.f32 %v2128_v45  ;;  %v1947_v50 = vcvt.s32.f32 %v1945_v47  ;;  %v2073_v47 = vcvt.s32.f32 %v2071_v5 }
 0x89b   : > { %v5825_v57 = vsel %vm1917_vm0, %v4263_v11, 128 }
 0x89c   : > { %v2002_v61 = vshra.s32 %v5825_v57, 16  ;;  %2131 = vmin.xlane.f32.xlu0 %v5822_v51 }
 0x89d   : > { %v1906_v46 = vpop.xlane.xlu1 %1905 }
 0x89e   : > { %vm1925_vm1 = vcmp.eq.f32.partialorder %v5711_v42, %v1906_v46  ;;  %v5830_v53 = vcvt.s32.f32 %v2002_v61  ;;  %v1973_v46 = vand.u32 65535, %v5761_v41  ;;  %v2057_v41 = vand.u32 65535, %v5777_v8 }
 0x89f   : > { %v5833_v37 = vsel %vm1925_vm1, %v4263_v11, 128  ;;  %v2085_v8 = vand.u32 65535, %v5793_v25  ;;  %v2015_v25 = vand.u32 65535, %v5809_v26  ;;  %v2001_v26 = vand.u32 65535, %v5825_v57 }
 0x8a0   : > { %v2114_v2 = vshra.s32 %v5833_v37, 16  ;;  %2005 = vmin.xlane.f32.xlu1 %v5830_v53  ;;  %v2113_v13 = vand.u32 65535, %v5833_v37 }
 0x8a1   : > { %v1896_v9 = vpop.xlane.xlu0 %1895 }
 0x8a2   : > { %vm1920_vm3 = vcmp.eq.f32.partialorder %v5719_v0, %v1896_v9  ;;  %v5838_v20 = vcvt.s32.f32 %v2114_v2  ;;  %v1961_v9 = vcvt.s32.f32 %v1959_v43 }
 0x8a3   : > { %v5841_v39 = vsel %vm1920_vm3, %v4263_v11, 128 }
 0x8a4   : > { %v2044_v17 = vshra.s32 %v5841_v39, 16  ;;  %2117 = vmin.xlane.f32.xlu1 %v5838_v20  ;;  %v2043_v57 = vand.u32 65535, %v5841_v39 }
 0x8a5   : > { %v1894_v40 = vpop.xlane.xlu1 %1893 }
 0x8a6   : > { %vm1919_vm5 = vcmp.eq.f32.partialorder %v5727_v60, %v1894_v40  ;;  %v5846_v6 = vcvt.s32.f32 %v2044_v17  ;;  %v1975_v40 = vcvt.s32.f32 %v1973_v46  ;;  %v2101_v46 = vcvt.s32.f32 %v2099_v52 }
 0x8a7   : > { %v5849_v38 = vsel %vm1919_vm5, %v4263_v11, 128 }
 0x8a8   : > { %v2030_v34 = vshra.s32 %v5849_v38, 16  ;;  %2047 = vmin.xlane.f32.xlu0 %v5846_v6  ;;  %v2029_v37 = vand.u32 65535, %v5849_v38 }
 0x8a9   : > { %v1910_v19 = vpop.xlane.xlu1 %1909 }
 0x8aa   : > { %vm1927_vm6 = vcmp.eq.f32.partialorder %v5734_v58, %v1910_v19  ;;  %v5854_v12 = vcvt.s32.f32 %v2030_v34  ;;  %v1989_v19 = vcvt.s32.f32 %v1987_v21 }
 0x8ab   : > { %v5857_v22 = vsel %vm1927_vm6, %v4263_v11, 128 }
 0x8ac   : > { %v2142_v27 = vshra.s32 %v5857_v22, 16  ;;  %2033 = vmin.xlane.f32.xlu1 %v5854_v12  ;;  %v2141_v39 = vand.u32 65535, %v5857_v22 }
 0x8ad   : > { %v1912_v16 = vpop.xlane.xlu0 %1911 }
 0x8ae   : > { %vm1928_vm7 = vcmp.eq.f32.partialorder %v5741_v24, %v1912_v16  ;;  %v5862_v23 = vcvt.s32.f32 %v2142_v27  ;;  %v2059_v16 = vcvt.s32.f32 %v2057_v41  ;;  %v2003_v41 = vcvt.s32.f32 %v2001_v26 }
 0x8af   : > { %v5865_v59 = vsel %vm1928_vm7, %v4263_v11, 128 }
 0x8b0   : > { %v2156_v33 = vshra.s32 %v5865_v59, 16  ;;  %2145 = vmin.xlane.f32.xlu1 %v5862_v23  ;;  %v2155_v38 = vand.u32 65535, %v5865_v59 }
 0x8b2   : > { %v5869_v10 = vcvt.s32.f32 %v2156_v33  ;;  %v2157_v52 = vcvt.s32.f32 %v2155_v38 }
 0x8b4   : > { %2159 = vmin.xlane.f32.xlu0 %v5869_v10 }
 0x901   : > { %v5874_v45 = vpop.xlane.xlu1 %1949 }
 0x902   : > { %vm1951_vm2 = vcmp.eq.f32.partialorder %v5750_v44, %v5874_v45 }
 0x903   : > { %v1952_v61 = vsel %vm1951_vm2, %v1947_v50, inf  ;;  %v2087_v50 = vcvt.s32.f32 %v2085_v8  ;;  %v2031_v8 = vcvt.s32.f32 %v2029_v37  ;;  %vm2169_vm2 = vcmask 39968  }
 0x904   : > { %1953 = vmin.xlane.f32.xlu1 %v1952_v61 }
 0x905   : > { %v5879_v2 = vpop.xlane.xlu0 %1963 }
 0x906   : > { %vm1965_vm8 = vcmp.eq.f32.partialorder %v5758_v3, %v5879_v2 }
 0x907   : > { %v1966_v17 = vsel %vm1965_vm8, %v1961_v9, inf }
 0x908   : > { %1967 = vmin.xlane.f32.xlu0 %v1966_v17  ;;  %v2017_v17 = vcvt.s32.f32 %v2015_v25  ;;  %v1970_v25 = vcvt.f32.s32 %v5879_v2 }
 0x909   : > { %v5884_v4 = vpop.xlane.xlu1 %1977 }
 0x90a   : > { %vm1979_vm4 = vcmp.eq.f32.partialorder %v5766_v35, %v5884_v4 }
 0x90b   : > { %v1980_v44 = vsel %vm1979_vm4, %v1975_v40, inf  ;;  %v2129_v40 = vcvt.s32.f32 %v2127_v36  ;;  %v1971_v36 = vshll.u32 %v1970_v25, 16 }
 0x90c   : > { %1981 = vmin.xlane.f32.xlu1 %v1980_v44 }
 0x90d   : > { %v5889_v34 = vpop.xlane.xlu0 %1991 }
 0x90e   : > { %vm1993_vm9 = vcmp.eq.f32.partialorder %v5774_v18, %v5889_v34 }
 0x90f   : > { %v1994_v3 = vsel %vm1993_vm9, %v1989_v19, inf }
 0x910   : > { %1995 = vmin.xlane.f32.xlu0 %v1994_v3  ;;  %v2115_v3 = vcvt.s32.f32 %v2113_v13 }
 0x911   : > { %v5894_v27 = vpop.xlane.xlu1 %2061 }
 0x912   : > { %vm2063_vm10 = vcmp.eq.f32.partialorder %v5782_v14, %v5894_v27 }
 0x913   : > { %v2064_v35 = vsel %vm2063_vm10, %v2059_v16, inf  ;;  %v2045_v16 = vcvt.s32.f32 %v2043_v57 }
 0x914   : > { %2065 = vmin.xlane.f32.xlu1 %v2064_v35 }
 0x915   : > { %v5899_v33 = vpop.xlane.xlu0 %2075 }
 0x916   : > { %vm2077_vm11 = vcmp.eq.f32.partialorder %v5790_v48, %v5899_v33  ;;  %v2082_v37 = vcvt.f32.s32 %v5899_v33 }
 0x917   : > { %v2078_v18 = vsel %vm2077_vm11, %v2073_v47, inf }
 0x918   : > { %2079 = vmin.xlane.f32.xlu0 %v2078_v18  ;;  %v2143_v18 = vcvt.s32.f32 %v2141_v39  ;;  %v2083_v39 = vshll.u32 %v2082_v37, 16 }
 0x919   : > { %v5904_v43 = vpop.xlane.xlu1 %2089 }
 0x91a   : > { %vm2091_vm12 = vcmp.eq.f32.partialorder %v5798_v28, %v5904_v43 }
 0x91b   : > { %v2092_v14 = vsel %vm2091_vm12, %v2087_v50, inf  ;;  %v1956_v50 = vcvt.f32.s32 %v5874_v45 }
 0x91c   : > { %2093 = vmin.xlane.f32.xlu1 %v2092_v14 }
 0x91d   : > { %v5909_v61 = vpop.xlane.xlu0 %2103  ;;  %v1957_v14 = vshll.u32 %v1956_v50, 16 }
 0x91e   : > { %vm2105_vm13 = vcmp.eq.f32.partialorder %v5806_v55, %v5909_v61 }
 0x91f   : > { %v2106_v48 = vsel %vm2105_vm13, %v2101_v46, inf }
 0x920   : > { %2107 = vmin.xlane.f32.xlu0 %v2106_v48 }
 0x921   : > { %v5914_v9 = vpop.xlane.xlu0 %2019 }
 0x922   : > { %vm2021_vm14 = vcmp.eq.f32.partialorder %v5814_v54, %v5914_v9 }
 0x923   : > { %v2022_v28 = vsel %vm2021_vm14, %v2017_v17, inf  ;;  %v1984_v17 = vcvt.f32.s32 %v5884_v4 }
 0x924   : > { %2023 = vmin.xlane.f32.xlu0 %v2022_v28 }
 0x925   : > { %v5919_v21 = vpop.xlane.xlu0 %2131  ;;  %v1985_v26 = vshll.u32 %v1984_v17, 16 }
 0x926   : > { %vm2133_vm15 = vcmp.eq.f32.partialorder %v5822_v51, %v5919_v21 }
 0x927   : > { %v2134_v55 = vsel %vm2133_vm15, %v2129_v40, inf  ;;  %v1998_v40 = vcvt.f32.s32 %v5889_v34 }
 0x928   : > { %2135 = vmin.xlane.f32.xlu0 %v2134_v55 }
 0x929   : > { %v5924_v44 = vpop.xlane.xlu1 %2005 }
 0x92a   : > { %vm2007_vm0 = vcmp.eq.f32.partialorder %v5830_v53, %v5924_v44 }
 0x92b   : > { %v2008_v54 = vsel %vm2007_vm0, %v2003_v41, inf  ;;  %v1999_v41 = vshll.u32 %v1998_v40, 16 }
 0x92c   : > { %2009 = vmin.xlane.f32.xlu1 %v2008_v54  ;;  %v2068_v54 = vcvt.f32.s32 %v5894_v27 }
 0x92d   : > { %v5929_v19 = vpop.xlane.xlu1 %2117 }
 0x92e   : > { %vm2119_vm1 = vcmp.eq.f32.partialorder %v5838_v20, %v5929_v19  ;;  %v2124_v40 = vcvt.f32.s32 %v5929_v19 }
 0x92f   : > { %v2120_v51 = vsel %vm2119_vm1, %v2115_v3, inf }
 0x930   : > { %2121 = vmin.xlane.f32.xlu1 %v2120_v51  ;;  %v2069_v51 = vshll.u32 %v2068_v54, 16 }
 0x931   : > { %v5934_v5 = vpop.xlane.xlu0 %2047 }
 0x932   : > { %vm2049_vm3 = vcmp.eq.f32.partialorder %v5846_v6, %v5934_v5 }
 0x933   : > { %v2050_v53 = vsel %vm2049_vm3, %v2045_v16, inf }
 0x934   : > { %2051 = vmin.xlane.f32.xlu0 %v2050_v53 }
 0x935   : > { %v5939_v35 = vpop.xlane.xlu1 %2033 }
 0x936   : > { %vm2035_vm5 = vcmp.eq.f32.partialorder %v5854_v12, %v5939_v35 }
 0x937   : > { %v2036_v20 = vsel %vm2035_vm5, %v2031_v8, inf  ;;  %v2096_v8 = vcvt.f32.s32 %v5904_v43 }
 0x938   : > { %2037 = vmin.xlane.f32.xlu1 %v2036_v20 }
 0x939   : > { %v5944_v47 = vpop.xlane.xlu1 %2145 }
 0x93a   : > { %vm2147_vm6 = vcmp.eq.f32.partialorder %v5862_v23, %v5944_v47 }
 0x93b   : > { %v2148_v6 = vsel %vm2147_vm6, %v2143_v18, inf  ;;  %v2097_v18 = vshll.u32 %v2096_v8, 16 }
 0x93c   : > { %2149 = vmin.xlane.f32.xlu1 %v2148_v6  ;;  %v2110_v6 = vcvt.f32.s32 %v5909_v61 }
 0x93d   : > { %v5948_v22 = vpop.xlane.xlu0 %2159 }
 0x93e   : > { %vm2161_vm7 = vcmp.eq.f32.partialorder %v5869_v10, %v5948_v22  ;;  %v2111_v50 = vshll.u32 %v2110_v6, 16 }
 0x93f   : > { %v2162_v12 = vsel %vm2161_vm7, %v2157_v52, inf }
 0x940   : > { %2163 = vmin.xlane.f32.xlu0 %v2162_v12 }
 0x98d   : > { %v1954_v59 = vpop.xlane.xlu1 %1953 }
 0x98e   : > { %v1955_v46 = vcvt.f32.s32 %v1954_v59  ;;  %v2026_v59 = vcvt.f32.s32 %v5914_v9 }
 0x990   : > { %v1958_v23 = vadd.s32 %v1957_v14, %v1955_v46  ;;  %v2027_v46 = vshll.u32 %v2026_v59, 16 }
 0x991   : > { %v1968_v48 = vpop.xlane.xlu0 %1967 }
 0x992   : > { %2170 = vst.msk [vmem:[%s4531_s5] sm:$0xff] %vm2169_vm2, %v1958_v23  ;;  %v1969_v28 = vcvt.f32.s32 %v1968_v48  ;;  %vm2186_vm8 = vcmp.eq.s32.totalorder %v4263_v11, %v1958_v23  ;;  %v2138_v23 = vcvt.f32.s32 %v5919_v21 }
 0x993   : > { %v5959_v10 = vsel %vm2186_vm8, -inf, %v5623_v63 }
 0x994   : > { %v1972_v45 = vadd.s32 %v1971_v36, %v1969_v28  ;;  %2218 = vmax.xlane.f32.xlu1 %v5959_v10  ;;  %v2139_v17 = vshll.u32 %v2138_v23, 16  ;;  %v2012_v28 = vcvt.f32.s32 %v5924_v44 }
 0x995   : > { %v1982_v2 = vpop.xlane.xlu1 %1981 }
 0x996   : > { %2171 = vst.msk [vmem:[%s4531_s5 + $0x8] sm:$0xff] %vm2169_vm2, %v1972_v45  ;;  %v1983_v55 = vcvt.f32.s32 %v1982_v2  ;;  %vm2187_vm4 = vcmp.eq.s32.totalorder %v4263_v11, %v1972_v45 }
 0x997   : > { %v5967_v4 = vsel %vm2187_vm4, -inf, %v5631_v31 }
 0x998   : > { %v1986_v13 = vadd.s32 %v1985_v26, %v1983_v55  ;;  %2220 = vmax.xlane.f32.xlu0 %v5967_v4  ;;  %v2013_v26 = vshll.u32 %v2012_v28, 16 }
 0x999   : > { %v1996_v63 = vpop.xlane.xlu0 %1995 }
 0x99a   : > { %2172 = vst.msk [vmem:[%s4531_s5 + $0x10] sm:$0xff] %vm2169_vm2, %v1986_v13  ;;  %v1997_v57 = vcvt.f32.s32 %v1996_v63  ;;  %vm2188_vm9 = vcmp.eq.s32.totalorder %v4263_v11, %v1986_v13  ;;  %v2125_v63 = vshll.u32 %v2124_v40, 16 }
 0x99b   : > { %v5975_v34 = vsel %vm2188_vm9, -inf, %v5639_v62 }
 0x99c   : > { %v2000_v3 = vadd.s32 %v1999_v41, %v1997_v57  ;;  %2222 = vmax.xlane.f32.xlu1 %v5975_v34  ;;  %v2054_v41 = vcvt.f32.s32 %v5934_v5 }
 0x99d   : > { %v2066_v31 = vpop.xlane.xlu1 %2065 }
 0x99e   : > { %2173 = vst.msk [vmem:[%s4531_s5 + $0x18] sm:$0xff] %vm2169_vm2, %v2000_v3  ;;  %v2067_v16 = vcvt.f32.s32 %v2066_v31  ;;  %vm2189_vm10 = vcmp.eq.s32.totalorder %v4263_v11, %v2000_v3  ;;  %v2055_v3 = vshll.u32 %v2054_v41, 16  ;;  %v2040_v31 = vcvt.f32.s32 %v5939_v35 }
 0x99f   : > { %v5983_v27 = vsel %vm2189_vm10, -inf, %v5647_v56 }
 0x9a0   : > { %v2070_v53 = vadd.s32 %v2069_v51, %v2067_v16  ;;  %2224 = vmax.xlane.f32.xlu0 %v5983_v27  ;;  %v2041_v16 = vshll.u32 %v2040_v31, 16 }
 0x9a1   : > { %v2080_v62 = vpop.xlane.xlu0 %2079 }
 0x9a2   : > { %2178 = vst.msk [vmem:[%s4531_s5 + $0x40] sm:$0xff] %vm2169_vm2, %v2070_v53  ;;  %v2081_v20 = vcvt.f32.s32 %v2080_v62  ;;  %vm2194_vm11 = vcmp.eq.s32.totalorder %v4263_v11, %v2070_v53  ;;  %v2152_v53 = vcvt.f32.s32 %v5944_v47 }
 0x9a3   : > { %v5991_v33 = vsel %vm2194_vm11, -inf, %v5655_v49 }
 0x9a4   : > { %v2084_v38 = vadd.s32 %v2083_v39, %v2081_v20  ;;  %2234 = vmax.xlane.f32.xlu1 %v5991_v33  ;;  %v2153_v8 = vshll.u32 %v2152_v53, 16  ;;  %v2166_v20 = vcvt.f32.s32 %v5948_v22 }
 0x9a5   : > { %v2094_v56 = vpop.xlane.xlu1 %2093 }
 0x9a6   : > { %2179 = vst.msk [vmem:[%s4531_s5 + $0x48] sm:$0xff] %vm2169_vm2, %v2084_v38  ;;  %v2095_v52 = vcvt.f32.s32 %v2094_v56  ;;  %vm2195_vm12 = vcmp.eq.s32.totalorder %v4263_v11, %v2084_v38 }
 0x9a7   : > { %v5999_v43 = vsel %vm2195_vm12, -inf, %v5663_v32 }
 0x9a8   : > { %v2098_v12 = vadd.s32 %v2097_v18, %v2095_v52  ;;  %2236 = vmax.xlane.f32.xlu0 %v5999_v43  ;;  %v2167_v18 = vshll.u32 %v2166_v20, 16 }
 0x9a9   : > { %v2108_v49 = vpop.xlane.xlu0 %2107 }
 0x9aa   : > { %2180 = vst.msk [vmem:[%s4531_s5 + $0x50] sm:$0xff] %vm2169_vm2, %v2098_v12  ;;  %v2109_v14 = vcvt.f32.s32 %v2108_v49  ;;  %vm2196_vm13 = vcmp.eq.s32.totalorder %v4263_v11, %v2098_v12 }
 0x9ab   : > { %v6007_v61 = vsel %vm2196_vm13, -inf, %v5671_v1 }
 0x9ac   : > { %v2112_v25 = vadd.s32 %v2111_v50, %v2109_v14  ;;  %2238 = vmax.xlane.f32.xlu1 %v6007_v61 }
 0x9ad   : > { %v2024_v32 = vpop.xlane.xlu0 %2023 }
 0x9ae   : > { %2181 = vst.msk [vmem:[%s4531_s5 + $0x58] sm:$0xff] %vm2169_vm2, %v2112_v25  ;;  %v2025_v48 = vcvt.f32.s32 %v2024_v32  ;;  %vm2197_vm14 = vcmp.eq.s32.totalorder %v4263_v11, %v2112_v25 }
 0x9af   : > { %v6015_v9 = vsel %vm2197_vm14, -inf, %v5679_v15 }
 0x9b0   : > { %v2028_v36 = vadd.s32 %v2027_v46, %v2025_v48  ;;  %2240 = vmax.xlane.f32.xlu0 %v6015_v9 }
 0x9b1   : > { %v2136_v1 = vpop.xlane.xlu0 %2135 }
 0x9b2   : > { %2175 = vst.msk [vmem:[%s4531_s5 + $0x28] sm:$0xff] %vm2169_vm2, %v2028_v36  ;;  %v2137_v45 = vcvt.f32.s32 %v2136_v1  ;;  %vm2191_vm15 = vcmp.eq.s32.totalorder %v4263_v11, %v2028_v36 }
 0x9b3   : > { %v6023_v21 = vsel %vm2191_vm15, -inf, %v5687_v30 }
 0x9b4   : > { %v2140_v2 = vadd.s32 %v2139_v17, %v2137_v45  ;;  %2228 = vmax.xlane.f32.xlu0 %v6023_v21 }
 0x9b5   : > { %v2010_v15 = vpop.xlane.xlu1 %2009 }
 0x9b6   : > { %2183 = vst.msk [vmem:[%s4531_s5 + $0x68] sm:$0xff] %vm2169_vm2, %v2140_v2  ;;  %v2011_v55 = vcvt.f32.s32 %v2010_v15  ;;  %vm2199_vm0 = vcmp.eq.s32.totalorder %v4263_v11, %v2140_v2 }
 0x9b7   : > { %v6031_v44 = vsel %vm2199_vm0, -inf, %v5695_v29 }
 0x9b8   : > { %v2014_v13 = vadd.s32 %v2013_v26, %v2011_v55  ;;  %2244 = vmax.xlane.f32.xlu0 %v6031_v44 }
 0x9b9   : > { %v2122_v30 = vpop.xlane.xlu1 %2121 }
 0x9ba   : > { %2174 = vst.msk [vmem:[%s4531_s5 + $0x20] sm:$0xff] %vm2169_vm2, %v2014_v13  ;;  %v2123_v54 = vcvt.f32.s32 %v2122_v30  ;;  %vm2190_vm1 = vcmp.eq.s32.totalorder %v4263_v11, %v2014_v13 }
 0x9bb   : > { %v6039_v19 = vsel %vm2190_vm1, -inf, %v5703_v7 }
 0x9bc   : > { %v2126_v57 = vadd.s32 %v2125_v63, %v2123_v54  ;;  %2226 = vmax.xlane.f32.xlu1 %v6039_v19 }
 0x9bd   : > { %v2052_v29 = vpop.xlane.xlu0 %2051 }
 0x9be   : > { %2182 = vst.msk [vmem:[%s4531_s5 + $0x60] sm:$0xff] %vm2169_vm2, %v2126_v57  ;;  %v2053_v51 = vcvt.f32.s32 %v2052_v29  ;;  %vm2198_vm3 = vcmp.eq.s32.totalorder %v4263_v11, %v2126_v57 }
 0x9bf   : > { %v6047_v5 = vsel %vm2198_vm3, -inf, %v5711_v42 }
 0x9c0   : > { %v2056_v37 = vadd.s32 %v2055_v3, %v2053_v51  ;;  %2242 = vmax.xlane.f32.xlu1 %v6047_v5 }
 0x9c1   : > { %v2038_v7 = vpop.xlane.xlu1 %2037 }
 0x9c2   : > { %2177 = vst.msk [vmem:[%s4531_s5 + $0x38] sm:$0xff] %vm2169_vm2, %v2056_v37  ;;  %v2039_v62 = vcvt.f32.s32 %v2038_v7  ;;  %vm2193_vm5 = vcmp.eq.s32.totalorder %v4263_v11, %v2056_v37 }
 0x9c3   : > { %v6055_v35 = vsel %vm2193_vm5, -inf, %v5719_v0 }
 0x9c4   : > { %v2042_v39 = vadd.s32 %v2041_v16, %v2039_v62  ;;  %2232 = vmax.xlane.f32.xlu0 %v6055_v35 }
 0x9c5   : > { %v2150_v42 = vpop.xlane.xlu1 %2149 }
 0x9c6   : > { %2176 = vst.msk [vmem:[%s4531_s5 + $0x30] sm:$0xff] %vm2169_vm2, %v2042_v39  ;;  %v2151_v47 = vcvt.f32.s32 %v2150_v42  ;;  %vm2192_vm6 = vcmp.eq.s32.totalorder %v4263_v11, %v2042_v39 }
 0x9c7   : > { %v6063_v38 = vsel %vm2192_vm6, -inf, %v5727_v60 }
 0x9c8   : > { %v2154_v56 = vadd.s32 %v2153_v8, %v2151_v47  ;;  %2230 = vmax.xlane.f32.xlu1 %v6063_v38 }
 0x9c9   : > { %v2164_v0 = vpop.xlane.xlu0 %2163 }
 0x9ca   : > { %2184 = vst.msk [vmem:[%s4531_s5 + $0x70] sm:$0xff] %vm2169_vm2, %v2154_v56  ;;  %v2165_v6 = vcvt.f32.s32 %v2164_v0  ;;  %vm2200_vm7 = vcmp.eq.s32.totalorder %v4263_v11, %v2154_v56 }
 0x9cb   : > { %v6070_v22 = vsel %vm2200_vm7, -inf, %v5734_v58 }
 0x9cc   : > { %v2168_v52 = vadd.s32 %v2167_v18, %v2165_v6  ;;  %2246 = vmax.xlane.f32.xlu1 %v6070_v22 }
 0x9ce   : > { %2185 = vst.msk [vmem:[%s4531_s5 + $0x78] sm:$0xff] %vm2169_vm2, %v2168_v52  ;;  %vm2201_vm8 = vcmp.eq.s32.totalorder %v4263_v11, %v2168_v52 }
 0x9cf   : > { %v6077_v60 = vsel %vm2201_vm8, -inf, %v5741_v24 }
 0x9d0   : > { %2248 = vmax.xlane.f32.xlu0 %v6077_v60 }
 0xa1d   : > { %v2219_v12 = vpop.xlane.xlu1 %2218 }
 0xa1e   : > { %vm2250_vm4 = vcmp.eq.f32.partialorder %v5959_v10, %v2219_v12 }
 0xa1f   : > { %v6082_v49 = vsel %vm2250_vm4, %v4263_v11, 128 }
 0xa20   : > { %v2283_v58 = vshra.s32 %v6082_v49, 16 }
 0xa21   : > { %v2221_v50 = vpop.xlane.xlu0 %2220 }
 0xa22   : > { %vm2251_vm9 = vcmp.eq.f32.partialorder %v5967_v4, %v2221_v50  ;;  %v6086_v59 = vcvt.s32.f32 %v2283_v58 }
 0xa23   : > { %v6089_v14 = vsel %vm2251_vm9, %v4263_v11, 128 }
 0xa24   : > { %v2297_v24 = vshra.s32 %v6089_v14, 16  ;;  %2286 = vmin.xlane.f32.xlu1 %v6086_v59 }
 0xa25   : > { %v2223_v25 = vpop.xlane.xlu1 %2222 }
 0xa26   : > { %vm2252_vm2 = vcmp.eq.f32.partialorder %v5975_v34, %v2223_v25  ;;  %v6094_v32 = vcvt.s32.f32 %v2297_v24 }
 0xa27   : > { %v6097_v46 = vsel %vm2252_vm2, %v4263_v11, 128 }
 0xa28   : > { %v2311_v23 = vshra.s32 %v6097_v46, 16  ;;  %2300 = vmin.xlane.f32.xlu0 %v6094_v32 }
 0xa29   : > { %v2225_v48 = vpop.xlane.xlu0 %2224 }
 0xa2a   : > { %vm2253_vm10 = vcmp.eq.f32.partialorder %v5983_v27, %v2225_v48  ;;  %v6102_v36 = vcvt.s32.f32 %v2311_v23 }
 0xa2b   : > { %v6105_v1 = vsel %vm2253_vm10, %v4263_v11, 128 }
 0xa2c   : > { %v2325_v17 = vshra.s32 %v6105_v1, 16  ;;  %2314 = vmin.xlane.f32.xlu1 %v6102_v36 }
 0xa2d   : > { %v2235_v28 = vpop.xlane.xlu1 %2234 }
 0xa2e   : > { %vm2258_vm11 = vcmp.eq.f32.partialorder %v5991_v33, %v2235_v28  ;;  %v6110_v45 = vcvt.s32.f32 %v2325_v17 }
 0xa2f   : > { %v6113_v2 = vsel %vm2258_vm11, %v4263_v11, 128 }
 0xa30   : > { %v2395_v15 = vshra.s32 %v6113_v2, 16  ;;  %2328 = vmin.xlane.f32.xlu0 %v6110_v45 }
 0xa31   : > { %v2237_v26 = vpop.xlane.xlu0 %2236 }
 0xa32   : > { %vm2259_vm12 = vcmp.eq.f32.partialorder %v5999_v43, %v2237_v26  ;;  %v6118_v40 = vcvt.s32.f32 %v2395_v15 }
 0xa33   : > { %v6121_v55 = vsel %vm2259_vm12, %v4263_v11, 128 }
 0xa34   : > { %v2409_v13 = vshra.s32 %v6121_v55, 16  ;;  %2398 = vmin.xlane.f32.xlu1 %v6118_v40 }
 0xa35   : > { %v2239_v30 = vpop.xlane.xlu1 %2238 }
 0xa36   : > { %vm2260_vm13 = vcmp.eq.f32.partialorder %v6007_v61, %v2239_v30  ;;  %v6126_v63 = vcvt.s32.f32 %v2409_v13 }
 0xa37   : > { %v6129_v41 = vsel %vm2260_vm13, %v4263_v11, 128 }
 0xa38   : > { %v2423_v54 = vshra.s32 %v6129_v41, 16  ;;  %2412 = vmin.xlane.f32.xlu0 %v6126_v63 }
 0xa39   : > { %v2241_v57 = vpop.xlane.xlu0 %2240 }
 0xa3a   : > { %vm2261_vm14 = vcmp.eq.f32.partialorder %v6015_v9, %v2241_v57  ;;  %v6134_v29 = vcvt.s32.f32 %v2423_v54 }
 0xa3b   : > { %v6137_v3 = vsel %vm2261_vm14, %v4263_v11, 128 }
 0xa3c   : > { %v2437_v31 = vshra.s32 %v6137_v3, 16  ;;  %2426 = vmin.xlane.f32.xlu1 %v6134_v29 }
 0xa3d   : > { %v2229_v51 = vpop.xlane.xlu0 %2228 }
 0xa3e   : > { %vm2255_vm15 = vcmp.eq.f32.partialorder %v6023_v21, %v2229_v51  ;;  %v6142_v37 = vcvt.s32.f32 %v2437_v31 }
 0xa3f   : > { %v6145_v7 = vsel %vm2255_vm15, %v4263_v11, 128 }
 0xa40   : > { %v2353_v16 = vshra.s32 %v6145_v7, 16  ;;  %2440 = vmin.xlane.f32.xlu0 %v6142_v37 }
 0xa41   : > { %v2245_v53 = vpop.xlane.xlu0 %2244 }
 0xa42   : > { %vm2263_vm0 = vcmp.eq.f32.partialorder %v6031_v44, %v2245_v53  ;;  %v6150_v62 = vcvt.s32.f32 %v2353_v16  ;;  %v2282_v16 = vand.u32 65535, %v6082_v49  ;;  %v2296_v53 = vand.u32 65535, %v6089_v14 }
 0xa43   : > { %v6153_v39 = vsel %vm2263_vm0, %v4263_v11, 128  ;;  %v2324_v49 = vand.u32 65535, %v6105_v1  ;;  %v2408_v1 = vand.u32 65535, %v6121_v55  ;;  %v2436_v55 = vand.u32 65535, %v6137_v3 }
 0xa44   : > { %v2465_v42 = vshra.s32 %v6153_v39, 16  ;;  %2356 = vmin.xlane.f32.xlu0 %v6150_v62  ;;  %v2464_v3 = vand.u32 65535, %v6153_v39 }
 0xa45   : > { %v2227_v8 = vpop.xlane.xlu1 %2226 }
 0xa46   : > { %vm2254_vm1 = vcmp.eq.f32.partialorder %v6039_v19, %v2227_v8  ;;  %v6158_v20 = vcvt.s32.f32 %v2465_v42  ;;  %v2284_v8 = vcvt.s32.f32 %v2282_v16  ;;  %v2410_v16 = vcvt.s32.f32 %v2408_v1 }
 0xa47   : > { %v6161_v47 = vsel %vm2254_vm1, %v4263_v11, 128 }
 0xa48   : > { %v2339_v56 = vshra.s32 %v6161_v47, 16  ;;  %2468 = vmin.xlane.f32.xlu0 %v6158_v20 }
 0xa49   : > { %v2243_v0 = vpop.xlane.xlu1 %2242 }
 0xa4a   : > { %vm2262_vm3 = vcmp.eq.f32.partialorder %v6047_v5, %v2243_v0  ;;  %v6166_v18 = vcvt.s32.f32 %v2339_v56  ;;  %v2310_v0 = vand.u32 65535, %v6097_v46  ;;  %v2394_v46 = vand.u32 65535, %v6113_v2 }
 0xa4b   : > { %v6169_v6 = vsel %vm2262_vm3, %v4263_v11, 128  ;;  %v2422_v2 = vand.u32 65535, %v6129_v41  ;;  %v2352_v41 = vand.u32 65535, %v6145_v7  ;;  %v2338_v7 = vand.u32 65535, %v6161_v47 }
 0xa4c   : > { %v2451_v52 = vshra.s32 %v6169_v6, 16  ;;  %2342 = vmin.xlane.f32.xlu1 %v6166_v18  ;;  %v2450_v39 = vand.u32 65535, %v6169_v6 }
 0xa4d   : > { %v2233_v12 = vpop.xlane.xlu0 %2232 }
 0xa4e   : > { %vm2257_vm5 = vcmp.eq.f32.partialorder %v6055_v35, %v2233_v12  ;;  %v6174_v58 = vcvt.s32.f32 %v2451_v52  ;;  %v2298_v12 = vcvt.s32.f32 %v2296_v53 }
 0xa4f   : > { %v6177_v50 = vsel %vm2257_vm5, %v4263_v11, 128 }
 0xa50   : > { %v2381_v24 = vshra.s32 %v6177_v50, 16  ;;  %2454 = vmin.xlane.f32.xlu1 %v6174_v58  ;;  %v2380_v47 = vand.u32 65535, %v6177_v50 }
 0xa51   : > { %v2231_v25 = vpop.xlane.xlu1 %2230 }
 0xa52   : > { %vm2256_vm6 = vcmp.eq.f32.partialorder %v6063_v38, %v2231_v25  ;;  %v6182_v23 = vcvt.s32.f32 %v2381_v24  ;;  %v2312_v25 = vcvt.s32.f32 %v2310_v0  ;;  %v2438_v0 = vcvt.s32.f32 %v2436_v55 }
 0xa53   : > { %v6185_v48 = vsel %vm2256_vm6, %v4263_v11, 128 }
 0xa54   : > { %v2367_v17 = vshra.s32 %v6185_v48, 16  ;;  %2384 = vmin.xlane.f32.xlu0 %v6182_v23  ;;  %v2366_v6 = vand.u32 65535, %v6185_v48 }
 0xa55   : > { %v2247_v28 = vpop.xlane.xlu1 %2246 }
 0xa56   : > { %vm2264_vm7 = vcmp.eq.f32.partialorder %v6070_v22, %v2247_v28  ;;  %v6190_v15 = vcvt.s32.f32 %v2367_v17  ;;  %v2326_v28 = vcvt.s32.f32 %v2324_v49 }
 0xa57   : > { %v6193_v26 = vsel %vm2264_vm7, %v4263_v11, 128 }
 0xa58   : > { %v2479_v13 = vshra.s32 %v6193_v26, 16  ;;  %2370 = vmin.xlane.f32.xlu1 %v6190_v15  ;;  %v2478_v50 = vand.u32 65535, %v6193_v26 }
 0xa59   : > { %v2249_v30 = vpop.xlane.xlu0 %2248 }
 0xa5a   : > { %vm2265_vm8 = vcmp.eq.f32.partialorder %v6077_v60, %v2249_v30  ;;  %v6198_v54 = vcvt.s32.f32 %v2479_v13  ;;  %v2396_v30 = vcvt.s32.f32 %v2394_v46  ;;  %v2340_v46 = vcvt.s32.f32 %v2338_v7 }
 0xa5b   : > { %v6201_v57 = vsel %vm2265_vm8, %v4263_v11, 128 }
 0xa5c   : > { %v2493_v31 = vshra.s32 %v6201_v57, 16  ;;  %2482 = vmin.xlane.f32.xlu1 %v6198_v54  ;;  %v2492_v48 = vand.u32 65535, %v6201_v57 }
 0xa5e   : > { %v6205_v51 = vcvt.s32.f32 %v2493_v31  ;;  %v2494_v55 = vcvt.s32.f32 %v2492_v48 }
 0xa60   : > { %2496 = vmin.xlane.f32.xlu0 %v6205_v51 }
 0xaad   : > { %v6210_v42 = vpop.xlane.xlu1 %2286 }
 0xaae   : > { %vm2288_vm4 = vcmp.eq.f32.partialorder %v6086_v59, %v6210_v42 }
 0xaaf   : > { %v2289_v56 = vsel %vm2288_vm4, %v2284_v8, inf  ;;  %v2424_v8 = vcvt.s32.f32 %v2422_v2  ;;  %v2368_v2 = vcvt.s32.f32 %v2366_v6  ;;  %vm2506_vm4 = vcmask 48168  }
 0xab0   : > { %2290 = vmin.xlane.f32.xlu1 %v2289_v56 }
 0xab1   : > { %v6215_v52 = vpop.xlane.xlu0 %2300 }
 0xab2   : > { %vm2302_vm9 = vcmp.eq.f32.partialorder %v6094_v32, %v6215_v52 }
 0xab3   : > { %v2303_v24 = vsel %vm2302_vm9, %v2298_v12, inf }
 0xab4   : > { %2304 = vmin.xlane.f32.xlu0 %v2303_v24  ;;  %v2354_v24 = vcvt.s32.f32 %v2352_v41  ;;  %v2307_v41 = vcvt.f32.s32 %v6215_v52 }
 0xab5   : > { %v6220_v14 = vpop.xlane.xlu1 %2314 }
 0xab6   : > { %vm2316_vm2 = vcmp.eq.f32.partialorder %v6102_v36, %v6220_v14 }
 0xab7   : > { %v2317_v59 = vsel %vm2316_vm2, %v2312_v25, inf  ;;  %v2466_v25 = vcvt.s32.f32 %v2464_v3  ;;  %v2308_v3 = vshll.u32 %v2307_v41, 16 }
 0xab8   : > { %2318 = vmin.xlane.f32.xlu1 %v2317_v59 }
 0xab9   : > { %v6225_v17 = vpop.xlane.xlu0 %2328 }
 0xaba   : > { %vm2330_vm10 = vcmp.eq.f32.partialorder %v6110_v45, %v6225_v17 }
 0xabb   : > { %v2331_v32 = vsel %vm2330_vm10, %v2326_v28, inf }
 0xabc   : > { %2332 = vmin.xlane.f32.xlu0 %v2331_v32  ;;  %v2452_v32 = vcvt.s32.f32 %v2450_v39 }
 0xabd   : > { %v6230_v13 = vpop.xlane.xlu1 %2398 }
 0xabe   : > { %vm2400_vm11 = vcmp.eq.f32.partialorder %v6118_v40, %v6230_v13 }
 0xabf   : > { %v2401_v36 = vsel %vm2400_vm11, %v2396_v30, inf  ;;  %v2382_v30 = vcvt.s32.f32 %v2380_v47 }
 0xac0   : > { %2402 = vmin.xlane.f32.xlu1 %v2401_v36 }
 0xac1   : > { %v6235_v31 = vpop.xlane.xlu0 %2412 }
 0xac2   : > { %vm2414_vm12 = vcmp.eq.f32.partialorder %v6126_v63, %v6235_v31  ;;  %v2419_v6 = vcvt.f32.s32 %v6235_v31 }
 0xac3   : > { %v2415_v45 = vsel %vm2414_vm12, %v2410_v16, inf }
 0xac4   : > { %2416 = vmin.xlane.f32.xlu0 %v2415_v45  ;;  %v2480_v45 = vcvt.s32.f32 %v2478_v50  ;;  %v2420_v50 = vshll.u32 %v2419_v6, 16 }
 0xac5   : > { %v6240_v53 = vpop.xlane.xlu1 %2426 }
 0xac6   : > { %vm2428_vm13 = vcmp.eq.f32.partialorder %v6134_v29, %v6240_v53 }
 0xac7   : > { %v2429_v40 = vsel %vm2428_vm13, %v2424_v8, inf  ;;  %v2293_v8 = vcvt.f32.s32 %v6210_v42 }
 0xac8   : > { %2430 = vmin.xlane.f32.xlu1 %v2429_v40 }
 0xac9   : > { %v6245_v56 = vpop.xlane.xlu0 %2440  ;;  %v2294_v40 = vshll.u32 %v2293_v8, 16 }
 0xaca   : > { %vm2442_vm14 = vcmp.eq.f32.partialorder %v6142_v37, %v6245_v56 }
 0xacb   : > { %v2443_v63 = vsel %vm2442_vm14, %v2438_v0, inf }
 0xacc   : > { %2444 = vmin.xlane.f32.xlu0 %v2443_v63 }
 0xacd   : > { %v6250_v12 = vpop.xlane.xlu0 %2356 }
 0xace   : > { %vm2358_vm15 = vcmp.eq.f32.partialorder %v6150_v62, %v6250_v12 }
 0xacf   : > { %v2359_v29 = vsel %vm2358_vm15, %v2354_v24, inf  ;;  %v2321_v24 = vcvt.f32.s32 %v6220_v14 }
 0xad0   : > { %2360 = vmin.xlane.f32.xlu0 %v2359_v29 }
 0xad1   : > { %v6255_v49 = vpop.xlane.xlu0 %2468  ;;  %v2322_v7 = vshll.u32 %v2321_v24, 16 }
 0xad2   : > { %vm2470_vm0 = vcmp.eq.f32.partialorder %v6158_v20, %v6255_v49 }
 0xad3   : > { %v2471_v37 = vsel %vm2470_vm0, %v2466_v25, inf  ;;  %v2335_v25 = vcvt.f32.s32 %v6225_v17 }
 0xad4   : > { %2472 = vmin.xlane.f32.xlu0 %v2471_v37 }
 0xad5   : > { %v6260_v59 = vpop.xlane.xlu1 %2342 }
 0xad6   : > { %vm2344_vm1 = vcmp.eq.f32.partialorder %v6166_v18, %v6260_v59 }
 0xad7   : > { %v2345_v62 = vsel %vm2344_vm1, %v2340_v46, inf  ;;  %v2336_v46 = vshll.u32 %v2335_v25, 16 }
 0xad8   : > { %2346 = vmin.xlane.f32.xlu1 %v2345_v62  ;;  %v2405_v62 = vcvt.f32.s32 %v6230_v13 }
 0xad9   : > { %v6265_v28 = vpop.xlane.xlu1 %2454 }
 0xada   : > { %vm2456_vm3 = vcmp.eq.f32.partialorder %v6174_v58, %v6265_v28  ;;  %v2461_v25 = vcvt.f32.s32 %v6265_v28 }
 0xadb   : > { %v2457_v20 = vsel %vm2456_vm3, %v2452_v32, inf }
 0xadc   : > { %2458 = vmin.xlane.f32.xlu1 %v2457_v20  ;;  %v2406_v20 = vshll.u32 %v2405_v62, 16 }
 0xadd   : > { %v6270_v1 = vpop.xlane.xlu0 %2384 }
 0xade   : > { %vm2386_vm5 = vcmp.eq.f32.partialorder %v6182_v23, %v6270_v1 }
 0xadf   : > { %v2387_v18 = vsel %vm2386_vm5, %v2382_v30, inf }
 0xae0   : > { %2388 = vmin.xlane.f32.xlu0 %v2387_v18 }
 0xae1   : > { %v6275_v36 = vpop.xlane.xlu1 %2370 }
 0xae2   : > { %vm2372_vm6 = vcmp.eq.f32.partialorder %v6190_v15, %v6275_v36 }
 0xae3   : > { %v2373_v58 = vsel %vm2372_vm6, %v2368_v2, inf  ;;  %v2433_v2 = vcvt.f32.s32 %v6240_v53 }
 0xae4   : > { %2374 = vmin.xlane.f32.xlu1 %v2373_v58 }
 0xae5   : > { %v6280_v16 = vpop.xlane.xlu1 %2482 }
 0xae6   : > { %vm2484_vm7 = vcmp.eq.f32.partialorder %v6198_v54, %v6280_v16 }
 0xae7   : > { %v2485_v23 = vsel %vm2484_vm7, %v2480_v45, inf  ;;  %v2434_v45 = vshll.u32 %v2433_v2, 16 }
 0xae8   : > { %2486 = vmin.xlane.f32.xlu1 %v2485_v23  ;;  %v2447_v23 = vcvt.f32.s32 %v6245_v56 }
 0xae9   : > { %v6284_v26 = vpop.xlane.xlu0 %2496 }
 0xaea   : > { %vm2498_vm8 = vcmp.eq.f32.partialorder %v6205_v51, %v6284_v26  ;;  %v2448_v8 = vshll.u32 %v2447_v23, 16 }
 0xaeb   : > { %v2499_v15 = vsel %vm2498_vm8, %v2494_v55, inf }
 0xaec   : > { %2500 = vmin.xlane.f32.xlu0 %v2499_v15 }
 0xb39   : > { %v2291_v57 = vpop.xlane.xlu1 %2290 }
 0xb3a   : > { %v2292_v0 = vcvt.f32.s32 %v2291_v57  ;;  %v2363_v57 = vcvt.f32.s32 %v6250_v12 }
 0xb3c   : > { %v2295_v54 = vadd.s32 %v2294_v40, %v2292_v0  ;;  %v2364_v0 = vshll.u32 %v2363_v57, 16 }
 0xb3d   : > { %v2305_v63 = vpop.xlane.xlu0 %2304 }
 0xb3e   : > { %2507 = vst.msk [vmem:[%s4531_s5] sm:$0xff] %vm2506_vm4, %v2295_v54  ;;  %v2306_v29 = vcvt.f32.s32 %v2305_v63  ;;  %vm2523_vm9 = vcmp.eq.s32.totalorder %v4263_v11, %v2295_v54  ;;  %v2475_v54 = vcvt.f32.s32 %v6255_v49 }
 0xb3f   : > { %v6295_v51 = vsel %vm2523_vm9, -inf, %v5959_v10 }
 0xb40   : > { %v2309_v42 = vadd.s32 %v2308_v3, %v2306_v29  ;;  %2555 = vmax.xlane.f32.xlu1 %v6295_v51  ;;  %v2476_v24 = vshll.u32 %v2475_v54, 16  ;;  %v2349_v29 = vcvt.f32.s32 %v6260_v59 }
 0xb41   : > { %v2319_v52 = vpop.xlane.xlu1 %2318 }
 0xb42   : > { %2508 = vst.msk [vmem:[%s4531_s5 + $0x8] sm:$0xff] %vm2506_vm4, %v2309_v42  ;;  %v2320_v37 = vcvt.f32.s32 %v2319_v52  ;;  %vm2524_vm2 = vcmp.eq.s32.totalorder %v4263_v11, %v2309_v42 }
 0xb43   : > { %v6303_v14 = vsel %vm2524_vm2, -inf, %v5967_v4 }
 0xb44   : > { %v2323_v39 = vadd.s32 %v2322_v7, %v2320_v37  ;;  %2557 = vmax.xlane.f32.xlu0 %v6303_v14  ;;  %v2350_v7 = vshll.u32 %v2349_v29, 16 }
 0xb45   : > { %v2333_v10 = vpop.xlane.xlu0 %2332 }
 0xb46   : > { %2509 = vst.msk [vmem:[%s4531_s5 + $0x10] sm:$0xff] %vm2506_vm4, %v2323_v39  ;;  %v2334_v47 = vcvt.f32.s32 %v2333_v10  ;;  %vm2525_vm10 = vcmp.eq.s32.totalorder %v4263_v11, %v2323_v39  ;;  %v2462_v10 = vshll.u32 %v2461_v25, 16 }
 0xb47   : > { %v6311_v17 = vsel %vm2525_vm10, -inf, %v5975_v34 }
 0xb48   : > { %v2337_v32 = vadd.s32 %v2336_v46, %v2334_v47  ;;  %2559 = vmax.xlane.f32.xlu1 %v6311_v17  ;;  %v2391_v46 = vcvt.f32.s32 %v6270_v1 }
 0xb49   : > { %v2403_v4 = vpop.xlane.xlu1 %2402 }
 0xb4a   : > { %2510 = vst.msk [vmem:[%s4531_s5 + $0x18] sm:$0xff] %vm2506_vm4, %v2337_v32  ;;  %v2404_v30 = vcvt.f32.s32 %v2403_v4  ;;  %vm2526_vm11 = vcmp.eq.s32.totalorder %v4263_v11, %v2337_v32  ;;  %v2392_v32 = vshll.u32 %v2391_v46, 16  ;;  %v2377_v4 = vcvt.f32.s32 %v6275_v36 }
 0xb4b   : > { %v6319_v13 = vsel %vm2526_vm11, -inf, %v5983_v27 }
 0xb4c   : > { %v2407_v18 = vadd.s32 %v2406_v20, %v2404_v30  ;;  %2561 = vmax.xlane.f32.xlu0 %v6319_v13  ;;  %v2378_v30 = vshll.u32 %v2377_v4, 16 }
 0xb4d   : > { %v2417_v34 = vpop.xlane.xlu0 %2416 }
 0xb4e   : > { %2515 = vst.msk [vmem:[%s4531_s5 + $0x40] sm:$0xff] %vm2506_vm4, %v2407_v18  ;;  %v2418_v58 = vcvt.f32.s32 %v2417_v34  ;;  %vm2531_vm12 = vcmp.eq.s32.totalorder %v4263_v11, %v2407_v18  ;;  %v2489_v18 = vcvt.f32.s32 %v6280_v16 }
 0xb4f   : > { %v6327_v31 = vsel %vm2531_vm12, -inf, %v5991_v33 }
 0xb50   : > { %v2421_v48 = vadd.s32 %v2420_v50, %v2418_v58  ;;  %2571 = vmax.xlane.f32.xlu1 %v6327_v31  ;;  %v2490_v2 = vshll.u32 %v2489_v18, 16  ;;  %v2503_v58 = vcvt.f32.s32 %v6284_v26 }
 0xb51   : > { %v2431_v27 = vpop.xlane.xlu1 %2430 }
 0xb52   : > { %2516 = vst.msk [vmem:[%s4531_s5 + $0x48] sm:$0xff] %vm2506_vm4, %v2421_v48  ;;  %v2432_v55 = vcvt.f32.s32 %v2431_v27  ;;  %vm2532_vm13 = vcmp.eq.s32.totalorder %v4263_v11, %v2421_v48 }
 0xb53   : > { %v6335_v53 = vsel %vm2532_vm13, -inf, %v5999_v43 }
 0xb54   : > { %v2435_v15 = vadd.s32 %v2434_v45, %v2432_v55  ;;  %2573 = vmax.xlane.f32.xlu0 %v6335_v53  ;;  %v2504_v45 = vshll.u32 %v2503_v58, 16 }
 0xb55   : > { %v2445_v33 = vpop.xlane.xlu0 %2444 }
 0xb56   : > { %2517 = vst.msk [vmem:[%s4531_s5 + $0x50] sm:$0xff] %vm2506_vm4, %v2435_v15  ;;  %v2446_v40 = vcvt.f32.s32 %v2445_v33  ;;  %vm2533_vm14 = vcmp.eq.s32.totalorder %v4263_v11, %v2435_v15 }
 0xb57   : > { %v6343_v56 = vsel %vm2533_vm14, -inf, %v6007_v61 }
 0xb58   : > { %v2449_v41 = vadd.s32 %v2448_v8, %v2446_v40  ;;  %2575 = vmax.xlane.f32.xlu1 %v6343_v56 }
 0xb59   : > { %v2361_v43 = vpop.xlane.xlu0 %2360 }
 0xb5a   : > { %2518 = vst.msk [vmem:[%s4531_s5 + $0x58] sm:$0xff] %vm2506_vm4, %v2449_v41  ;;  %v2362_v63 = vcvt.f32.s32 %v2361_v43  ;;  %vm2534_vm15 = vcmp.eq.s32.totalorder %v4263_v11, %v2449_v41 }
 0xb5b   : > { %v6351_v12 = vsel %vm2534_vm15, -inf, %v6015_v9 }
 0xb5c   : > { %v2365_v3 = vadd.s32 %v2364_v0, %v2362_v63  ;;  %2577 = vmax.xlane.f32.xlu0 %v6351_v12 }
 0xb5d   : > { %v2473_v61 = vpop.xlane.xlu0 %2472 }
 0xb5e   : > { %2512 = vst.msk [vmem:[%s4531_s5 + $0x28] sm:$0xff] %vm2506_vm4, %v2365_v3  ;;  %v2474_v42 = vcvt.f32.s32 %v2473_v61  ;;  %vm2528_vm0 = vcmp.eq.s32.totalorder %v4263_v11, %v2365_v3 }
 0xb5f   : > { %v6359_v49 = vsel %vm2528_vm0, -inf, %v6023_v21 }
 0xb60   : > { %v2477_v52 = vadd.s32 %v2476_v24, %v2474_v42  ;;  %2565 = vmax.xlane.f32.xlu0 %v6359_v49 }
 0xb61   : > { %v2347_v9 = vpop.xlane.xlu1 %2346 }
 0xb62   : > { %2520 = vst.msk [vmem:[%s4531_s5 + $0x68] sm:$0xff] %vm2506_vm4, %v2477_v52  ;;  %v2348_v37 = vcvt.f32.s32 %v2347_v9  ;;  %vm2536_vm1 = vcmp.eq.s32.totalorder %v4263_v11, %v2477_v52 }
 0xb63   : > { %v6367_v59 = vsel %vm2536_vm1, -inf, %v6031_v44 }
 0xb64   : > { %v2351_v39 = vadd.s32 %v2350_v7, %v2348_v37  ;;  %2581 = vmax.xlane.f32.xlu0 %v6367_v59 }
 0xb65   : > { %v2459_v21 = vpop.xlane.xlu1 %2458 }
 0xb66   : > { %2511 = vst.msk [vmem:[%s4531_s5 + $0x20] sm:$0xff] %vm2506_vm4, %v2351_v39  ;;  %v2460_v62 = vcvt.f32.s32 %v2459_v21  ;;  %vm2527_vm3 = vcmp.eq.s32.totalorder %v4263_v11, %v2351_v39 }
 0xb67   : > { %v6375_v28 = vsel %vm2527_vm3, -inf, %v6039_v19 }
 0xb68   : > { %v2463_v47 = vadd.s32 %v2462_v10, %v2460_v62  ;;  %2563 = vmax.xlane.f32.xlu1 %v6375_v28 }
 0xb69   : > { %v2389_v44 = vpop.xlane.xlu0 %2388 }
 0xb6a   : > { %2519 = vst.msk [vmem:[%s4531_s5 + $0x60] sm:$0xff] %vm2506_vm4, %v2463_v47  ;;  %v2390_v20 = vcvt.f32.s32 %v2389_v44  ;;  %vm2535_vm5 = vcmp.eq.s32.totalorder %v4263_v11, %v2463_v47 }
 0xb6b   : > { %v6383_v1 = vsel %vm2535_vm5, -inf, %v6047_v5 }
 0xb6c   : > { %v2393_v6 = vadd.s32 %v2392_v32, %v2390_v20  ;;  %2579 = vmax.xlane.f32.xlu1 %v6383_v1 }
 0xb6d   : > { %v2375_v19 = vpop.xlane.xlu1 %2374 }
 0xb6e   : > { %2514 = vst.msk [vmem:[%s4531_s5 + $0x38] sm:$0xff] %vm2506_vm4, %v2393_v6  ;;  %v2376_v34 = vcvt.f32.s32 %v2375_v19  ;;  %vm2530_vm6 = vcmp.eq.s32.totalorder %v4263_v11, %v2393_v6 }
 0xb6f   : > { %v6391_v36 = vsel %vm2530_vm6, -inf, %v6055_v35 }
 0xb70   : > { %v2379_v50 = vadd.s32 %v2378_v30, %v2376_v34  ;;  %2569 = vmax.xlane.f32.xlu0 %v6391_v36 }
 0xb71   : > { %v2487_v5 = vpop.xlane.xlu1 %2486 }
 0xb72   : > { %2513 = vst.msk [vmem:[%s4531_s5 + $0x30] sm:$0xff] %vm2506_vm4, %v2379_v50  ;;  %v2488_v16 = vcvt.f32.s32 %v2487_v5  ;;  %vm2529_vm7 = vcmp.eq.s32.totalorder %v4263_v11, %v2379_v50 }
 0xb73   : > { %v6399_v48 = vsel %vm2529_vm7, -inf, %v6063_v38 }
 0xb74   : > { %v2491_v27 = vadd.s32 %v2490_v2, %v2488_v16  ;;  %2567 = vmax.xlane.f32.xlu1 %v6399_v48 }
 0xb75   : > { %v2501_v35 = vpop.xlane.xlu0 %2500 }
 0xb76   : > { %2521 = vst.msk [vmem:[%s4531_s5 + $0x70] sm:$0xff] %vm2506_vm4, %v2491_v27  ;;  %v2502_v23 = vcvt.f32.s32 %v2501_v35  ;;  %vm2537_vm8 = vcmp.eq.s32.totalorder %v4263_v11, %v2491_v27 }
 0xb77   : > { %v6406_v26 = vsel %vm2537_vm8, -inf, %v6070_v22 }
 0xb78   : > { %v2505_v55 = vadd.s32 %v2504_v45, %v2502_v23  ;;  %2583 = vmax.xlane.f32.xlu1 %v6406_v26 }
 0xb7a   : > { %2522 = vst.msk [vmem:[%s4531_s5 + $0x78] sm:$0xff] %vm2506_vm4, %v2505_v55  ;;  %vm2538_vm9 = vcmp.eq.s32.totalorder %v4263_v11, %v2505_v55 }
 0xb7b   : > { %v6413_v38 = vsel %vm2538_vm9, -inf, %v6077_v60 }
 0xb7c   : > { %2585 = vmax.xlane.f32.xlu0 %v6413_v38 }
 0xbc9   : > { %v2556_v15 = vpop.xlane.xlu1 %2555 }
 0xbca   : > { %vm2587_vm2 = vcmp.eq.f32.partialorder %v6295_v51, %v2556_v15 }
 0xbcb   : > { %v6418_v33 = vsel %vm2587_vm2, %v4263_v11, 128 }
 0xbcc   : > { %v2620_v22 = vshra.s32 %v6418_v33, 16 }
 0xbcd   : > { %v2558_v8 = vpop.xlane.xlu0 %2557 }
 0xbce   : > { %vm2588_vm10 = vcmp.eq.f32.partialorder %v6303_v14, %v2558_v8  ;;  %v6422_v57 = vcvt.s32.f32 %v2620_v22 }
 0xbcf   : > { %v6425_v40 = vsel %vm2588_vm10, %v4263_v11, 128 }
 0xbd0   : > { %v2634_v60 = vshra.s32 %v6425_v40, 16  ;;  %2623 = vmin.xlane.f32.xlu1 %v6422_v57 }
 0xbd1   : > { %v2560_v41 = vpop.xlane.xlu1 %2559 }
 0xbd2   : > { %vm2589_vm4 = vcmp.eq.f32.partialorder %v6311_v17, %v2560_v41  ;;  %v6430_v43 = vcvt.s32.f32 %v2634_v60 }
 0xbd3   : > { %v6433_v0 = vsel %vm2589_vm4, %v4263_v11, 128 }
 0xbd4   : > { %v2648_v54 = vshra.s32 %v6433_v0, 16  ;;  %2637 = vmin.xlane.f32.xlu0 %v6430_v43 }
 0xbd5   : > { %v2562_v63 = vpop.xlane.xlu0 %2561 }
 0xbd6   : > { %vm2590_vm11 = vcmp.eq.f32.partialorder %v6319_v13, %v2562_v63  ;;  %v6438_v3 = vcvt.s32.f32 %v2648_v54 }
 0xbd7   : > { %v6441_v61 = vsel %vm2590_vm11, %v4263_v11, 128 }
 0xbd8   : > { %v2662_v24 = vshra.s32 %v6441_v61, 16  ;;  %2651 = vmin.xlane.f32.xlu1 %v6438_v3 }
 0xbd9   : > { %v2572_v29 = vpop.xlane.xlu1 %2571 }
 0xbda   : > { %vm2595_vm12 = vcmp.eq.f32.partialorder %v6327_v31, %v2572_v29  ;;  %v6446_v42 = vcvt.s32.f32 %v2662_v24 }
 0xbdb   : > { %v6449_v52 = vsel %vm2595_vm12, %v4263_v11, 128 }
 0xbdc   : > { %v2732_v9 = vshra.s32 %v6449_v52, 16  ;;  %2665 = vmin.xlane.f32.xlu0 %v6446_v42 }
 0xbdd   : > { %v2574_v7 = vpop.xlane.xlu0 %2573 }
 0xbde   : > { %vm2596_vm13 = vcmp.eq.f32.partialorder %v6335_v53, %v2574_v7  ;;  %v6454_v25 = vcvt.s32.f32 %v2732_v9 }
 0xbdf   : > { %v6457_v37 = vsel %vm2596_vm13, %v4263_v11, 128 }
 0xbe0   : > { %v2746_v39 = vshra.s32 %v6457_v37, 16  ;;  %2735 = vmin.xlane.f32.xlu1 %v6454_v25 }
 0xbe1   : > { %v2576_v21 = vpop.xlane.xlu1 %2575 }
 0xbe2   : > { %vm2597_vm14 = vcmp.eq.f32.partialorder %v6343_v56, %v2576_v21  ;;  %v6462_v10 = vcvt.s32.f32 %v2746_v39 }
 0xbe3   : > { %v6465_v46 = vsel %vm2597_vm14, %v4263_v11, 128 }
 0xbe4   : > { %v2760_v62 = vshra.s32 %v6465_v46, 16  ;;  %2749 = vmin.xlane.f32.xlu0 %v6462_v10 }
 0xbe5   : > { %v2578_v47 = vpop.xlane.xlu0 %2577 }
 0xbe6   : > { %vm2598_vm15 = vcmp.eq.f32.partialorder %v6351_v12, %v2578_v47  ;;  %v6470_v44 = vcvt.s32.f32 %v2760_v62 }
 0xbe7   : > { %v6473_v32 = vsel %vm2598_vm15, %v4263_v11, 128 }
 0xbe8   : > { %v2774_v4 = vshra.s32 %v6473_v32, 16  ;;  %2763 = vmin.xlane.f32.xlu1 %v6470_v44 }
 0xbe9   : > { %v2566_v20 = vpop.xlane.xlu0 %2565 }
 0xbea   : > { %vm2592_vm0 = vcmp.eq.f32.partialorder %v6359_v49, %v2566_v20  ;;  %v6478_v6 = vcvt.s32.f32 %v2774_v4 }
 0xbeb   : > { %v6481_v19 = vsel %vm2592_vm0, %v4263_v11, 128 }
 0xbec   : > { %v2690_v30 = vshra.s32 %v6481_v19, 16  ;;  %2777 = vmin.xlane.f32.xlu0 %v6478_v6 }
 0xbed   : > { %v2582_v18 = vpop.xlane.xlu0 %2581 }
 0xbee   : > { %vm2600_vm1 = vcmp.eq.f32.partialorder %v6367_v59, %v2582_v18  ;;  %v6486_v34 = vcvt.s32.f32 %v2690_v30  ;;  %v2619_v30 = vand.u32 65535, %v6418_v33  ;;  %v2633_v18 = vand.u32 65535, %v6425_v40 }
 0xbef   : > { %v6489_v50 = vsel %vm2600_vm1, %v4263_v11, 128  ;;  %v2661_v33 = vand.u32 65535, %v6441_v61  ;;  %v2745_v61 = vand.u32 65535, %v6457_v37  ;;  %v2773_v37 = vand.u32 65535, %v6473_v32 }
 0xbf0   : > { %v2802_v5 = vshra.s32 %v6489_v50, 16  ;;  %2693 = vmin.xlane.f32.xlu0 %v6486_v34  ;;  %v2801_v32 = vand.u32 65535, %v6489_v50 }
 0xbf1   : > { %v2564_v2 = vpop.xlane.xlu1 %2563 }
 0xbf2   : > { %vm2591_vm3 = vcmp.eq.f32.partialorder %v6375_v28, %v2564_v2  ;;  %v6494_v58 = vcvt.s32.f32 %v2802_v5  ;;  %v2621_v2 = vcvt.s32.f32 %v2619_v30  ;;  %v2747_v30 = vcvt.s32.f32 %v2745_v61 }
 0xbf3   : > { %v6497_v16 = vsel %vm2591_vm3, %v4263_v11, 128 }
 0xbf4   : > { %v2676_v27 = vshra.s32 %v6497_v16, 16  ;;  %2805 = vmin.xlane.f32.xlu0 %v6494_v58 }
 0xbf5   : > { %v2580_v35 = vpop.xlane.xlu1 %2579 }
 0xbf6   : > { %vm2599_vm5 = vcmp.eq.f32.partialorder %v6383_v1, %v2580_v35  ;;  %v6502_v45 = vcvt.s32.f32 %v2676_v27  ;;  %v2647_v35 = vand.u32 65535, %v6433_v0  ;;  %v2731_v0 = vand.u32 65535, %v6449_v52 }
 0xbf7   : > { %v6505_v23 = vsel %vm2599_vm5, %v4263_v11, 128  ;;  %v2759_v52 = vand.u32 65535, %v6465_v46  ;;  %v2689_v46 = vand.u32 65535, %v6481_v19  ;;  %v2675_v19 = vand.u32 65535, %v6497_v16 }
 0xbf8   : > { %v2788_v55 = vshra.s32 %v6505_v23, 16  ;;  %2679 = vmin.xlane.f32.xlu1 %v6502_v45  ;;  %v2787_v50 = vand.u32 65535, %v6505_v23 }
 0xbf9   : > { %v2570_v15 = vpop.xlane.xlu0 %2569 }
 0xbfa   : > { %vm2594_vm6 = vcmp.eq.f32.partialorder %v6391_v36, %v2570_v15  ;;  %v6510_v22 = vcvt.s32.f32 %v2788_v55  ;;  %v2635_v15 = vcvt.s32.f32 %v2633_v18 }
 0xbfb   : > { %v6513_v8 = vsel %vm2594_vm6, %v4263_v11, 128 }
 0xbfc   : > { %v2718_v60 = vshra.s32 %v6513_v8, 16  ;;  %2791 = vmin.xlane.f32.xlu1 %v6510_v22  ;;  %v2717_v16 = vand.u32 65535, %v6513_v8 }
 0xbfd   : > { %v2568_v41 = vpop.xlane.xlu1 %2567 }
 0xbfe   : > { %vm2593_vm7 = vcmp.eq.f32.partialorder %v6399_v48, %v2568_v41  ;;  %v6518_v54 = vcvt.s32.f32 %v2718_v60  ;;  %v2649_v41 = vcvt.s32.f32 %v2647_v35  ;;  %v2775_v35 = vcvt.s32.f32 %v2773_v37 }
 0xbff   : > { %v6521_v63 = vsel %vm2593_vm7, %v4263_v11, 128 }
 0xc00   : > { %v2704_v24 = vshra.s32 %v6521_v63, 16  ;;  %2721 = vmin.xlane.f32.xlu0 %v6518_v54  ;;  %v2703_v23 = vand.u32 65535, %v6521_v63 }
 0xc01   : > { %v2584_v29 = vpop.xlane.xlu1 %2583 }
 0xc02   : > { %vm2601_vm8 = vcmp.eq.f32.partialorder %v6406_v26, %v2584_v29  ;;  %v6526_v9 = vcvt.s32.f32 %v2704_v24  ;;  %v2663_v29 = vcvt.s32.f32 %v2661_v33 }
 0xc03   : > { %v6529_v7 = vsel %vm2601_vm8, %v4263_v11, 128 }
 0xc04   : > { %v2816_v39 = vshra.s32 %v6529_v7, 16  ;;  %2707 = vmin.xlane.f32.xlu1 %v6526_v9  ;;  %v2815_v8 = vand.u32 65535, %v6529_v7 }
 0xc05   : > { %v2586_v21 = vpop.xlane.xlu0 %2585 }
 0xc06   : > { %vm2602_vm9 = vcmp.eq.f32.partialorder %v6413_v38, %v2586_v21  ;;  %v6534_v62 = vcvt.s32.f32 %v2816_v39  ;;  %v2733_v21 = vcvt.s32.f32 %v2731_v0  ;;  %v2677_v0 = vcvt.s32.f32 %v2675_v19 }
 0xc07   : > { %v6537_v47 = vsel %vm2602_vm9, %v4263_v11, 128 }
 0xc08   : > { %v2830_v4 = vshra.s32 %v6537_v47, 16  ;;  %2819 = vmin.xlane.f32.xlu1 %v6534_v62  ;;  %v2829_v63 = vand.u32 65535, %v6537_v47 }
 0xc0a   : > { %v6541_v20 = vcvt.s32.f32 %v2830_v4  ;;  %v2831_v37 = vcvt.s32.f32 %v2829_v63 }
 0xc0c   : > { %2833 = vmin.xlane.f32.xlu0 %v6541_v20 }
 0xc59   : > { %v6546_v5 = vpop.xlane.xlu1 %2623 }
 0xc5a   : > { %vm2625_vm2 = vcmp.eq.f32.partialorder %v6422_v57, %v6546_v5 }
 0xc5b   : > { %v2626_v27 = vsel %vm2625_vm2, %v2621_v2, inf  ;;  %v2761_v2 = vcvt.s32.f32 %v2759_v52  ;;  %v2705_v52 = vcvt.s32.f32 %v2703_v23  ;;  %vm2843_vm2 = vcmask 56368  }
 0xc5c   : > { %2627 = vmin.xlane.f32.xlu1 %v2626_v27 }
 0xc5d   : > { %v6551_v55 = vpop.xlane.xlu0 %2637 }
 0xc5e   : > { %vm2639_vm10 = vcmp.eq.f32.partialorder %v6430_v43, %v6551_v55 }
 0xc5f   : > { %v2640_v60 = vsel %vm2639_vm10, %v2635_v15, inf }
 0xc60   : > { %2641 = vmin.xlane.f32.xlu0 %v2640_v60  ;;  %v2691_v60 = vcvt.s32.f32 %v2689_v46  ;;  %v2644_v46 = vcvt.f32.s32 %v6551_v55 }
 0xc61   : > { %v6556_v40 = vpop.xlane.xlu1 %2651 }
 0xc62   : > { %vm2653_vm4 = vcmp.eq.f32.partialorder %v6438_v3, %v6556_v40 }
 0xc63   : > { %v2654_v57 = vsel %vm2653_vm4, %v2649_v41, inf  ;;  %v2803_v41 = vcvt.s32.f32 %v2801_v32  ;;  %v2645_v32 = vshll.u32 %v2644_v46, 16 }
 0xc64   : > { %2655 = vmin.xlane.f32.xlu1 %v2654_v57 }
 0xc65   : > { %v6561_v24 = vpop.xlane.xlu0 %2665 }
 0xc66   : > { %vm2667_vm11 = vcmp.eq.f32.partialorder %v6446_v42, %v6561_v24 }
 0xc67   : > { %v2668_v43 = vsel %vm2667_vm11, %v2663_v29, inf }
 0xc68   : > { %2669 = vmin.xlane.f32.xlu0 %v2668_v43  ;;  %v2789_v43 = vcvt.s32.f32 %v2787_v50 }
 0xc69   : > { %v6566_v39 = vpop.xlane.xlu1 %2735 }
 0xc6a   : > { %vm2737_vm12 = vcmp.eq.f32.partialorder %v6454_v25, %v6566_v39 }
 0xc6b   : > { %v2738_v3 = vsel %vm2737_vm12, %v2733_v21, inf  ;;  %v2719_v21 = vcvt.s32.f32 %v2717_v16 }
 0xc6c   : > { %2739 = vmin.xlane.f32.xlu1 %v2738_v3 }
 0xc6d   : > { %v6571_v4 = vpop.xlane.xlu0 %2749 }
 0xc6e   : > { %vm2751_vm13 = vcmp.eq.f32.partialorder %v6462_v10, %v6571_v4  ;;  %v2756_v23 = vcvt.f32.s32 %v6571_v4 }
 0xc6f   : > { %v2752_v42 = vsel %vm2751_vm13, %v2747_v30, inf }
 0xc70   : > { %2753 = vmin.xlane.f32.xlu0 %v2752_v42  ;;  %v2817_v42 = vcvt.s32.f32 %v2815_v8  ;;  %v2757_v8 = vshll.u32 %v2756_v23, 16 }
 0xc71   : > { %v6576_v18 = vpop.xlane.xlu1 %2763 }
 0xc72   : > { %vm2765_vm14 = vcmp.eq.f32.partialorder %v6470_v44, %v6576_v18 }
 0xc73   : > { %v2766_v25 = vsel %vm2765_vm14, %v2761_v2, inf  ;;  %v2630_v2 = vcvt.f32.s32 %v6546_v5 }
 0xc74   : > { %2767 = vmin.xlane.f32.xlu1 %v2766_v25 }
 0xc75   : > { %v6581_v27 = vpop.xlane.xlu0 %2777  ;;  %v2631_v25 = vshll.u32 %v2630_v2, 16 }
 0xc76   : > { %vm2779_vm15 = vcmp.eq.f32.partialorder %v6478_v6, %v6581_v27 }
 0xc77   : > { %v2780_v10 = vsel %vm2779_vm15, %v2775_v35, inf }
 0xc78   : > { %2781 = vmin.xlane.f32.xlu0 %v2780_v10 }
 0xc79   : > { %v6586_v15 = vpop.xlane.xlu0 %2693 }
 0xc7a   : > { %vm2695_vm0 = vcmp.eq.f32.partialorder %v6486_v34, %v6586_v15 }
 0xc7b   : > { %v2696_v44 = vsel %vm2695_vm0, %v2691_v60, inf  ;;  %v2658_v60 = vcvt.f32.s32 %v6556_v40 }
 0xc7c   : > { %2697 = vmin.xlane.f32.xlu0 %v2696_v44 }
 0xc7d   : > { %v6591_v33 = vpop.xlane.xlu0 %2805  ;;  %v2659_v19 = vshll.u32 %v2658_v60, 16 }
 0xc7e   : > { %vm2807_vm1 = vcmp.eq.f32.partialorder %v6494_v58, %v6591_v33 }
 0xc7f   : > { %v2808_v6 = vsel %vm2807_vm1, %v2803_v41, inf  ;;  %v2672_v41 = vcvt.f32.s32 %v6561_v24 }
 0xc80   : > { %2809 = vmin.xlane.f32.xlu0 %v2808_v6 }
 0xc81   : > { %v6596_v57 = vpop.xlane.xlu1 %2679 }
 0xc82   : > { %vm2681_vm3 = vcmp.eq.f32.partialorder %v6502_v45, %v6596_v57 }
 0xc83   : > { %v2682_v34 = vsel %vm2681_vm3, %v2677_v0, inf  ;;  %v2673_v0 = vshll.u32 %v2672_v41, 16 }
 0xc84   : > { %2683 = vmin.xlane.f32.xlu1 %v2682_v34  ;;  %v2742_v34 = vcvt.f32.s32 %v6566_v39 }
 0xc85   : > { %v6601_v29 = vpop.xlane.xlu1 %2791 }
 0xc86   : > { %vm2793_vm5 = vcmp.eq.f32.partialorder %v6510_v22, %v6601_v29  ;;  %v2798_v41 = vcvt.f32.s32 %v6601_v29 }
 0xc87   : > { %v2794_v58 = vsel %vm2793_vm5, %v2789_v43, inf }
 0xc88   : > { %2795 = vmin.xlane.f32.xlu1 %v2794_v58  ;;  %v2743_v58 = vshll.u32 %v2742_v34, 16 }
 0xc89   : > { %v6606_v61 = vpop.xlane.xlu0 %2721 }
 0xc8a   : > { %vm2723_vm6 = vcmp.eq.f32.partialorder %v6518_v54, %v6606_v61 }
 0xc8b   : > { %v2724_v45 = vsel %vm2723_vm6, %v2719_v21, inf }
 0xc8c   : > { %2725 = vmin.xlane.f32.xlu0 %v2724_v45 }
 0xc8d   : > { %v6611_v3 = vpop.xlane.xlu1 %2707 }
 0xc8e   : > { %vm2709_vm7 = vcmp.eq.f32.partialorder %v6526_v9, %v6611_v3 }
 0xc8f   : > { %v2710_v22 = vsel %vm2709_vm7, %v2705_v52, inf  ;;  %v2770_v52 = vcvt.f32.s32 %v6576_v18 }
 0xc90   : > { %2711 = vmin.xlane.f32.xlu1 %v2710_v22 }
 0xc91   : > { %v6616_v30 = vpop.xlane.xlu1 %2819 }
 0xc92   : > { %vm2821_vm8 = vcmp.eq.f32.partialorder %v6534_v62, %v6616_v30 }
 0xc93   : > { %v2822_v54 = vsel %vm2821_vm8, %v2817_v42, inf  ;;  %v2771_v42 = vshll.u32 %v2770_v52, 16 }
 0xc94   : > { %2823 = vmin.xlane.f32.xlu1 %v2822_v54  ;;  %v2784_v54 = vcvt.f32.s32 %v6581_v27 }
 0xc95   : > { %v6620_v7 = vpop.xlane.xlu0 %2833 }
 0xc96   : > { %vm2835_vm9 = vcmp.eq.f32.partialorder %v6541_v20, %v6620_v7  ;;  %v2785_v2 = vshll.u32 %v2784_v54, 16 }
 0xc97   : > { %v2836_v9 = vsel %vm2835_vm9, %v2831_v37, inf }
 0xc98   : > { %2837 = vmin.xlane.f32.xlu0 %v2836_v9 }
 0xce5   : > { %v2628_v47 = vpop.xlane.xlu1 %2627 }
 0xce6   : > { %v2629_v35 = vcvt.f32.s32 %v2628_v47  ;;  %v2700_v47 = vcvt.f32.s32 %v6586_v15 }
 0xce8   : > { %v2632_v62 = vadd.s32 %v2631_v25, %v2629_v35  ;;  %v2701_v35 = vshll.u32 %v2700_v47, 16 }
 0xce9   : > { %v2642_v10 = vpop.xlane.xlu0 %2641 }
 0xcea   : > { %2844 = vst.msk [vmem:[%s4531_s5] sm:$0xff] %vm2843_vm2, %v2632_v62  ;;  %v2643_v44 = vcvt.f32.s32 %v2642_v10  ;;  %vm2860_vm10 = vcmp.eq.s32.totalorder %v4263_v11, %v2632_v62  ;;  %v2812_v62 = vcvt.f32.s32 %v6591_v33 }
 0xceb   : > { %v6631_v20 = vsel %vm2860_vm10, -inf, %v6295_v51 }
 0xcec   : > { %v2646_v5 = vadd.s32 %v2645_v32, %v2643_v44  ;;  %2892 = vmax.xlane.f32.xlu1 %v6631_v20  ;;  %v2813_v60 = vshll.u32 %v2812_v62, 16  ;;  %v2686_v44 = vcvt.f32.s32 %v6596_v57 }
 0xced   : > { %v2656_v55 = vpop.xlane.xlu1 %2655 }
 0xcee   : > { %2845 = vst.msk [vmem:[%s4531_s5 + $0x8] sm:$0xff] %vm2843_vm2, %v2646_v5  ;;  %v2657_v6 = vcvt.f32.s32 %v2656_v55  ;;  %vm2861_vm4 = vcmp.eq.s32.totalorder %v4263_v11, %v2646_v5 }
 0xcef   : > { %v6639_v40 = vsel %vm2861_vm4, -inf, %v6303_v14 }
 0xcf0   : > { %v2660_v50 = vadd.s32 %v2659_v19, %v2657_v6  ;;  %2894 = vmax.xlane.f32.xlu0 %v6639_v40  ;;  %v2687_v19 = vshll.u32 %v2686_v44, 16 }
 0xcf1   : > { %v2670_v51 = vpop.xlane.xlu0 %2669 }
 0xcf2   : > { %2846 = vst.msk [vmem:[%s4531_s5 + $0x10] sm:$0xff] %vm2843_vm2, %v2660_v50  ;;  %v2671_v16 = vcvt.f32.s32 %v2670_v51  ;;  %vm2862_vm11 = vcmp.eq.s32.totalorder %v4263_v11, %v2660_v50  ;;  %v2799_v51 = vshll.u32 %v2798_v41, 16 }
 0xcf3   : > { %v6647_v24 = vsel %vm2862_vm11, -inf, %v6311_v17 }
 0xcf4   : > { %v2674_v43 = vadd.s32 %v2673_v0, %v2671_v16  ;;  %2896 = vmax.xlane.f32.xlu1 %v6647_v24  ;;  %v2728_v0 = vcvt.f32.s32 %v6606_v61 }
 0xcf5   : > { %v2740_v14 = vpop.xlane.xlu1 %2739 }
 0xcf6   : > { %2847 = vst.msk [vmem:[%s4531_s5 + $0x18] sm:$0xff] %vm2843_vm2, %v2674_v43  ;;  %v2741_v21 = vcvt.f32.s32 %v2740_v14  ;;  %vm2863_vm12 = vcmp.eq.s32.totalorder %v4263_v11, %v2674_v43  ;;  %v2729_v43 = vshll.u32 %v2728_v0, 16  ;;  %v2714_v14 = vcvt.f32.s32 %v6611_v3 }
 0xcf7   : > { %v6655_v39 = vsel %vm2863_vm12, -inf, %v6319_v13 }
 0xcf8   : > { %v2744_v45 = vadd.s32 %v2743_v58, %v2741_v21  ;;  %2898 = vmax.xlane.f32.xlu0 %v6655_v39  ;;  %v2715_v21 = vshll.u32 %v2714_v14, 16 }
 0xcf9   : > { %v2754_v17 = vpop.xlane.xlu0 %2753 }
 0xcfa   : > { %2852 = vst.msk [vmem:[%s4531_s5 + $0x40] sm:$0xff] %vm2843_vm2, %v2744_v45  ;;  %v2755_v22 = vcvt.f32.s32 %v2754_v17  ;;  %vm2868_vm13 = vcmp.eq.s32.totalorder %v4263_v11, %v2744_v45  ;;  %v2826_v45 = vcvt.f32.s32 %v6616_v30 }
 0xcfb   : > { %v6663_v4 = vsel %vm2868_vm13, -inf, %v6327_v31 }
 0xcfc   : > { %v2758_v63 = vadd.s32 %v2757_v8, %v2755_v22  ;;  %2908 = vmax.xlane.f32.xlu1 %v6663_v4  ;;  %v2827_v52 = vshll.u32 %v2826_v45, 16  ;;  %v2840_v22 = vcvt.f32.s32 %v6620_v7 }
 0xcfd   : > { %v2768_v13 = vpop.xlane.xlu1 %2767 }
 0xcfe   : > { %2853 = vst.msk [vmem:[%s4531_s5 + $0x48] sm:$0xff] %vm2843_vm2, %v2758_v63  ;;  %v2769_v37 = vcvt.f32.s32 %v2768_v13  ;;  %vm2869_vm14 = vcmp.eq.s32.totalorder %v4263_v11, %v2758_v63 }
 0xcff   : > { %v6671_v18 = vsel %vm2869_vm14, -inf, %v6335_v53 }
 0xd00   : > { %v2772_v9 = vadd.s32 %v2771_v42, %v2769_v37  ;;  %2910 = vmax.xlane.f32.xlu0 %v6671_v18  ;;  %v2841_v42 = vshll.u32 %v2840_v22, 16 }
 0xd01   : > { %v2782_v31 = vpop.xlane.xlu0 %2781 }
 0xd02   : > { %2854 = vst.msk [vmem:[%s4531_s5 + $0x50] sm:$0xff] %vm2843_vm2, %v2772_v9  ;;  %v2783_v25 = vcvt.f32.s32 %v2782_v31  ;;  %vm2870_vm15 = vcmp.eq.s32.totalorder %v4263_v11, %v2772_v9 }
 0xd03   : > { %v6679_v27 = vsel %vm2870_vm15, -inf, %v6343_v56 }
 0xd04   : > { %v2786_v46 = vadd.s32 %v2785_v2, %v2783_v25  ;;  %2912 = vmax.xlane.f32.xlu1 %v6679_v27 }
 0xd05   : > { %v2698_v53 = vpop.xlane.xlu0 %2697 }
 0xd06   : > { %2855 = vst.msk [vmem:[%s4531_s5 + $0x58] sm:$0xff] %vm2843_vm2, %v2786_v46  ;;  %v2699_v10 = vcvt.f32.s32 %v2698_v53  ;;  %vm2871_vm0 = vcmp.eq.s32.totalorder %v4263_v11, %v2786_v46 }
 0xd07   : > { %v6687_v15 = vsel %vm2871_vm0, -inf, %v6351_v12 }
 0xd08   : > { %v2702_v32 = vadd.s32 %v2701_v35, %v2699_v10  ;;  %2914 = vmax.xlane.f32.xlu0 %v6687_v15 }
 0xd09   : > { %v2810_v56 = vpop.xlane.xlu0 %2809 }
 0xd0a   : > { %2849 = vst.msk [vmem:[%s4531_s5 + $0x28] sm:$0xff] %vm2843_vm2, %v2702_v32  ;;  %v2811_v5 = vcvt.f32.s32 %v2810_v56  ;;  %vm2865_vm1 = vcmp.eq.s32.totalorder %v4263_v11, %v2702_v32 }
 0xd0b   : > { %v6695_v33 = vsel %vm2865_vm1, -inf, %v6359_v49 }
 0xd0c   : > { %v2814_v55 = vadd.s32 %v2813_v60, %v2811_v5  ;;  %2902 = vmax.xlane.f32.xlu0 %v6695_v33 }
 0xd0d   : > { %v2684_v12 = vpop.xlane.xlu1 %2683 }
 0xd0e   : > { %2857 = vst.msk [vmem:[%s4531_s5 + $0x68] sm:$0xff] %vm2843_vm2, %v2814_v55  ;;  %v2685_v6 = vcvt.f32.s32 %v2684_v12  ;;  %vm2873_vm3 = vcmp.eq.s32.totalorder %v4263_v11, %v2814_v55 }
 0xd0f   : > { %v6703_v57 = vsel %vm2873_vm3, -inf, %v6367_v59 }
 0xd10   : > { %v2688_v50 = vadd.s32 %v2687_v19, %v2685_v6  ;;  %2918 = vmax.xlane.f32.xlu0 %v6703_v57 }
 0xd11   : > { %v2796_v49 = vpop.xlane.xlu1 %2795 }
 0xd12   : > { %2848 = vst.msk [vmem:[%s4531_s5 + $0x20] sm:$0xff] %vm2843_vm2, %v2688_v50  ;;  %v2797_v34 = vcvt.f32.s32 %v2796_v49  ;;  %vm2864_vm5 = vcmp.eq.s32.totalorder %v4263_v11, %v2688_v50 }
 0xd13   : > { %v6711_v29 = vsel %vm2864_vm5, -inf, %v6375_v28 }
 0xd14   : > { %v2800_v16 = vadd.s32 %v2799_v51, %v2797_v34  ;;  %2900 = vmax.xlane.f32.xlu1 %v6711_v29 }
 0xd15   : > { %v2726_v59 = vpop.xlane.xlu0 %2725 }
 0xd16   : > { %2856 = vst.msk [vmem:[%s4531_s5 + $0x60] sm:$0xff] %vm2843_vm2, %v2800_v16  ;;  %v2727_v58 = vcvt.f32.s32 %v2726_v59  ;;  %vm2872_vm6 = vcmp.eq.s32.totalorder %v4263_v11, %v2800_v16 }
 0xd17   : > { %v6719_v61 = vsel %vm2872_vm6, -inf, %v6383_v1 }
 0xd18   : > { %v2730_v23 = vadd.s32 %v2729_v43, %v2727_v58  ;;  %2916 = vmax.xlane.f32.xlu1 %v6719_v61 }
 0xd19   : > { %v2712_v28 = vpop.xlane.xlu1 %2711 }
 0xd1a   : > { %2851 = vst.msk [vmem:[%s4531_s5 + $0x38] sm:$0xff] %vm2843_vm2, %v2730_v23  ;;  %v2713_v17 = vcvt.f32.s32 %v2712_v28  ;;  %vm2867_vm7 = vcmp.eq.s32.totalorder %v4263_v11, %v2730_v23 }
 0xd1b   : > { %v6727_v3 = vsel %vm2867_vm7, -inf, %v6391_v36 }
 0xd1c   : > { %v2716_v8 = vadd.s32 %v2715_v21, %v2713_v17  ;;  %2906 = vmax.xlane.f32.xlu0 %v6727_v3 }
 0xd1d   : > { %v2824_v1 = vpop.xlane.xlu1 %2823 }
 0xd1e   : > { %2850 = vst.msk [vmem:[%s4531_s5 + $0x30] sm:$0xff] %vm2843_vm2, %v2716_v8  ;;  %v2825_v30 = vcvt.f32.s32 %v2824_v1  ;;  %vm2866_vm8 = vcmp.eq.s32.totalorder %v4263_v11, %v2716_v8 }
 0xd1f   : > { %v6735_v63 = vsel %vm2866_vm8, -inf, %v6399_v48 }
 0xd20   : > { %v2828_v13 = vadd.s32 %v2827_v52, %v2825_v30  ;;  %2904 = vmax.xlane.f32.xlu1 %v6735_v63 }
 0xd21   : > { %v2838_v36 = vpop.xlane.xlu0 %2837 }
 0xd22   : > { %2858 = vst.msk [vmem:[%s4531_s5 + $0x70] sm:$0xff] %vm2843_vm2, %v2828_v13  ;;  %v2839_v54 = vcvt.f32.s32 %v2838_v36  ;;  %vm2874_vm9 = vcmp.eq.s32.totalorder %v4263_v11, %v2828_v13 }
 0xd23   : > { %v6742_v7 = vsel %vm2874_vm9, -inf, %v6406_v26 }
 0xd24   : > { %v2842_v37 = vadd.s32 %v2841_v42, %v2839_v54  ;;  %2920 = vmax.xlane.f32.xlu1 %v6742_v7 }
 0xd26   : > { %2859 = vst.msk [vmem:[%s4531_s5 + $0x78] sm:$0xff] %vm2843_vm2, %v2842_v37  ;;  %vm2875_vm10 = vcmp.eq.s32.totalorder %v4263_v11, %v2842_v37 }
 0xd27   : > { %v6749_v48 = vsel %vm2875_vm10, -inf, %v6413_v38 }
 0xd28   : > { %2922 = vmax.xlane.f32.xlu0 %v6749_v48 }
 0xd75   : > { %v2893_v9 = vpop.xlane.xlu1 %2892 }
 0xd76   : > { %vm2924_vm4 = vcmp.eq.f32.partialorder %v6631_v20, %v2893_v9 }
 0xd77   : > { %v6754_v31 = vsel %vm2924_vm4, %v4263_v11, 128 }
 0xd78   : > { %v2957_v26 = vshra.s32 %v6754_v31, 16 }
 0xd79   : > { %v2895_v2 = vpop.xlane.xlu0 %2894 }
 0xd7a   : > { %v6757_v47 = vcvt.s32.f32 %v2957_v26  ;;  %vm2925_vm2 = vcmp.eq.f32.partialorder %v6639_v40, %v2895_v2 }
 0xd7b   : > { %v6761_v25 = vsel %vm2925_vm2, %v4263_v11, 128 }
 0xd7c   : > { %v2971_v38 = vshra.s32 %v6761_v25, 16  ;;  %2960 = vmin.xlane.f32.xlu1 %v6757_v47 }
 0xd7d   : > { %v2897_v46 = vpop.xlane.xlu1 %2896 }
 0xd7e   : > { %v6765_v53 = vcvt.s32.f32 %v2971_v38  ;;  %vm2926_vm11 = vcmp.eq.f32.partialorder %v6647_v24, %v2897_v46 }
 0xd7f   : > { %v6769_v35 = vsel %vm2926_vm11, %v4263_v11, 128 }
 0xd80   : > { %v2985_v62 = vshra.s32 %v6769_v35, 16  ;;  %2974 = vmin.xlane.f32.xlu0 %v6765_v53 }
 0xd81   : > { %v2899_v10 = vpop.xlane.xlu0 %2898 }
 0xd82   : > { %v6773_v32 = vcvt.s32.f32 %v2985_v62  ;;  %vm2927_vm12 = vcmp.eq.f32.partialorder %v6655_v39, %v2899_v10 }
 0xd83   : > { %v6777_v56 = vsel %vm2927_vm12, %v4263_v11, 128 }
 0xd84   : > { %v2999_v60 = vshra.s32 %v6777_v56, 16  ;;  %2988 = vmin.xlane.f32.xlu1 %v6773_v32 }
 0xd85   : > { %v2909_v44 = vpop.xlane.xlu1 %2908 }
 0xd86   : > { %v6781_v5 = vcvt.s32.f32 %v2999_v60  ;;  %vm2932_vm13 = vcmp.eq.f32.partialorder %v6663_v4, %v2909_v44 }
 0xd87   : > { %v6785_v55 = vsel %vm2932_vm13, %v4263_v11, 128 }
 0xd88   : > { %v3069_v12 = vshra.s32 %v6785_v55, 16  ;;  %3002 = vmin.xlane.f32.xlu0 %v6781_v5 }
 0xd89   : > { %v2911_v19 = vpop.xlane.xlu0 %2910 }
 0xd8a   : > { %v6789_v41 = vcvt.s32.f32 %v3069_v12  ;;  %vm2933_vm14 = vcmp.eq.f32.partialorder %v6671_v18, %v2911_v19 }
 0xd8b   : > { %v6793_v6 = vsel %vm2933_vm14, %v4263_v11, 128 }
 0xd8c   : > { %v3083_v50 = vshra.s32 %v6793_v6, 16  ;;  %3072 = vmin.xlane.f32.xlu1 %v6789_v41 }
 0xd8d   : > { %v2913_v49 = vpop.xlane.xlu1 %2912 }
 0xd8e   : > { %v6797_v51 = vcvt.s32.f32 %v3083_v50  ;;  %vm2934_vm15 = vcmp.eq.f32.partialorder %v6679_v27, %v2913_v49 }
 0xd8f   : > { %v6801_v0 = vsel %vm2934_vm15, %v4263_v11, 128 }
 0xd90   : > { %v3097_v34 = vshra.s32 %v6801_v0, 16  ;;  %3086 = vmin.xlane.f32.xlu0 %v6797_v51 }
 0xd91   : > { %v2915_v16 = vpop.xlane.xlu0 %2914 }
 0xd92   : > { %v6805_v59 = vcvt.s32.f32 %v3097_v34  ;;  %vm2935_vm0 = vcmp.eq.f32.partialorder %v6687_v15, %v2915_v16 }
 0xd93   : > { %v6809_v43 = vsel %vm2935_vm0, %v4263_v11, 128 }
 0xd94   : > { %v3111_v14 = vshra.s32 %v6809_v43, 16  ;;  %3100 = vmin.xlane.f32.xlu1 %v6805_v59 }
 0xd95   : > { %v2903_v58 = vpop.xlane.xlu0 %2902 }
 0xd96   : > { %v6813_v23 = vcvt.s32.f32 %v3111_v14  ;;  %vm2929_vm1 = vcmp.eq.f32.partialorder %v6695_v33, %v2903_v58 }
 0xd97   : > { %v6817_v28 = vsel %vm2929_vm1, %v4263_v11, 128 }
 0xd98   : > { %v3027_v21 = vshra.s32 %v6817_v28, 16  ;;  %3114 = vmin.xlane.f32.xlu0 %v6813_v23 }
 0xd99   : > { %v2919_v45 = vpop.xlane.xlu0 %2918 }
 0xd9a   : > { %v6821_v17 = vcvt.s32.f32 %v3027_v21  ;;  %vm2937_vm3 = vcmp.eq.f32.partialorder %v6703_v57, %v2919_v45  ;;  %v2956_v21 = vand.u32 65535, %v6754_v31 }
 0xd9b   : > { %v6825_v8 = vsel %vm2937_vm3, %v4263_v11, 128 }
 0xd9c   : > { %v3139_v1 = vshra.s32 %v6825_v8, 16  ;;  %3030 = vmin.xlane.f32.xlu0 %v6821_v17  ;;  %v2958_v45 = vcvt.s32.f32 %v2956_v21 }
 0xd9d   : > { %v2901_v52 = vpop.xlane.xlu1 %2900 }
 0xd9e   : > { %v6829_v22 = vcvt.s32.f32 %v3139_v1  ;;  %vm2928_vm5 = vcmp.eq.f32.partialorder %v6711_v29, %v2901_v52  ;;  %v2970_v1 = vand.u32 65535, %v6761_v25  ;;  %v2998_v25 = vand.u32 65535, %v6777_v56 }
 0xd9f   : > { %v6833_v30 = vsel %vm2928_vm5, %v4263_v11, 128  ;;  %v3082_v56 = vand.u32 65535, %v6793_v6  ;;  %v3110_v6 = vand.u32 65535, %v6809_v43  ;;  %v3138_v43 = vand.u32 65535, %v6825_v8 }
 0xda0   : > { %v3013_v13 = vshra.s32 %v6833_v30, 16  ;;  %3142 = vmin.xlane.f32.xlu0 %v6829_v22 }
 0xda1   : > { %v2917_v36 = vpop.xlane.xlu1 %2916 }
 0xda2   : > { %v6837_v42 = vcvt.s32.f32 %v3013_v13  ;;  %vm2936_vm6 = vcmp.eq.f32.partialorder %v6719_v61, %v2917_v36  ;;  %v2972_v36 = vcvt.s32.f32 %v2970_v1 }
 0xda3   : > { %v6841_v54 = vsel %vm2936_vm6, %v4263_v11, 128 }
 0xda4   : > { %v3125_v37 = vshra.s32 %v6841_v54, 16  ;;  %3016 = vmin.xlane.f32.xlu1 %v6837_v42  ;;  %v3124_v8 = vand.u32 65535, %v6841_v54 }
 0xda5   : > { %v2907_v9 = vpop.xlane.xlu0 %2906 }
 0xda6   : > { %v6845_v26 = vcvt.s32.f32 %v3125_v37  ;;  %vm2931_vm7 = vcmp.eq.f32.partialorder %v6727_v3, %v2907_v9  ;;  %v2984_v37 = vand.u32 65535, %v6769_v35  ;;  %v3068_v35 = vand.u32 65535, %v6785_v55 }
 0xda7   : > { %v6849_v2 = vsel %vm2931_vm7, %v4263_v11, 128  ;;  %v3096_v55 = vand.u32 65535, %v6801_v0  ;;  %v3026_v0 = vand.u32 65535, %v6817_v28  ;;  %v3012_v28 = vand.u32 65535, %v6833_v30 }
 0xda8   : > { %v3055_v38 = vshra.s32 %v6849_v2, 16  ;;  %3128 = vmin.xlane.f32.xlu1 %v6845_v26  ;;  %v2986_v31 = vcvt.s32.f32 %v2984_v37  ;;  %v3054_v30 = vand.u32 65535, %v6849_v2 }
 0xda9   : > { %v2905_v46 = vpop.xlane.xlu1 %2904  ;;  %v3028_v37 = vcvt.s32.f32 %v3026_v0 }
 0xdaa   : > { %v6853_v62 = vcvt.s32.f32 %v3055_v38  ;;  %vm2930_vm8 = vcmp.eq.f32.partialorder %v6735_v63, %v2905_v46 }
 0xdab   : > { %v6857_v10 = vsel %vm2930_vm8, %v4263_v11, 128 }
 0xdac   : > { %v3041_v60 = vshra.s32 %v6857_v10, 16  ;;  %3058 = vmin.xlane.f32.xlu0 %v6853_v62  ;;  %v3040_v54 = vand.u32 65535, %v6857_v10 }
 0xdad   : > { %v2921_v44 = vpop.xlane.xlu1 %2920 }
 0xdae   : > { %v6861_v12 = vcvt.s32.f32 %v3041_v60  ;;  %vm2938_vm9 = vcmp.eq.f32.partialorder %v6742_v7, %v2921_v44  ;;  %v3000_v60 = vcvt.s32.f32 %v2998_v25 }
 0xdaf   : > { %v6865_v19 = vsel %vm2938_vm9, %v4263_v11, 128 }
 0xdb0   : > { %v3153_v50 = vshra.s32 %v6865_v19, 16  ;;  %3044 = vmin.xlane.f32.xlu1 %v6861_v12  ;;  %v3152_v2 = vand.u32 65535, %v6865_v19 }
 0xdb1   : > { %v2923_v49 = vpop.xlane.xlu0 %2922 }
 0xdb2   : > { %v6869_v34 = vcvt.s32.f32 %v3153_v50  ;;  %vm2939_vm10 = vcmp.eq.f32.partialorder %v6749_v48, %v2923_v49  ;;  %v3070_v50 = vcvt.s32.f32 %v3068_v35  ;;  %v3126_v35 = vcvt.s32.f32 %v3124_v8 }
 0xdb3   : > { %v6873_v16 = vsel %vm2939_vm10, %v4263_v11, 128 }
 0xdb4   : > { %v3167_v14 = vshra.s32 %v6873_v16, 16  ;;  %3156 = vmin.xlane.f32.xlu1 %v6869_v34  ;;  %v3166_v10 = vand.u32 65535, %v6873_v16 }
 0xdb6   : > { %v6877_v58 = vcvt.s32.f32 %v3167_v14  ;;  %v3084_v14 = vcvt.s32.f32 %v3082_v56 }
 0xdb8   : > { %3170 = vmin.xlane.f32.xlu0 %v6877_v58 }
 0xe05   : > { %v6882_v52 = vpop.xlane.xlu1 %2960 }
 0xe06   : > { %vm2962_vm4 = vcmp.eq.f32.partialorder %v6757_v47, %v6882_v52 }
 0xe07   : > { %v2963_v13 = vsel %vm2962_vm4, %v2958_v45, inf  ;;  %v3098_v45 = vcvt.s32.f32 %v3096_v55  ;;  %v3154_v55 = vcvt.s32.f32 %v3152_v2  ;;  %vm3180_vm4 = vcmask 64568  }
 0xe08   : > { %2964 = vmin.xlane.f32.xlu1 %v2963_v13  ;;  %v3112_v13 = vcvt.s32.f32 %v3110_v6  ;;  %v2967_v6 = vcvt.f32.s32 %v6882_v52 }
 0xe09   : > { %v6887_v9 = vpop.xlane.xlu0 %2974 }
 0xe0a   : > { %vm2976_vm2 = vcmp.eq.f32.partialorder %v6765_v53, %v6887_v9  ;;  %v2968_v16 = vshll.u32 %v2967_v6, 16 }
 0xe0b   : > { %v2977_v38 = vsel %vm2976_vm2, %v2972_v36, inf }
 0xe0c   : > { %2978 = vmin.xlane.f32.xlu0 %v2977_v38 }
 0xe0d   : > { %v6892_v46 = vpop.xlane.xlu1 %2988 }
 0xe0e   : > { %vm2990_vm11 = vcmp.eq.f32.partialorder %v6773_v32, %v6892_v46 }
 0xe0f   : > { %v2991_v47 = vsel %vm2990_vm11, %v2986_v31, inf  ;;  %v3140_v31 = vcvt.s32.f32 %v3138_v43  ;;  %v2995_v43 = vcvt.f32.s32 %v6892_v46 }
 0xe10   : > { %2992 = vmin.xlane.f32.xlu1 %v2991_v47  ;;  %v3014_v47 = vcvt.s32.f32 %v3012_v28 }
 0xe11   : > { %v6897_v44 = vpop.xlane.xlu0 %3002 }
 0xe12   : > { %vm3004_vm12 = vcmp.eq.f32.partialorder %v6781_v5, %v6897_v44  ;;  %v3009_v28 = vcvt.f32.s32 %v6897_v44 }
 0xe13   : > { %v3005_v53 = vsel %vm3004_vm12, %v3000_v60, inf }
 0xe14   : > { %3006 = vmin.xlane.f32.xlu0 %v3005_v53  ;;  %v3010_v8 = vshll.u32 %v3009_v28, 16 }
 0xe15   : > { %v6902_v49 = vpop.xlane.xlu1 %3072 }
 0xe16   : > { %vm3074_vm13 = vcmp.eq.f32.partialorder %v6789_v41, %v6902_v49 }
 0xe17   : > { %v3075_v32 = vsel %vm3074_vm13, %v3070_v50, inf  ;;  %v3056_v50 = vcvt.s32.f32 %v3054_v30 }
 0xe18   : > { %3076 = vmin.xlane.f32.xlu1 %v3075_v32  ;;  %v3042_v32 = vcvt.s32.f32 %v3040_v54 }
 0xe19   : > { %v6907_v21 = vpop.xlane.xlu0 %3086 }
 0xe1a   : > { %vm3088_vm14 = vcmp.eq.f32.partialorder %v6797_v51, %v6907_v21 }
 0xe1b   : > { %v3089_v5 = vsel %vm3088_vm14, %v3084_v14, inf }
 0xe1c   : > { %3090 = vmin.xlane.f32.xlu0 %v3089_v5 }
 0xe1d   : > { %v6912_v1 = vpop.xlane.xlu1 %3100 }
 0xe1e   : > { %vm3102_vm15 = vcmp.eq.f32.partialorder %v6805_v59, %v6912_v1  ;;  %v3107_v2 = vcvt.f32.s32 %v6912_v1 }
 0xe1f   : > { %v3103_v41 = vsel %vm3102_vm15, %v3098_v45, inf  ;;  %v3168_v45 = vcvt.s32.f32 %v3166_v10 }
 0xe20   : > { %3104 = vmin.xlane.f32.xlu1 %v3103_v41  ;;  %v3108_v10 = vshll.u32 %v3107_v2, 16 }
 0xe21   : > { %v6917_v36 = vpop.xlane.xlu0 %3114 }
 0xe22   : > { %vm3116_vm0 = vcmp.eq.f32.partialorder %v6813_v23, %v6917_v36 }
 0xe23   : > { %v3117_v51 = vsel %vm3116_vm0, %v3112_v13, inf  ;;  %v2981_v13 = vcvt.f32.s32 %v6887_v9 }
 0xe24   : > { %3118 = vmin.xlane.f32.xlu0 %v3117_v51 }
 0xe25   : > { %v6922_v38 = vpop.xlane.xlu0 %3030 }
 0xe26   : > { %vm3032_vm1 = vcmp.eq.f32.partialorder %v6821_v17, %v6922_v38 }
 0xe27   : > { %v3033_v59 = vsel %vm3032_vm1, %v3028_v37, inf  ;;  %v2982_v37 = vshll.u32 %v2981_v13, 16 }
 0xe28   : > { %3034 = vmin.xlane.f32.xlu0 %v3033_v59 }
 0xe29   : > { %v6927_v25 = vpop.xlane.xlu0 %3142 }
 0xe2a   : > { %vm3144_vm3 = vcmp.eq.f32.partialorder %v6829_v22, %v6927_v25 }
 0xe2b   : > { %v3145_v23 = vsel %vm3144_vm3, %v3140_v31, inf  ;;  %v2996_v31 = vshll.u32 %v2995_v43, 16 }
 0xe2c   : > { %3146 = vmin.xlane.f32.xlu0 %v3145_v23 }
 0xe2d   : > { %v6932_v60 = vpop.xlane.xlu1 %3016 }
 0xe2e   : > { %vm3018_vm5 = vcmp.eq.f32.partialorder %v6837_v42, %v6932_v60 }
 0xe2f   : > { %v3019_v17 = vsel %vm3018_vm5, %v3014_v47, inf }
 0xe30   : > { %3020 = vmin.xlane.f32.xlu1 %v3019_v17  ;;  %v3079_v17 = vcvt.f32.s32 %v6902_v49 }
 0xe31   : > { %v6937_v53 = vpop.xlane.xlu1 %3128 }
 0xe32   : > { %vm3130_vm6 = vcmp.eq.f32.partialorder %v6845_v26, %v6937_v53  ;;  %v3135_v28 = vcvt.f32.s32 %v6937_v53 }
 0xe33   : > { %v3131_v22 = vsel %vm3130_vm6, %v3126_v35, inf }
 0xe34   : > { %3132 = vmin.xlane.f32.xlu1 %v3131_v22  ;;  %v3080_v22 = vshll.u32 %v3079_v17, 16 }
 0xe35   : > { %v6942_v56 = vpop.xlane.xlu0 %3058 }
 0xe36   : > { %vm3060_vm7 = vcmp.eq.f32.partialorder %v6853_v62, %v6942_v56 }
 0xe37   : > { %v3061_v42 = vsel %vm3060_vm7, %v3056_v50, inf  ;;  %v3093_v50 = vcvt.f32.s32 %v6907_v21 }
 0xe38   : > { %3062 = vmin.xlane.f32.xlu0 %v3061_v42 }
 0xe39   : > { %v6947_v14 = vpop.xlane.xlu1 %3044 }
 0xe3a   : > { %vm3046_vm8 = vcmp.eq.f32.partialorder %v6861_v12, %v6947_v14 }
 0xe3b   : > { %v3047_v26 = vsel %vm3046_vm8, %v3042_v32, inf  ;;  %v3094_v32 = vshll.u32 %v3093_v50, 16 }
 0xe3c   : > { %3048 = vmin.xlane.f32.xlu1 %v3047_v26 }
 0xe3d   : > { %v6952_v5 = vpop.xlane.xlu1 %3156 }
 0xe3e   : > { %vm3158_vm9 = vcmp.eq.f32.partialorder %v6869_v34, %v6952_v5 }
 0xe3f   : > { %v3159_v62 = vsel %vm3158_vm9, %v3154_v55, inf }
 0xe40   : > { %3160 = vmin.xlane.f32.xlu1 %v3159_v62  ;;  %v3121_v62 = vcvt.f32.s32 %v6917_v36 }
 0xe41   : > { %v6956_v19 = vpop.xlane.xlu0 %3170 }
 0xe42   : > { %vm3172_vm10 = vcmp.eq.f32.partialorder %v6877_v58, %v6956_v19  ;;  %v3122_v6 = vshll.u32 %v3121_v62, 16 }
 0xe43   : > { %v3173_v12 = vsel %vm3172_vm10, %v3168_v45, inf }
 0xe44   : > { %3174 = vmin.xlane.f32.xlu0 %v3173_v12 }
 0xe91   : > { %v2965_v41 = vpop.xlane.xlu1 %2964 }
 0xe92   : > { %v2966_v0 = vcvt.f32.s32 %v2965_v41  ;;  %v3037_v41 = vcvt.f32.s32 %v6922_v38 }
 0xe94   : > { %v2969_v34 = vadd.s32 %v2968_v16, %v2966_v0  ;;  %v3038_v0 = vshll.u32 %v3037_v41, 16 }
 0xe95   : > { %v2979_v51 = vpop.xlane.xlu0 %2978 }
 0xe96   : > { %3181 = vst.msk [vmem:[%s4531_s5] sm:$0xff] %vm3180_vm4, %v2969_v34  ;;  %v2980_v59 = vcvt.f32.s32 %v2979_v51  ;;  %vm3197_vm2 = vcmp.eq.s32.totalorder %v4263_v11, %v2969_v34  ;;  %v3149_v34 = vcvt.f32.s32 %v6927_v25 }
 0xe97   : > { %v6967_v58 = vsel %vm3197_vm2, -inf, %v6631_v20 }
 0xe98   : > { %v2983_v52 = vadd.s32 %v2982_v37, %v2980_v59  ;;  %3229 = vmax.xlane.f32.xlu1 %v6967_v58  ;;  %v3150_v43 = vshll.u32 %v3149_v34, 16  ;;  %v3023_v59 = vcvt.f32.s32 %v6932_v60 }
 0xe99   : > { %v2993_v9 = vpop.xlane.xlu1 %2992 }
 0xe9a   : > { %3182 = vst.msk [vmem:[%s4531_s5 + $0x8] sm:$0xff] %vm3180_vm4, %v2983_v52  ;;  %v2994_v23 = vcvt.f32.s32 %v2993_v9  ;;  %vm3198_vm11 = vcmp.eq.s32.totalorder %v4263_v11, %v2983_v52 }
 0xe9b   : > { %v6975_v46 = vsel %vm3198_vm11, -inf, %v6639_v40 }
 0xe9c   : > { %v2997_v47 = vadd.s32 %v2996_v31, %v2994_v23  ;;  %3231 = vmax.xlane.f32.xlu0 %v6975_v46  ;;  %v3024_v31 = vshll.u32 %v3023_v59, 16 }
 0xe9d   : > { %v3007_v20 = vpop.xlane.xlu0 %3006 }
 0xe9e   : > { %3183 = vst.msk [vmem:[%s4531_s5 + $0x10] sm:$0xff] %vm3180_vm4, %v2997_v47  ;;  %v3008_v35 = vcvt.f32.s32 %v3007_v20  ;;  %vm3199_vm12 = vcmp.eq.s32.totalorder %v4263_v11, %v2997_v47  ;;  %v3136_v20 = vshll.u32 %v3135_v28, 16 }
 0xe9f   : > { %v6983_v44 = vsel %vm3199_vm12, -inf, %v6647_v24 }
 0xea0   : > { %v3011_v30 = vadd.s32 %v3010_v8, %v3008_v35  ;;  %3233 = vmax.xlane.f32.xlu1 %v6983_v44  ;;  %v3065_v8 = vcvt.f32.s32 %v6942_v56 }
 0xea1   : > { %v3077_v40 = vpop.xlane.xlu1 %3076 }
 0xea2   : > { %3184 = vst.msk [vmem:[%s4531_s5 + $0x18] sm:$0xff] %vm3180_vm4, %v3011_v30  ;;  %v3078_v54 = vcvt.f32.s32 %v3077_v40  ;;  %vm3200_vm13 = vcmp.eq.s32.totalorder %v4263_v11, %v3011_v30  ;;  %v3066_v30 = vshll.u32 %v3065_v8, 16  ;;  %v3051_v40 = vcvt.f32.s32 %v6947_v14 }
 0xea3   : > { %v6991_v49 = vsel %vm3200_vm13, -inf, %v6655_v39 }
 0xea4   : > { %v3081_v42 = vadd.s32 %v3080_v22, %v3078_v54  ;;  %3235 = vmax.xlane.f32.xlu0 %v6991_v49  ;;  %v3052_v54 = vshll.u32 %v3051_v40, 16 }
 0xea5   : > { %v3091_v24 = vpop.xlane.xlu0 %3090 }
 0xea6   : > { %3189 = vst.msk [vmem:[%s4531_s5 + $0x40] sm:$0xff] %vm3180_vm4, %v3081_v42  ;;  %v3092_v26 = vcvt.f32.s32 %v3091_v24  ;;  %vm3205_vm14 = vcmp.eq.s32.totalorder %v4263_v11, %v3081_v42  ;;  %v3163_v42 = vcvt.f32.s32 %v6952_v5 }
 0xea7   : > { %v6999_v21 = vsel %vm3205_vm14, -inf, %v6663_v4 }
 0xea8   : > { %v3095_v55 = vadd.s32 %v3094_v32, %v3092_v26  ;;  %3245 = vmax.xlane.f32.xlu1 %v6999_v21  ;;  %v3164_v2 = vshll.u32 %v3163_v42, 16  ;;  %v3177_v26 = vcvt.f32.s32 %v6956_v19 }
 0xea9   : > { %v3105_v39 = vpop.xlane.xlu1 %3104 }
 0xeaa   : > { %3190 = vst.msk [vmem:[%s4531_s5 + $0x48] sm:$0xff] %vm3180_vm4, %v3095_v55  ;;  %v3106_v45 = vcvt.f32.s32 %v3105_v39  ;;  %vm3206_vm15 = vcmp.eq.s32.totalorder %v4263_v11, %v3095_v55 }
 0xeab   : > { %v7007_v1 = vsel %vm3206_vm15, -inf, %v6671_v18 }
 0xeac   : > { %v3109_v12 = vadd.s32 %v3108_v10, %v3106_v45  ;;  %3247 = vmax.xlane.f32.xlu0 %v7007_v1  ;;  %v3178_v10 = vshll.u32 %v3177_v26, 16 }
 0xead   : > { %v3119_v4 = vpop.xlane.xlu0 %3118 }
 0xeae   : > { %3191 = vst.msk [vmem:[%s4531_s5 + $0x50] sm:$0xff] %vm3180_vm4, %v3109_v12  ;;  %v3120_v16 = vcvt.f32.s32 %v3119_v4  ;;  %vm3207_vm0 = vcmp.eq.s32.totalorder %v4263_v11, %v3109_v12 }
 0xeaf   : > { %v7015_v36 = vsel %vm3207_vm0, -inf, %v6679_v27 }
 0xeb0   : > { %v3123_v13 = vadd.s32 %v3122_v6, %v3120_v16  ;;  %3249 = vmax.xlane.f32.xlu1 %v7015_v36 }
 0xeb1   : > { %v3035_v18 = vpop.xlane.xlu0 %3034 }
 0xeb2   : > { %3192 = vst.msk [vmem:[%s4531_s5 + $0x58] sm:$0xff] %vm3180_vm4, %v3123_v13  ;;  %v3036_v51 = vcvt.f32.s32 %v3035_v18  ;;  %vm3208_vm1 = vcmp.eq.s32.totalorder %v4263_v11, %v3123_v13 }
 0xeb3   : > { %v7023_v38 = vsel %vm3208_vm1, -inf, %v6687_v15 }
 0xeb4   : > { %v3039_v37 = vadd.s32 %v3038_v0, %v3036_v51  ;;  %3251 = vmax.xlane.f32.xlu0 %v7023_v38 }
 0xeb5   : > { %v3147_v27 = vpop.xlane.xlu0 %3146 }
 0xeb6   : > { %3186 = vst.msk [vmem:[%s4531_s5 + $0x28] sm:$0xff] %vm3180_vm4, %v3039_v37  ;;  %v3148_v52 = vcvt.f32.s32 %v3147_v27  ;;  %vm3202_vm3 = vcmp.eq.s32.totalorder %v4263_v11, %v3039_v37 }
 0xeb7   : > { %v7031_v25 = vsel %vm3202_vm3, -inf, %v6695_v33 }
 0xeb8   : > { %v3151_v9 = vadd.s32 %v3150_v43, %v3148_v52  ;;  %3239 = vmax.xlane.f32.xlu0 %v7031_v25 }
 0xeb9   : > { %v3021_v15 = vpop.xlane.xlu1 %3020 }
 0xeba   : > { %3194 = vst.msk [vmem:[%s4531_s5 + $0x68] sm:$0xff] %vm3180_vm4, %v3151_v9  ;;  %v3022_v23 = vcvt.f32.s32 %v3021_v15  ;;  %vm3210_vm5 = vcmp.eq.s32.totalorder %v4263_v11, %v3151_v9 }
 0xebb   : > { %v7039_v60 = vsel %vm3210_vm5, -inf, %v6703_v57 }
 0xebc   : > { %v3025_v47 = vadd.s32 %v3024_v31, %v3022_v23  ;;  %3255 = vmax.xlane.f32.xlu0 %v7039_v60 }
 0xebd   : > { %v3133_v33 = vpop.xlane.xlu1 %3132 }
 0xebe   : > { %3185 = vst.msk [vmem:[%s4531_s5 + $0x20] sm:$0xff] %vm3180_vm4, %v3025_v47  ;;  %v3134_v17 = vcvt.f32.s32 %v3133_v33  ;;  %vm3201_vm6 = vcmp.eq.s32.totalorder %v4263_v11, %v3025_v47 }
 0xebf   : > { %v7047_v53 = vsel %vm3201_vm6, -inf, %v6711_v29 }
 0xec0   : > { %v3137_v35 = vadd.s32 %v3136_v20, %v3134_v17  ;;  %3237 = vmax.xlane.f32.xlu1 %v7047_v53 }
 0xec1   : > { %v3063_v57 = vpop.xlane.xlu0 %3062 }
 0xec2   : > { %3193 = vst.msk [vmem:[%s4531_s5 + $0x60] sm:$0xff] %vm3180_vm4, %v3137_v35  ;;  %v3064_v22 = vcvt.f32.s32 %v3063_v57  ;;  %vm3209_vm7 = vcmp.eq.s32.totalorder %v4263_v11, %v3137_v35 }
 0xec3   : > { %v7055_v56 = vsel %vm3209_vm7, -inf, %v6719_v61 }
 0xec4   : > { %v3067_v50 = vadd.s32 %v3066_v30, %v3064_v22  ;;  %3253 = vmax.xlane.f32.xlu1 %v7055_v56 }
 0xec5   : > { %v3049_v29 = vpop.xlane.xlu1 %3048 }
 0xec6   : > { %3188 = vst.msk [vmem:[%s4531_s5 + $0x38] sm:$0xff] %vm3180_vm4, %v3067_v50  ;;  %v3050_v24 = vcvt.f32.s32 %v3049_v29  ;;  %vm3204_vm8 = vcmp.eq.s32.totalorder %v4263_v11, %v3067_v50 }
 0xec7   : > { %v7063_v14 = vsel %vm3204_vm8, -inf, %v6727_v3 }
 0xec8   : > { %v3053_v32 = vadd.s32 %v3052_v54, %v3050_v24  ;;  %3243 = vmax.xlane.f32.xlu0 %v7063_v14 }
 0xec9   : > { %v3161_v61 = vpop.xlane.xlu1 %3160 }
 0xeca   : > { %3187 = vst.msk [vmem:[%s4531_s5 + $0x30] sm:$0xff] %vm3180_vm4, %v3053_v32  ;;  %v3162_v5 = vcvt.f32.s32 %v3161_v61  ;;  %vm3203_vm9 = vcmp.eq.s32.totalorder %v4263_v11, %v3053_v32 }
 0xecb   : > { %v7071_v55 = vsel %vm3203_vm9, -inf, %v6735_v63 }
 0xecc   : > { %v3165_v39 = vadd.s32 %v3164_v2, %v3162_v5  ;;  %3241 = vmax.xlane.f32.xlu1 %v7071_v55 }
 0xecd   : > { %v3175_v3 = vpop.xlane.xlu0 %3174 }
 0xece   : > { %3195 = vst.msk [vmem:[%s4531_s5 + $0x70] sm:$0xff] %vm3180_vm4, %v3165_v39  ;;  %v3176_v62 = vcvt.f32.s32 %v3175_v3  ;;  %vm3211_vm10 = vcmp.eq.s32.totalorder %v4263_v11, %v3165_v39 }
 0xecf   : > { %v7078_v19 = vsel %vm3211_vm10, -inf, %v6742_v7 }
 0xed0   : > { %v3179_v45 = vadd.s32 %v3178_v10, %v3176_v62  ;;  %3257 = vmax.xlane.f32.xlu1 %v7078_v19 }
 0xed2   : > { %3196 = vst.msk [vmem:[%s4531_s5 + $0x78] sm:$0xff] %vm3180_vm4, %v3179_v45  ;;  %vm3212_vm2 = vcmp.eq.s32.totalorder %v4263_v11, %v3179_v45 }
 0xed3   : > { %v7085_v63 = vsel %vm3212_vm2, -inf, %v6749_v48 }
 0xed4   : > { %3259 = vmax.xlane.f32.xlu0 %v7085_v63 }
 0xf21   : > { %v3230_v12 = vpop.xlane.xlu1 %3229 }
 0xf22   : > { %vm3261_vm11 = vcmp.eq.f32.partialorder %v6967_v58, %v3230_v12 }
 0xf23   : > { %v7090_v4 = vsel %vm3261_vm11, %v4263_v11, 128 }
 0xf24   : > { %v3294_v7 = vshra.s32 %v7090_v4, 16 }
 0xf25   : > { %v3232_v6 = vpop.xlane.xlu0 %3231 }
 0xf26   : > { %v7093_v41 = vcvt.s32.f32 %v3294_v7  ;;  %vm3262_vm4 = vcmp.eq.f32.partialorder %v6975_v46, %v3232_v6  ;;  %v3293_v6 = vand.u32 65535, %v7090_v4 }
 0xf27   : > { %v7097_v16 = vsel %vm3262_vm4, %v4263_v11, 128 }
 0xf28   : > { %v3308_v48 = vshra.s32 %v7097_v16, 16  ;;  %3297 = vmin.xlane.f32.xlu1 %v7093_v41 }
 0xf29   : > { %v3234_v13 = vpop.xlane.xlu1 %3233 }
 0xf2a   : > { %v7101_v18 = vcvt.s32.f32 %v3308_v48  ;;  %vm3263_vm12 = vcmp.eq.f32.partialorder %v6983_v44, %v3234_v13  ;;  %v3295_v48 = vcvt.s32.f32 %v3293_v6  ;;  %v3307_v13 = vand.u32 65535, %v7097_v16 }
 0xf2b   : > { %v7105_v58 = vsel %vm3263_vm12, %v4263_v11, 128 }
 0xf2c   : > { %v3322_v0 = vshra.s32 %v7105_v58, 16  ;;  %3311 = vmin.xlane.f32.xlu0 %v7101_v18 }
 0xf2d   : > { %v3236_v46 = vpop.xlane.xlu0 %3235 }
 0xf2e   : > { %v7109_v34 = vcvt.s32.f32 %v3322_v0  ;;  %vm3264_vm13 = vcmp.eq.f32.partialorder %v6991_v49, %v3236_v46  ;;  %v3321_v46 = vand.u32 65535, %v7105_v58 }
 0xf2f   : > { %v7113_v51 = vsel %vm3264_vm13, %v4263_v11, 128 }
 0xf30   : > { %v3336_v37 = vshra.s32 %v7113_v51, 16  ;;  %3325 = vmin.xlane.f32.xlu1 %v7109_v34  ;;  %v3323_v4 = vcvt.s32.f32 %v3321_v46  ;;  %v3335_v16 = vand.u32 65535, %v7113_v51 }
 0xf31   : > { %v3246_v44 = vpop.xlane.xlu1 %3245 }
 0xf32   : > { %v7117_v27 = vcvt.s32.f32 %v3336_v37  ;;  %vm3269_vm14 = vcmp.eq.f32.partialorder %v6999_v21, %v3246_v44 }
 0xf33   : > { %v7121_v43 = vsel %vm3269_vm14, %v4263_v11, 128 }
 0xf34   : > { %v3406_v59 = vshra.s32 %v7121_v43, 16  ;;  %3339 = vmin.xlane.f32.xlu0 %v7117_v27  ;;  %v3405_v58 = vand.u32 65535, %v7121_v43 }
 0xf35   : > { %v3248_v49 = vpop.xlane.xlu0 %3247 }
 0xf36   : > { %v7125_v52 = vcvt.s32.f32 %v3406_v59  ;;  %vm3270_vm15 = vcmp.eq.f32.partialorder %v7007_v1, %v3248_v49  ;;  %v3337_v49 = vcvt.s32.f32 %v3335_v16 }
 0xf37   : > { %v7129_v9 = vsel %vm3270_vm15, %v4263_v11, 128 }
 0xf38   : > { %v3420_v15 = vshra.s32 %v7129_v9, 16  ;;  %3409 = vmin.xlane.f32.xlu1 %v7125_v52  ;;  %v3419_v51 = vand.u32 65535, %v7129_v9 }
 0xf39   : > { %v3250_v21 = vpop.xlane.xlu1 %3249 }
 0xf3a   : > { %v7133_v31 = vcvt.s32.f32 %v3420_v15  ;;  %vm3271_vm0 = vcmp.eq.f32.partialorder %v7015_v36, %v3250_v21  ;;  %v3407_v21 = vcvt.s32.f32 %v3405_v58 }
 0xf3b   : > { %v7137_v28 = vsel %vm3271_vm0, %v4263_v11, 128 }
 0xf3c   : > { %v3434_v23 = vshra.s32 %v7137_v28, 16  ;;  %3423 = vmin.xlane.f32.xlu0 %v7133_v31  ;;  %v3433_v43 = vand.u32 65535, %v7137_v28 }
 0xf3d   : > { %v3252_v1 = vpop.xlane.xlu0 %3251 }
 0xf3e   : > { %v7141_v47 = vcvt.s32.f32 %v3434_v23  ;;  %vm3272_vm1 = vcmp.eq.f32.partialorder %v7023_v38, %v3252_v1  ;;  %v3421_v1 = vcvt.s32.f32 %v3419_v51 }
 0xf3f   : > { %v7145_v33 = vsel %vm3272_vm1, %v4263_v11, 128 }
 0xf40   : > { %v3448_v20 = vshra.s32 %v7145_v33, 16  ;;  %3437 = vmin.xlane.f32.xlu1 %v7141_v47  ;;  %v3447_v9 = vand.u32 65535, %v7145_v33 }
 0xf41   : > { %v3240_v36 = vpop.xlane.xlu0 %3239 }
 0xf42   : > { %v7149_v8 = vcvt.s32.f32 %v3448_v20  ;;  %vm3266_vm3 = vcmp.eq.f32.partialorder %v7031_v25, %v3240_v36  ;;  %v3435_v36 = vcvt.s32.f32 %v3433_v43 }
 0xf43   : > { %v7153_v17 = vsel %vm3266_vm3, %v4263_v11, 128 }
 0xf44   : > { %v3364_v35 = vshra.s32 %v7153_v17, 16  ;;  %3451 = vmin.xlane.f32.xlu0 %v7149_v8  ;;  %v3363_v28 = vand.u32 65535, %v7153_v17 }
 0xf45   : > { %v3256_v38 = vpop.xlane.xlu0 %3255 }
 0xf46   : > { %v7157_v57 = vcvt.s32.f32 %v3364_v35  ;;  %vm3274_vm5 = vcmp.eq.f32.partialorder %v7039_v60, %v3256_v38  ;;  %v3449_v38 = vcvt.s32.f32 %v3447_v9 }
 0xf47   : > { %v7161_v30 = vsel %vm3274_vm5, %v4263_v11, 128 }
 0xf48   : > { %v3476_v40 = vshra.s32 %v7161_v30, 16  ;;  %3367 = vmin.xlane.f32.xlu0 %v7157_v57  ;;  %v3475_v33 = vand.u32 65535, %v7161_v30 }
 0xf49   : > { %v3238_v25 = vpop.xlane.xlu1 %3237 }
 0xf4a   : > { %v7165_v22 = vcvt.s32.f32 %v3476_v40  ;;  %vm3265_vm6 = vcmp.eq.f32.partialorder %v7047_v53, %v3238_v25  ;;  %v3365_v25 = vcvt.s32.f32 %v3363_v28 }
 0xf4b   : > { %v7169_v50 = vsel %vm3265_vm6, %v4263_v11, 128 }
 0xf4c   : > { %v3350_v29 = vshra.s32 %v7169_v50, 16  ;;  %3479 = vmin.xlane.f32.xlu0 %v7165_v22  ;;  %v3349_v17 = vand.u32 65535, %v7169_v50 }
 0xf4d   : > { %v3254_v60 = vpop.xlane.xlu1 %3253 }
 0xf4e   : > { %v7173_v54 = vcvt.s32.f32 %v3350_v29  ;;  %vm3273_vm7 = vcmp.eq.f32.partialorder %v7055_v56, %v3254_v60  ;;  %v3477_v60 = vcvt.s32.f32 %v3475_v33 }
 0xf4f   : > { %v7177_v42 = vsel %vm3273_vm7, %v4263_v11, 128 }
 0xf50   : > { %v3462_v24 = vshra.s32 %v7177_v42, 16  ;;  %3353 = vmin.xlane.f32.xlu1 %v7173_v54  ;;  %v3461_v30 = vand.u32 65535, %v7177_v42 }
 0xf51   : > { %v3244_v53 = vpop.xlane.xlu0 %3243 }
 0xf52   : > { %v7181_v32 = vcvt.s32.f32 %v3462_v24  ;;  %vm3268_vm8 = vcmp.eq.f32.partialorder %v7063_v14, %v3244_v53  ;;  %v3351_v53 = vcvt.s32.f32 %v3349_v17 }
 0xf53   : > { %v7185_v61 = vsel %vm3268_vm8, %v4263_v11, 128 }
 0xf54   : > { %v3392_v2 = vshra.s32 %v7185_v61, 16  ;;  %3465 = vmin.xlane.f32.xlu1 %v7181_v32  ;;  %v3391_v50 = vand.u32 65535, %v7185_v61 }
 0xf55   : > { %v3242_v56 = vpop.xlane.xlu1 %3241 }
 0xf56   : > { %v7189_v26 = vcvt.s32.f32 %v3392_v2  ;;  %vm3267_vm9 = vcmp.eq.f32.partialorder %v7071_v55, %v3242_v56  ;;  %v3463_v56 = vcvt.s32.f32 %v3461_v30 }
 0xf57   : > { %v7193_v5 = vsel %vm3267_vm9, %v4263_v11, 128 }
 0xf58   : > { %v3378_v39 = vshra.s32 %v7193_v5, 16  ;;  %3395 = vmin.xlane.f32.xlu0 %v7189_v26  ;;  %v3377_v42 = vand.u32 65535, %v7193_v5 }
 0xf59   : > { %v3258_v14 = vpop.xlane.xlu1 %3257 }
 0xf5a   : > { %v7197_v3 = vcvt.s32.f32 %v3378_v39  ;;  %vm3275_vm10 = vcmp.eq.f32.partialorder %v7078_v19, %v3258_v14  ;;  %v3393_v14 = vcvt.s32.f32 %v3391_v50 }
 0xf5b   : > { %v7201_v10 = vsel %vm3275_vm10, %v4263_v11, 128 }
 0xf5c   : > { %v3490_v62 = vshra.s32 %v7201_v10, 16  ;;  %3381 = vmin.xlane.f32.xlu1 %v7197_v3  ;;  %v3489_v61 = vand.u32 65535, %v7201_v10 }
 0xf5d   : > { %v3260_v55 = vpop.xlane.xlu0 %3259 }
 0xf5e   : > { %v7205_v45 = vcvt.s32.f32 %v3490_v62  ;;  %vm3276_vm2 = vcmp.eq.f32.partialorder %v7085_v63, %v3260_v55  ;;  %v3309_v63 = vcvt.s32.f32 %v3307_v13  ;;  %v3379_v55 = vcvt.s32.f32 %v3377_v42 }
 0xf5f   : > { %v7209_v12 = vsel %vm3276_vm2, %v4263_v11, 128  ;;  %v3491_v6 = vcvt.s32.f32 %v3489_v61 }
 0xf60   : > { %v3504_v7 = vshra.s32 %v7209_v12, 16  ;;  %3493 = vmin.xlane.f32.xlu1 %v7205_v45  ;;  %v3503_v5 = vand.u32 65535, %v7209_v12 }
 0xf62   : > { %v7213_v19 = vcvt.s32.f32 %v3504_v7  ;;  %v3505_v13 = vcvt.s32.f32 %v3503_v5 }
 0xf64   : > { %3507 = vmin.xlane.f32.xlu0 %v7213_v19 }
 0xfb1   : > { %v7218_v0 = vpop.xlane.xlu1 %3297 }
 0xfb2   : > { %vm3299_vm11 = vcmp.eq.f32.partialorder %v7093_v41, %v7218_v0 }
 0xfb3   : > { %v3300_v11 = vsel %vm3299_vm11, %v3295_v48, inf  ;;  %vm3517_vm11 = vcmask 72768  }
 0xfb4   : > { %3301 = vmin.xlane.f32.xlu1 %v3300_v11  ;;  %v3304_v11 = vcvt.f32.s32 %v7218_v0 }
 0xfb5   : > { %v7223_v37 = vpop.xlane.xlu0 %3311 }
 0xfb6   : > { %vm3313_vm4 = vcmp.eq.f32.partialorder %v7101_v18, %v7223_v37  ;;  %v3318_v46 = vcvt.f32.s32 %v7223_v37 }
 0xfb7   : > { %v3314_v44 = vsel %vm3313_vm4, %v3309_v63, inf  ;;  %v3305_v63 = vshll.u32 %v3304_v11, 16 }
 0xfb8   : > { %3315 = vmin.xlane.f32.xlu0 %v3314_v44  ;;  %v3319_v16 = vshll.u32 %v3318_v46, 16 }
 0xfb9   : > { %v7228_v59 = vpop.xlane.xlu1 %3325 }
 0xfba   : > { %vm3327_vm12 = vcmp.eq.f32.partialorder %v7109_v34, %v7228_v59 }
 0xfbb   : > { %v3328_v41 = vsel %vm3327_vm12, %v3323_v4, inf }
 0xfbc   : > { %3329 = vmin.xlane.f32.xlu1 %v3328_v41  ;;  %v3332_v41 = vcvt.f32.s32 %v7228_v59 }
 0xfbd   : > { %v7233_v15 = vpop.xlane.xlu0 %3339 }
 0xfbe   : > { %vm3341_vm13 = vcmp.eq.f32.partialorder %v7117_v27, %v7233_v15  ;;  %v3333_v0 = vshll.u32 %v3332_v41, 16 }
 0xfbf   : > { %v3342_v18 = vsel %vm3341_vm13, %v3337_v49, inf }
 0xfc0   : > { %3343 = vmin.xlane.f32.xlu0 %v3342_v18  ;;  %v3346_v18 = vcvt.f32.s32 %v7233_v15 }
 0xfc1   : > { %v7238_v23 = vpop.xlane.xlu1 %3409 }
 0xfc2   : > { %vm3411_vm14 = vcmp.eq.f32.partialorder %v7125_v52, %v7238_v23 }
 0xfc3   : > { %v3412_v34 = vsel %vm3411_vm14, %v3407_v21, inf }
 0xfc4   : > { %3413 = vmin.xlane.f32.xlu1 %v3412_v34  ;;  %v3347_v34 = vshll.u32 %v3346_v18, 16 }
 0xfc5   : > { %v7243_v20 = vpop.xlane.xlu0 %3423 }
 0xfc6   : > { %vm3425_vm15 = vcmp.eq.f32.partialorder %v7133_v31, %v7243_v20  ;;  %v3430_v9 = vcvt.f32.s32 %v7243_v20 }
 0xfc7   : > { %v3426_v27 = vsel %vm3425_vm15, %v3421_v1, inf  ;;  %v3416_v1 = vcvt.f32.s32 %v7238_v23 }
 0xfc8   : > { %3427 = vmin.xlane.f32.xlu0 %v3426_v27  ;;  %v3431_v28 = vshll.u32 %v3430_v9, 16 }
 0xfc9   : > { %v7248_v35 = vpop.xlane.xlu1 %3437 }
 0xfca   : > { %vm3439_vm0 = vcmp.eq.f32.partialorder %v7141_v47, %v7248_v35 }
 0xfcb   : > { %v3440_v52 = vsel %vm3439_vm0, %v3435_v36, inf  ;;  %v3417_v36 = vshll.u32 %v3416_v1, 16 }
 0xfcc   : > { %3441 = vmin.xlane.f32.xlu1 %v3440_v52 }
 0xfcd   : > { %v7253_v40 = vpop.xlane.xlu0 %3451 }
 0xfce   : > { %vm3453_vm1 = vcmp.eq.f32.partialorder %v7149_v8, %v7253_v40 }
 0xfcf   : > { %v3454_v31 = vsel %vm3453_vm1, %v3449_v38, inf }
 0xfd0   : > { %3455 = vmin.xlane.f32.xlu0 %v3454_v31  ;;  %v3444_v31 = vcvt.f32.s32 %v7248_v35 }
 0xfd1   : > { %v7258_v29 = vpop.xlane.xlu0 %3367 }
 0xfd2   : > { %vm3369_vm3 = vcmp.eq.f32.partialorder %v7157_v57, %v7258_v29  ;;  %v3374_v30 = vcvt.f32.s32 %v7258_v29 }
 0xfd3   : > { %v3370_v47 = vsel %vm3369_vm3, %v3365_v25, inf }
 0xfd4   : > { %3371 = vmin.xlane.f32.xlu0 %v3370_v47  ;;  %v3445_v47 = vshll.u32 %v3444_v31, 16  ;;  %v3375_v50 = vshll.u32 %v3374_v30, 16 }
 0xfd5   : > { %v7263_v24 = vpop.xlane.xlu0 %3479 }
 0xfd6   : > { %vm3481_vm5 = vcmp.eq.f32.partialorder %v7165_v22, %v7263_v24 }
 0xfd7   : > { %v3482_v8 = vsel %vm3481_vm5, %v3477_v60, inf  ;;  %v3458_v60 = vcvt.f32.s32 %v7253_v40 }
 0xfd8   : > { %3483 = vmin.xlane.f32.xlu0 %v3482_v8 }
 0xfd9   : > { %v7268_v2 = vpop.xlane.xlu1 %3353 }
 0xfda   : > { %vm3355_vm6 = vcmp.eq.f32.partialorder %v7173_v54, %v7268_v2 }
 0xfdb   : > { %v3356_v57 = vsel %vm3355_vm6, %v3351_v53, inf  ;;  %v3459_v53 = vshll.u32 %v3458_v60, 16 }
 0xfdc   : > { %3357 = vmin.xlane.f32.xlu1 %v3356_v57 }
 0xfdd   : > { %v7273_v39 = vpop.xlane.xlu1 %3465 }
 0xfde   : > { %vm3467_vm7 = vcmp.eq.f32.partialorder %v7181_v32, %v7273_v39  ;;  %v3472_v5 = vcvt.f32.s32 %v7273_v39 }
 0xfdf   : > { %v3468_v22 = vsel %vm3467_vm7, %v3463_v56, inf }
 0xfe0   : > { %3469 = vmin.xlane.f32.xlu1 %v3468_v22  ;;  %v3486_v22 = vcvt.f32.s32 %v7263_v24 }
 0xfe1   : > { %v7278_v62 = vpop.xlane.xlu0 %3395 }
 0xfe2   : > { %vm3397_vm8 = vcmp.eq.f32.partialorder %v7189_v26, %v7278_v62  ;;  %v3402_v11 = vcvt.f32.s32 %v7278_v62 }
 0xfe3   : > { %v3398_v54 = vsel %vm3397_vm8, %v3393_v14, inf }
 0xfe4   : > { %3399 = vmin.xlane.f32.xlu0 %v3398_v54  ;;  %v3487_v54 = vshll.u32 %v3486_v22, 16  ;;  %v3403_v46 = vshll.u32 %v3402_v11, 16 }
 0xfe5   : > { %v7283_v7 = vpop.xlane.xlu1 %3381 }
 0xfe6   : > { %vm3383_vm9 = vcmp.eq.f32.partialorder %v7197_v3, %v7283_v7 }
 0xfe7   : > { %v3384_v32 = vsel %vm3383_vm9, %v3379_v55, inf  ;;  %v3360_v55 = vcvt.f32.s32 %v7268_v2 }
 0xfe8   : > { %3385 = vmin.xlane.f32.xlu1 %v3384_v32 }
 0xfe9   : > { %v7288_v48 = vpop.xlane.xlu1 %3493 }
 0xfea   : > { %vm3495_vm10 = vcmp.eq.f32.partialorder %v7205_v45, %v7288_v48  ;;  %v3500_v62 = vcvt.f32.s32 %v7288_v48 }
 0xfeb   : > { %v3496_v26 = vsel %vm3495_vm10, %v3491_v6, inf  ;;  %v3361_v6 = vshll.u32 %v3360_v55, 16 }
 0xfec   : > { %3497 = vmin.xlane.f32.xlu1 %v3496_v26 }
 0xfed   : > { %v7292_v10 = vpop.xlane.xlu0 %3507 }
 0xfee   : > { %vm3509_vm2 = vcmp.eq.f32.partialorder %v7213_v19, %v7292_v10 }
 0xfef   : > { %v3510_v3 = vsel %vm3509_vm2, %v3505_v13, inf }
 0xff0   : > { %3511 = vmin.xlane.f32.xlu0 %v3510_v3  ;;  %v3473_v3 = vshll.u32 %v3472_v5, 16 }
0x103d   : > { %v3302_v12 = vpop.xlane.xlu1 %3301 }
0x103e   : > { %v3303_v44 = vcvt.f32.s32 %v3302_v12 }
0x1040   : > { %v3306_v45 = vadd.s32 %v3305_v63, %v3303_v44  ;;  %v3388_v44 = vcvt.f32.s32 %v7283_v7  ;;  %v3514_v7 = vcvt.f32.s32 %v7292_v10 }
0x1041   : > { %v3316_v4 = vpop.xlane.xlu0 %3315 }
0x1042   : > { %3518 = vst.msk [vmem:[%s4531_s5] sm:$0xff] %vm3517_vm11, %v3306_v45  ;;  %v3317_v19 = vcvt.f32.s32 %v3316_v4 }
0x1044   : > { %v3320_v49 = vadd.s32 %v3319_v16, %v3317_v19  ;;  %v3389_v16 = vshll.u32 %v3388_v44, 16 }
0x1045   : > { %v3330_v58 = vpop.xlane.xlu1 %3329 }
0x1046   : > { %3519 = vst.msk [vmem:[%s4531_s5 + $0x8] sm:$0xff] %vm3517_vm11, %v3320_v49  ;;  %v3331_v37 = vcvt.f32.s32 %v3330_v58  ;;  %v3501_v58 = vshll.u32 %v3500_v62, 16 }
0x1048   : > { %v3334_v21 = vadd.s32 %v3333_v0, %v3331_v37 }
0x1049   : > { %v3344_v51 = vpop.xlane.xlu0 %3343 }
0x104a   : > { %3520 = vst.msk [vmem:[%s4531_s5 + $0x10] sm:$0xff] %vm3517_vm11, %v3334_v21  ;;  %v3345_v59 = vcvt.f32.s32 %v3344_v51  ;;  %v3515_v21 = vshll.u32 %v3514_v7, 16 }
0x104c   : > { %v3348_v43 = vadd.s32 %v3347_v34, %v3345_v59 }
0x104d   : > { %v3414_v27 = vpop.xlane.xlu1 %3413 }
0x104e   : > { %3521 = vst.msk [vmem:[%s4531_s5 + $0x18] sm:$0xff] %vm3517_vm11, %v3348_v43  ;;  %v3415_v15 = vcvt.f32.s32 %v3414_v27 }
0x1050   : > { %v3418_v52 = vadd.s32 %v3417_v36, %v3415_v15 }
0x1051   : > { %v3428_v38 = vpop.xlane.xlu0 %3427 }
0x1052   : > { %3526 = vst.msk [vmem:[%s4531_s5 + $0x40] sm:$0xff] %vm3517_vm11, %v3418_v52  ;;  %v3429_v23 = vcvt.f32.s32 %v3428_v38 }
0x1054   : > { %v3432_v25 = vadd.s32 %v3431_v28, %v3429_v23 }
0x1055   : > { %v3442_v33 = vpop.xlane.xlu1 %3441 }
0x1056   : > { %3527 = vst.msk [vmem:[%s4531_s5 + $0x48] sm:$0xff] %vm3517_vm11, %v3432_v25  ;;  %v3443_v20 = vcvt.f32.s32 %v3442_v33 }
0x1058   : > { %v3446_v17 = vadd.s32 %v3445_v47, %v3443_v20 }
0x1059   : > { %v3456_v8 = vpop.xlane.xlu0 %3455 }
0x105a   : > { %3528 = vst.msk [vmem:[%s4531_s5 + $0x50] sm:$0xff] %vm3517_vm11, %v3446_v17  ;;  %v3457_v35 = vcvt.f32.s32 %v3456_v8 }
0x105c   : > { %v3460_v57 = vadd.s32 %v3459_v53, %v3457_v35 }
0x105d   : > { %v3372_v56 = vpop.xlane.xlu0 %3371 }
0x105e   : > { %3529 = vst.msk [vmem:[%s4531_s5 + $0x58] sm:$0xff] %vm3517_vm11, %v3460_v57  ;;  %v3373_v40 = vcvt.f32.s32 %v3372_v56 }
0x1060   : > { %v3376_v14 = vadd.s32 %v3375_v50, %v3373_v40 }
0x1061   : > { %v3484_v42 = vpop.xlane.xlu0 %3483 }
0x1062   : > { %3523 = vst.msk [vmem:[%s4531_s5 + $0x28] sm:$0xff] %vm3517_vm11, %v3376_v14  ;;  %v3485_v29 = vcvt.f32.s32 %v3484_v42 }
0x1064   : > { %v3488_v61 = vadd.s32 %v3487_v54, %v3485_v29 }
0x1065   : > { %v3358_v32 = vpop.xlane.xlu1 %3357 }
0x1066   : > { %3531 = vst.msk [vmem:[%s4531_s5 + $0x68] sm:$0xff] %vm3517_vm11, %v3488_v61  ;;  %v3359_v24 = vcvt.f32.s32 %v3358_v32 }
0x1068   : > { %v3362_v26 = vadd.s32 %v3361_v6, %v3359_v24 }
0x1069   : > { %v3470_v13 = vpop.xlane.xlu1 %3469 }
0x106a   : > { %3522 = vst.msk [vmem:[%s4531_s5 + $0x20] sm:$0xff] %vm3517_vm11, %v3362_v26  ;;  %v3471_v2 = vcvt.f32.s32 %v3470_v13 }
0x106c   : > { %v3474_v12 = vadd.s32 %v3473_v3, %v3471_v2 }
0x106d   : > { %v3400_v63 = vpop.xlane.xlu0 %3399 }
0x106e   : > { %3530 = vst.msk [vmem:[%s4531_s5 + $0x60] sm:$0xff] %vm3517_vm11, %v3474_v12  ;;  %v3401_v39 = vcvt.f32.s32 %v3400_v63 }
0x1070   : > { %v3404_v45 = vadd.s32 %v3403_v46, %v3401_v39 }
0x1071   : > { %v3386_v4 = vpop.xlane.xlu1 %3385 }
0x1072   : > { %3525 = vst.msk [vmem:[%s4531_s5 + $0x38] sm:$0xff] %vm3517_vm11, %v3404_v45  ;;  %v3387_v41 = vcvt.f32.s32 %v3386_v4 }
0x1074   : > { %v3390_v19 = vadd.s32 %v3389_v16, %v3387_v41 }
0x1075   : > { %v3498_v49 = vpop.xlane.xlu1 %3497 }
0x1076   : > { %3524 = vst.msk [vmem:[%s4531_s5 + $0x30] sm:$0xff] %vm3517_vm11, %v3390_v19  ;;  %v3499_v0 = vcvt.f32.s32 %v3498_v49 }
0x1078   : > { %v3502_v18 = vadd.s32 %v3501_v58, %v3499_v0 }
0x1079   : > { %v3512_v37 = vpop.xlane.xlu0 %3511 }
0x107a   : > { %3532 = vst.msk [vmem:[%s4531_s5 + $0x70] sm:$0xff] %vm3517_vm11, %v3502_v18  ;;  %v3513_v48 = vcvt.f32.s32 %v3512_v37 }
0x107c   : > { %v3516_v10 = vadd.s32 %v3515_v21, %v3513_v48 }
0x107e   : > { %3533 = vst.msk [vmem:[%s4531_s5 + $0x78] sm:$0xff] %vm3517_vm11, %v3516_v10 }
0x107f   : > { %3844 = shalt.err (!%p3841_p8)
}
0x1080   : > { %s3845_s20 = scalar_lea.hbm %s7347_s10, 2048  ;;  %s3849_s26 = scalar_lea.hbm %s7397_s2, 4096 }
0x1081   : > { %p3846_p9 = scmp.ne.s32.totalorder %s7347_s10, %s3845_s20  ;;  %p3850_p0 = scmp.lt.s32.totalorder %s7347_s10, %s7397_s2 }
0x1082   : > { %p3851_p1 = scmp.lt.s32.totalorder %s3849_s26, %s3845_s20 }
0x1083   : > { %p3847_p12 = pnand %p3846_p9, %p3956_p10 }
0x1084   : > { %p3852_p2 = por %p3851_p1, %p3850_p0 }
0x1085   : > { %p3848_p13 = pneg %p3847_p12 }
0x1087   : > { %p3853_p3 = pnand %p3852_p2, %p3848_p13 }
0x1089   : > { %3856 = shalt.err (!%p3853_p3)
}
0x108a   : > { %s3898_s29 = smov 128   ;;  %s3899_s30 = smov 8  }
0x108b   : > { %3776 = dma.vmem_to_hbm [thread:$0]  (%p3956_p10), %s7349_s7, 2048, %s7347_s10, %s7355_s11, %s3898_s29, %s3898_s29, %s3899_s30  }
0x108c PF: > { %p3782_p4 = scmp.ge.s32.totalorder %s3893_s16, 2  ;;  %s3563_s3 = sand.u32 1, %s3881_s14  }
0x108d   : > { %s3564_s4 = scalar_lea.sflag [#allocation5], %s3563_s3 }
0x108e   : > { %p3779_p5 = pnand %p3782_p4, %p3960_p11 }
0x1090   : > { %p3780_p6 = pneg %p3779_p5 }
0x1092   : > { %3876 = dma.done.wait (%p3780_p6), %s3564_s4, 2048  }
0x1093   : > { %3878 = vsyncadd (%p3780_p6), %s3564_s4, 4294965248  ;;  %p18_p7 = scmp.ge.s32.totalorder %s3943_s19, 4   ;;  %s7402_s14 = smov %s3885_s15 }
0x1094   : > { %s7403_s15 = smov %s3889_s0  ;;  %s7404_s0 = smov %s3954_s22 }
0x1095   : > { %s7405_s16 = smov %s3943_s19  ;;  %20 = sbr.rel (!%p18_p7) target bundleno = 18 (0x12), region = 59 }
0x109a   :  { %3569 = vsyncpa [#allocation5], 1 }
0x109b   :  { %3571 = vsyncpa [#allocation5 + $0x1], 1 }

</bundles_post_ra>
